<compile_context>
chip_gen: v5e
topology: v5e:2x2
jax: 0.10.0
libtpu: 0.0.40
codegen_flags: <defaults>
</compile_context>

<pallas_src>
import jax
import jax.numpy as jnp
from jax.experimental import pallas as pl
from jax.experimental.pallas import tpu as pltpu

_CIN = 3      # conv input channels
_COUT = 8     # conv output channels
_NCONV = 5    # number of parallel conv branches

_VMEM = pl.BlockSpec(memory_space=pltpu.MemorySpace.VMEM)
_SMEM = pl.BlockSpec(memory_space=pltpu.MemorySpace.SMEM)


def _fold_effective_params(w_ref, b_ref, o):
    """Fold the add tree (v1 + 2*(v2+v3+v4+v5)) into one effective 1x1 conv.

    w_ref: flat (5*8*3,) f32 SMEM ref, C-order of (layer, out_ch, in_ch).
    b_ref: flat (5*8,)  f32 SMEM ref, C-order of (layer, out_ch).
    Returns ([w_c for c in range(3)], b) for output channel `o` (scalar values,
    folded on the scalar unit -- ~30 scalar ops per channel, fully hidden).
    """
    ws = []
    for c in range(_CIN):
        w = w_ref[o * _CIN + c]                                   # layer 0
        for l in range(1, _NCONV):
            w = w + 2.0 * w_ref[(l * _COUT + o) * _CIN + c]
        ws.append(w)
    b = b_ref[o]
    for l in range(1, _NCONV):
        b = b + 2.0 * b_ref[l * _COUT + o]
    return ws, b


def _fused_conv_pad_kernel(x1_ref, x2_ref, w_ref, b_ref, o_ref):
    """x refs: (3, H, W) VMEM. w/b refs: flat SMEM. o_ref: (8, H+2, W+2) VMEM."""
    h, w = x1_ref.shape[1], x1_ref.shape[2]
    x = x1_ref[...] + x2_ref[...]                                 # x1.add(x2)
    for o in range(_COUT):
        (w0, w1, w2), b = _fold_effective_params(w_ref, b_ref, o)
        # 1x1 conv == per-pixel linear map -> 3 VPU FMAs per output channel.
        y = w0 * x[0] + w1 * x[1] + w2 * x[2] + b                 # (H, W)
        # padding=1 on a 1x1 conv: border output pixels see only zero-padded
        # input, i.e. they equal the bias.  Fill the padded slab with the bias,
        # then overwrite the interior -> single fused write-out, no XLA post-pass.
        o_ref[o] = jnp.full((h + 2, w + 2), b, dtype=jnp.float32)
        o_ref[o, 1:h + 1, 1:w + 1] = y


def _interior_conv_kernel(x1_ref, x2_ref, w_ref, b_ref, o_ref):
    """Fallback kernel: x refs (3, P//128, 128) lane-dense; o_ref (8, P//128, 128)."""
    x = x1_ref[...] + x2_ref[...]
    for o in range(_COUT):
        (w0, w1, w2), b = _fold_effective_params(w_ref, b_ref, o)
        o_ref[o] = w0 * x[0] + w1 * x[1] + w2 * x[2] + b


@jax.jit
def _forward_fused(x1, x2, w_flat, b_flat):
    _, cin, h, w = x1.shape
    out = pl.pallas_call(
        _fused_conv_pad_kernel,
        out_shape=jax.ShapeDtypeStruct((_COUT, h + 2, w + 2), jnp.float32),
        in_specs=[_VMEM, _VMEM, _SMEM, _SMEM],
        out_specs=_VMEM,
    )(x1.reshape(cin, h, w).astype(jnp.float32),
      x2.reshape(cin, h, w).astype(jnp.float32),
      w_flat, b_flat)
    return out[None]


@jax.jit
def _forward_split(x1, x2, w_flat, b_flat):
    _, cin, h, w = x1.shape
    rows = (h * w) // 128
    interior = pl.pallas_call(
        _interior_conv_kernel,
        out_shape=jax.ShapeDtypeStruct((_COUT, rows, 128), jnp.float32),
        in_specs=[_VMEM, _VMEM, _SMEM, _SMEM],
        out_specs=_VMEM,
    )(x1.reshape(cin, rows, 128).astype(jnp.float32),
      x2.reshape(cin, rows, 128).astype(jnp.float32),
      w_flat, b_flat)
    b2d = b_flat.reshape(_NCONV, _COUT)
    b_eff = b2d[0] + 2.0 * jnp.sum(b2d[1:], axis=0)
    out = jnp.broadcast_to(b_eff[:, None, None], (_COUT, h + 2, w + 2))
    out = out.at[:, 1:-1, 1:-1].set(interior.reshape(_COUT, h, w))
    return out[None]


def model_forward(x1, x2, weights, biases):
    """x1, x2: (1, 3, H, W). weights: (5, 8, 3) 1x1 kernels. biases: (5, 8).
    Returns (1, 8, H+2, W+2), matching the PyTorch module's forward."""
    n, cin, h, w = x1.shape
    assert n == 1 and cin == _CIN
    # Single-block kernel: keep the whole padded output resident in VMEM.
    assert (h + 2) * (w + 2) * _COUT * 4 <= 8 * 1024 * 1024, "image too large for single-block path"

    w_flat = jnp.asarray(weights, jnp.float32).reshape(-1)
    b_flat = jnp.asarray(biases, jnp.float32).reshape(-1)
    try:
        return _forward_fused(x1, x2, w_flat, b_flat)
    except Exception:
        # Safety net only: used if this jaxlib's Mosaic cannot lower the fused
        # kernel's unaligned interior store.  Previously-validated path.
        if (h * w) % 128 != 0:
            raise
        return _forward_split(x1, x2, w_flat, b_flat)


if __name__ == "__main__":
    key = jax.random.PRNGKey(0)
    k1, k2, kw, kb = jax.random.split(key, 4)

    H = W = 64                                      # module spec: (1, 3, 64, 64)
    x1 = jax.random.normal(k1, (1, 3, H, W), dtype=jnp.float32)
    x2 = jax.random.normal(k2, (1, 3, H, W), dtype=jnp.float32)

    # Deterministic synthetic parameters for the five Conv2d(3, 8, 1) layers.
    # (PyTorch default init is U(-1/sqrt(fan_in), 1/sqrt(fan_in)); fan_in = 3.)
    bound = 1.0 / jnp.sqrt(3.0)
    weights = jax.random.uniform(kw, (_NCONV, _COUT, _CIN), jnp.float32, -bound, bound)
    biases = jax.random.uniform(kb, (_NCONV, _COUT), jnp.float32, -bound, bound)

    out = model_forward(x1, x2, weights, biases)
    jax.block_until_ready(out)

    # Pure-JAX reference of the ORIGINAL (unfolded) module math.
    xs = jnp.pad(x1 + x2, ((0, 0), (0, 0), (1, 1), (1, 1)))
    vs = [jnp.einsum("oc,nchw->nohw", weights[i], xs) + biases[i][None, :, None, None]
          for i in range(_NCONV)]
    ref = (vs[0] + vs[1]) + (vs[1] + vs[2]) + (vs[2] + vs[3]) + (vs[3] + vs[4]) + vs[4]

    assert out.shape == (1, _COUT, H + 2, W + 2)
    assert jnp.allclose(out, ref, atol=1e-4, rtol=1e-4), float(jnp.max(jnp.abs(out - ref)))
    print("KERNEL_OK")
</pallas_src>

<mosaic_0001>
module attributes {stable_mosaic.version = 11 : i64} {
  func.func @_fused_conv_pad_kernel(%arg0: memref<3x64x64xf32, #tpu.memory_space<vmem>>, %arg1: memref<3x64x64xf32, #tpu.memory_space<vmem>>, %arg2: memref<120xf32, #tpu.memory_space<smem>>, %arg3: memref<40xf32, #tpu.memory_space<smem>>, %arg4: memref<8x66x66xf32, #tpu.memory_space<vmem>>) attributes {dimension_semantics = [], scalar_prefetch = 0 : i64, scratch_operands = 0 : i64, tpu.core_type = #tpu.core_type<tc>} {
    %c0 = arith.constant 0 : index
    %c0_0 = arith.constant 0 : index
    %c0_1 = arith.constant 0 : index
    %0 = vector.load %arg0[%c0, %c0_0, %c0_1] : memref<3x64x64xf32, #tpu.memory_space<vmem>>, vector<3x64x64xf32>
    %c0_2 = arith.constant 0 : index
    %c0_3 = arith.constant 0 : index
    %c0_4 = arith.constant 0 : index
    %1 = vector.load %arg1[%c0_2, %c0_3, %c0_4] : memref<3x64x64xf32, #tpu.memory_space<vmem>>, vector<3x64x64xf32>
    %2 = arith.addf %0, %1 : vector<3x64x64xf32>
    %c0_5 = arith.constant 0 : index
    %3 = memref.load %arg2[%c0_5] : memref<120xf32, #tpu.memory_space<smem>>
    %c24 = arith.constant 24 : index
    %4 = memref.load %arg2[%c24] : memref<120xf32, #tpu.memory_space<smem>>
    %cst = arith.constant 2.000000e+00 : f32
    %5 = arith.mulf %cst, %4 : f32
    %6 = arith.addf %3, %5 : f32
    %c48 = arith.constant 48 : index
    %7 = memref.load %arg2[%c48] : memref<120xf32, #tpu.memory_space<smem>>
    %cst_6 = arith.constant 2.000000e+00 : f32
    %8 = arith.mulf %cst_6, %7 : f32
    %9 = arith.addf %6, %8 : f32
    %c72 = arith.constant 72 : index
    %10 = memref.load %arg2[%c72] : memref<120xf32, #tpu.memory_space<smem>>
    %cst_7 = arith.constant 2.000000e+00 : f32
    %11 = arith.mulf %cst_7, %10 : f32
    %12 = arith.addf %9, %11 : f32
    %c96 = arith.constant 96 : index
    %13 = memref.load %arg2[%c96] : memref<120xf32, #tpu.memory_space<smem>>
    %cst_8 = arith.constant 2.000000e+00 : f32
    %14 = arith.mulf %cst_8, %13 : f32
    %15 = arith.addf %12, %14 : f32
    %c1 = arith.constant 1 : index
    %16 = memref.load %arg2[%c1] : memref<120xf32, #tpu.memory_space<smem>>
    %c25 = arith.constant 25 : index
    %17 = memref.load %arg2[%c25] : memref<120xf32, #tpu.memory_space<smem>>
    %cst_9 = arith.constant 2.000000e+00 : f32
    %18 = arith.mulf %cst_9, %17 : f32
    %19 = arith.addf %16, %18 : f32
    %c49 = arith.constant 49 : index
    %20 = memref.load %arg2[%c49] : memref<120xf32, #tpu.memory_space<smem>>
    %cst_10 = arith.constant 2.000000e+00 : f32
    %21 = arith.mulf %cst_10, %20 : f32
    %22 = arith.addf %19, %21 : f32
    %c73 = arith.constant 73 : index
    %23 = memref.load %arg2[%c73] : memref<120xf32, #tpu.memory_space<smem>>
    %cst_11 = arith.constant 2.000000e+00 : f32
    %24 = arith.mulf %cst_11, %23 : f32
    %25 = arith.addf %22, %24 : f32
    %c97 = arith.constant 97 : index
    %26 = memref.load %arg2[%c97] : memref<120xf32, #tpu.memory_space<smem>>
    %cst_12 = arith.constant 2.000000e+00 : f32
    %27 = arith.mulf %cst_12, %26 : f32
    %28 = arith.addf %25, %27 : f32
    %c2 = arith.constant 2 : index
    %29 = memref.load %arg2[%c2] : memref<120xf32, #tpu.memory_space<smem>>
    %c26 = arith.constant 26 : index
    %30 = memref.load %arg2[%c26] : memref<120xf32, #tpu.memory_space<smem>>
    %cst_13 = arith.constant 2.000000e+00 : f32
    %31 = arith.mulf %cst_13, %30 : f32
    %32 = arith.addf %29, %31 : f32
    %c50 = arith.constant 50 : index
    %33 = memref.load %arg2[%c50] : memref<120xf32, #tpu.memory_space<smem>>
    %cst_14 = arith.constant 2.000000e+00 : f32
    %34 = arith.mulf %cst_14, %33 : f32
    %35 = arith.addf %32, %34 : f32
    %c74 = arith.constant 74 : index
    %36 = memref.load %arg2[%c74] : memref<120xf32, #tpu.memory_space<smem>>
    %cst_15 = arith.constant 2.000000e+00 : f32
    %37 = arith.mulf %cst_15, %36 : f32
    %38 = arith.addf %35, %37 : f32
    %c98 = arith.constant 98 : index
    %39 = memref.load %arg2[%c98] : memref<120xf32, #tpu.memory_space<smem>>
    %cst_16 = arith.constant 2.000000e+00 : f32
    %40 = arith.mulf %cst_16, %39 : f32
    %41 = arith.addf %38, %40 : f32
    %c0_17 = arith.constant 0 : index
    %42 = memref.load %arg3[%c0_17] : memref<40xf32, #tpu.memory_space<smem>>
    %c8 = arith.constant 8 : index
    %43 = memref.load %arg3[%c8] : memref<40xf32, #tpu.memory_space<smem>>
    %cst_18 = arith.constant 2.000000e+00 : f32
    %44 = arith.mulf %cst_18, %43 : f32
    %45 = arith.addf %42, %44 : f32
    %c16 = arith.constant 16 : index
    %46 = memref.load %arg3[%c16] : memref<40xf32, #tpu.memory_space<smem>>
    %cst_19 = arith.constant 2.000000e+00 : f32
    %47 = arith.mulf %cst_19, %46 : f32
    %48 = arith.addf %45, %47 : f32
    %c24_20 = arith.constant 24 : index
    %49 = memref.load %arg3[%c24_20] : memref<40xf32, #tpu.memory_space<smem>>
    %cst_21 = arith.constant 2.000000e+00 : f32
    %50 = arith.mulf %cst_21, %49 : f32
    %51 = arith.addf %48, %50 : f32
    %c32 = arith.constant 32 : index
    %52 = memref.load %arg3[%c32] : memref<40xf32, #tpu.memory_space<smem>>
    %cst_22 = arith.constant 2.000000e+00 : f32
    %53 = arith.mulf %cst_22, %52 : f32
    %54 = arith.addf %51, %53 : f32
    %55 = vector.extract_strided_slice %2 {offsets = [0, 0, 0], sizes = [1, 64, 64], strides = [1, 1, 1]} : vector<3x64x64xf32> to vector<1x64x64xf32>
    %56 = vector.shape_cast %55 : vector<1x64x64xf32> to vector<64x64xf32>
    %57 = vector.broadcast %15 : f32 to vector<64x64xf32>
    %58 = arith.mulf %57, %56 : vector<64x64xf32>
    %59 = vector.extract_strided_slice %2 {offsets = [1, 0, 0], sizes = [1, 64, 64], strides = [1, 1, 1]} : vector<3x64x64xf32> to vector<1x64x64xf32>
    %60 = vector.shape_cast %59 : vector<1x64x64xf32> to vector<64x64xf32>
    %61 = vector.broadcast %28 : f32 to vector<64x64xf32>
    %62 = arith.mulf %61, %60 : vector<64x64xf32>
    %63 = arith.addf %58, %62 : vector<64x64xf32>
    %64 = vector.extract_strided_slice %2 {offsets = [2, 0, 0], sizes = [1, 64, 64], strides = [1, 1, 1]} : vector<3x64x64xf32> to vector<1x64x64xf32>
    %65 = vector.shape_cast %64 : vector<1x64x64xf32> to vector<64x64xf32>
    %66 = vector.broadcast %41 : f32 to vector<64x64xf32>
    %67 = arith.mulf %66, %65 : vector<64x64xf32>
    %68 = arith.addf %63, %67 : vector<64x64xf32>
    %69 = vector.broadcast %54 : f32 to vector<64x64xf32>
    %70 = arith.addf %68, %69 : vector<64x64xf32>
    %71 = vector.broadcast %54 : f32 to vector<66x66xf32>
    %c0_23 = arith.constant 0 : index
    %c0_24 = arith.constant 0 : index
    %c0_25 = arith.constant 0 : index
    %72 = vector.load %arg4[%c0_23, %c0_24, %c0_25] : memref<8x66x66xf32, #tpu.memory_space<vmem>>, vector<1x66x66xf32>
    %73 = vector.shape_cast %72 : vector<1x66x66xf32> to vector<66x66xf32>
    %74 = vector.shape_cast %71 : vector<66x66xf32> to vector<1x66x66xf32>
    tpu.vector_store %arg4[%c0_23, %c0_24, %c0_25], %74 {strides = array<i32>} : memref<8x66x66xf32, #tpu.memory_space<vmem>>, vector<1x66x66xf32>,
    %c0_26 = arith.constant 0 : index
    %c1_27 = arith.constant 1 : index
    %c1_28 = arith.constant 1 : index
    %75 = vector.load %arg4[%c0_26, %c1_27, %c1_28] : memref<8x66x66xf32, #tpu.memory_space<vmem>>, vector<1x64x64xf32>
    %76 = vector.shape_cast %75 : vector<1x64x64xf32> to vector<64x64xf32>
    %77 = vector.shape_cast %70 : vector<64x64xf32> to vector<1x64x64xf32>
    tpu.vector_store %arg4[%c0_26, %c1_27, %c1_28], %77 {strides = array<i32>} : memref<8x66x66xf32, #tpu.memory_space<vmem>>, vector<1x64x64xf32>,
    %c3 = arith.constant 3 : index
    %78 = memref.load %arg2[%c3] : memref<120xf32, #tpu.memory_space<smem>>
    %c27 = arith.constant 27 : index
    %79 = memref.load %arg2[%c27] : memref<120xf32, #tpu.memory_space<smem>>
    %cst_29 = arith.constant 2.000000e+00 : f32
    %80 = arith.mulf %cst_29, %79 : f32
    %81 = arith.addf %78, %80 : f32
    %c51 = arith.constant 51 : index
    %82 = memref.load %arg2[%c51] : memref<120xf32, #tpu.memory_space<smem>>
    %cst_30 = arith.constant 2.000000e+00 : f32
    %83 = arith.mulf %cst_30, %82 : f32
    %84 = arith.addf %81, %83 : f32
    %c75 = arith.constant 75 : index
    %85 = memref.load %arg2[%c75] : memref<120xf32, #tpu.memory_space<smem>>
    %cst_31 = arith.constant 2.000000e+00 : f32
    %86 = arith.mulf %cst_31, %85 : f32
    %87 = arith.addf %84, %86 : f32
    %c99 = arith.constant 99 : index
    %88 = memref.load %arg2[%c99] : memref<120xf32, #tpu.memory_space<smem>>
    %cst_32 = arith.constant 2.000000e+00 : f32
    %89 = arith.mulf %cst_32, %88 : f32
    %90 = arith.addf %87, %89 : f32
    %c4 = arith.constant 4 : index
    %91 = memref.load %arg2[%c4] : memref<120xf32, #tpu.memory_space<smem>>
    %c28 = arith.constant 28 : index
    %92 = memref.load %arg2[%c28] : memref<120xf32, #tpu.memory_space<smem>>
    %cst_33 = arith.constant 2.000000e+00 : f32
    %93 = arith.mulf %cst_33, %92 : f32
    %94 = arith.addf %91, %93 : f32
    %c52 = arith.constant 52 : index
    %95 = memref.load %arg2[%c52] : memref<120xf32, #tpu.memory_space<smem>>
    %cst_34 = arith.constant 2.000000e+00 : f32
    %96 = arith.mulf %cst_34, %95 : f32
    %97 = arith.addf %94, %96 : f32
    %c76 = arith.constant 76 : index
    %98 = memref.load %arg2[%c76] : memref<120xf32, #tpu.memory_space<smem>>
    %cst_35 = arith.constant 2.000000e+00 : f32
    %99 = arith.mulf %cst_35, %98 : f32
    %100 = arith.addf %97, %99 : f32
    %c100 = arith.constant 100 : index
    %101 = memref.load %arg2[%c100] : memref<120xf32, #tpu.memory_space<smem>>
    %cst_36 = arith.constant 2.000000e+00 : f32
    %102 = arith.mulf %cst_36, %101 : f32
    %103 = arith.addf %100, %102 : f32
    %c5 = arith.constant 5 : index
    %104 = memref.load %arg2[%c5] : memref<120xf32, #tpu.memory_space<smem>>
    %c29 = arith.constant 29 : index
    %105 = memref.load %arg2[%c29] : memref<120xf32, #tpu.memory_space<smem>>
    %cst_37 = arith.constant 2.000000e+00 : f32
    %106 = arith.mulf %cst_37, %105 : f32
    %107 = arith.addf %104, %106 : f32
    %c53 = arith.constant 53 : index
    %108 = memref.load %arg2[%c53] : memref<120xf32, #tpu.memory_space<smem>>
    %cst_38 = arith.constant 2.000000e+00 : f32
    %109 = arith.mulf %cst_38, %108 : f32
    %110 = arith.addf %107, %109 : f32
    %c77 = arith.constant 77 : index
    %111 = memref.load %arg2[%c77] : memref<120xf32, #tpu.memory_space<smem>>
    %cst_39 = arith.constant 2.000000e+00 : f32
    %112 = arith.mulf %cst_39, %111 : f32
    %113 = arith.addf %110, %112 : f32
    %c101 = arith.constant 101 : index
    %114 = memref.load %arg2[%c101] : memref<120xf32, #tpu.memory_space<smem>>
    %cst_40 = arith.constant 2.000000e+00 : f32
    %115 = arith.mulf %cst_40, %114 : f32
    %116 = arith.addf %113, %115 : f32
    %c1_41 = arith.constant 1 : index
    %117 = memref.load %arg3[%c1_41] : memref<40xf32, #tpu.memory_space<smem>>
    %c9 = arith.constant 9 : index
    %118 = memref.load %arg3[%c9] : memref<40xf32, #tpu.memory_space<smem>>
    %cst_42 = arith.constant 2.000000e+00 : f32
    %119 = arith.mulf %cst_42, %118 : f32
    %120 = arith.addf %117, %119 : f32
    %c17 = arith.constant 17 : index
    %121 = memref.load %arg3[%c17] : memref<40xf32, #tpu.memory_space<smem>>
    %cst_43 = arith.constant 2.000000e+00 : f32
    %122 = arith.mulf %cst_43, %121 : f32
    %123 = arith.addf %120, %122 : f32
    %c25_44 = arith.constant 25 : index
    %124 = memref.load %arg3[%c25_44] : memref<40xf32, #tpu.memory_space<smem>>
    %cst_45 = arith.constant 2.000000e+00 : f32
    %125 = arith.mulf %cst_45, %124 : f32
    %126 = arith.addf %123, %125 : f32
    %c33 = arith.constant 33 : index
    %127 = memref.load %arg3[%c33] : memref<40xf32, #tpu.memory_space<smem>>
    %cst_46 = arith.constant 2.000000e+00 : f32
    %128 = arith.mulf %cst_46, %127 : f32
    %129 = arith.addf %126, %128 : f32
    %130 = vector.extract_strided_slice %2 {offsets = [0, 0, 0], sizes = [1, 64, 64], strides = [1, 1, 1]} : vector<3x64x64xf32> to vector<1x64x64xf32>
    %131 = vector.shape_cast %130 : vector<1x64x64xf32> to vector<64x64xf32>
    %132 = vector.broadcast %90 : f32 to vector<64x64xf32>
    %133 = arith.mulf %132, %131 : vector<64x64xf32>
    %134 = vector.extract_strided_slice %2 {offsets = [1, 0, 0], sizes = [1, 64, 64], strides = [1, 1, 1]} : vector<3x64x64xf32> to vector<1x64x64xf32>
    %135 = vector.shape_cast %134 : vector<1x64x64xf32> to vector<64x64xf32>
    %136 = vector.broadcast %103 : f32 to vector<64x64xf32>
    %137 = arith.mulf %136, %135 : vector<64x64xf32>
    %138 = arith.addf %133, %137 : vector<64x64xf32>
    %139 = vector.extract_strided_slice %2 {offsets = [2, 0, 0], sizes = [1, 64, 64], strides = [1, 1, 1]} : vector<3x64x64xf32> to vector<1x64x64xf32>
    %140 = vector.shape_cast %139 : vector<1x64x64xf32> to vector<64x64xf32>
    %141 = vector.broadcast %116 : f32 to vector<64x64xf32>
    %142 = arith.mulf %141, %140 : vector<64x64xf32>
    %143 = arith.addf %138, %142 : vector<64x64xf32>
    %144 = vector.broadcast %129 : f32 to vector<64x64xf32>
    %145 = arith.addf %143, %144 : vector<64x64xf32>
    %146 = vector.broadcast %129 : f32 to vector<66x66xf32>
    %c1_47 = arith.constant 1 : index
    %c0_48 = arith.constant 0 : index
    %c0_49 = arith.constant 0 : index
    %147 = vector.load %arg4[%c1_47, %c0_48, %c0_49] : memref<8x66x66xf32, #tpu.memory_space<vmem>>, vector<1x66x66xf32>
    %148 = vector.shape_cast %147 : vector<1x66x66xf32> to vector<66x66xf32>
    %149 = vector.shape_cast %146 : vector<66x66xf32> to vector<1x66x66xf32>
    tpu.vector_store %arg4[%c1_47, %c0_48, %c0_49], %149 {strides = array<i32>} : memref<8x66x66xf32, #tpu.memory_space<vmem>>, vector<1x66x66xf32>,
    %c1_50 = arith.constant 1 : index
    %c1_51 = arith.constant 1 : index
    %c1_52 = arith.constant 1 : index
    %150 = vector.load %arg4[%c1_50, %c1_51, %c1_52] : memref<8x66x66xf32, #tpu.memory_space<vmem>>, vector<1x64x64xf32>
    %151 = vector.shape_cast %150 : vector<1x64x64xf32> to vector<64x64xf32>
    %152 = vector.shape_cast %145 : vector<64x64xf32> to vector<1x64x64xf32>
    tpu.vector_store %arg4[%c1_50, %c1_51, %c1_52], %152 {strides = array<i32>} : memref<8x66x66xf32, #tpu.memory_space<vmem>>, vector<1x64x64xf32>,
    %c6 = arith.constant 6 : index
    %153 = memref.load %arg2[%c6] : memref<120xf32, #tpu.memory_space<smem>>
    %c30 = arith.constant 30 : index
    %154 = memref.load %arg2[%c30] : memref<120xf32, #tpu.memory_space<smem>>
    %cst_53 = arith.constant 2.000000e+00 : f32
    %155 = arith.mulf %cst_53, %154 : f32
    %156 = arith.addf %153, %155 : f32
    %c54 = arith.constant 54 : index
    %157 = memref.load %arg2[%c54] : memref<120xf32, #tpu.memory_space<smem>>
    %cst_54 = arith.constant 2.000000e+00 : f32
    %158 = arith.mulf %cst_54, %157 : f32
    %159 = arith.addf %156, %158 : f32
    %c78 = arith.constant 78 : index
    %160 = memref.load %arg2[%c78] : memref<120xf32, #tpu.memory_space<smem>>
    %cst_55 = arith.constant 2.000000e+00 : f32
    %161 = arith.mulf %cst_55, %160 : f32
    %162 = arith.addf %159, %161 : f32
    %c102 = arith.constant 102 : index
    %163 = memref.load %arg2[%c102] : memref<120xf32, #tpu.memory_space<smem>>
    %cst_56 = arith.constant 2.000000e+00 : f32
    %164 = arith.mulf %cst_56, %163 : f32
    %165 = arith.addf %162, %164 : f32
    %c7 = arith.constant 7 : index
    %166 = memref.load %arg2[%c7] : memref<120xf32, #tpu.memory_space<smem>>
    %c31 = arith.constant 31 : index
    %167 = memref.load %arg2[%c31] : memref<120xf32, #tpu.memory_space<smem>>
    %cst_57 = arith.constant 2.000000e+00 : f32
    %168 = arith.mulf %cst_57, %167 : f32
    %169 = arith.addf %166, %168 : f32
    %c55 = arith.constant 55 : index
    %170 = memref.load %arg2[%c55] : memref<120xf32, #tpu.memory_space<smem>>
    %cst_58 = arith.constant 2.000000e+00 : f32
    %171 = arith.mulf %cst_58, %170 : f32
    %172 = arith.addf %169, %171 : f32
    %c79 = arith.constant 79 : index
    %173 = memref.load %arg2[%c79] : memref<120xf32, #tpu.memory_space<smem>>
    %cst_59 = arith.constant 2.000000e+00 : f32
    %174 = arith.mulf %cst_59, %173 : f32
    %175 = arith.addf %172, %174 : f32
    %c103 = arith.constant 103 : index
    %176 = memref.load %arg2[%c103] : memref<120xf32, #tpu.memory_space<smem>>
    %cst_60 = arith.constant 2.000000e+00 : f32
    %177 = arith.mulf %cst_60, %176 : f32
    %178 = arith.addf %175, %177 : f32
    %c8_61 = arith.constant 8 : index
    %179 = memref.load %arg2[%c8_61] : memref<120xf32, #tpu.memory_space<smem>>
    %c32_62 = arith.constant 32 : index
    %180 = memref.load %arg2[%c32_62] : memref<120xf32, #tpu.memory_space<smem>>
    %cst_63 = arith.constant 2.000000e+00 : f32
    %181 = arith.mulf %cst_63, %180 : f32
    %182 = arith.addf %179, %181 : f32
    %c56 = arith.constant 56 : index
    %183 = memref.load %arg2[%c56] : memref<120xf32, #tpu.memory_space<smem>>
    %cst_64 = arith.constant 2.000000e+00 : f32
    %184 = arith.mulf %cst_64, %183 : f32
    %185 = arith.addf %182, %184 : f32
    %c80 = arith.constant 80 : index
    %186 = memref.load %arg2[%c80] : memref<120xf32, #tpu.memory_space<smem>>
    %cst_65 = arith.constant 2.000000e+00 : f32
    %187 = arith.mulf %cst_65, %186 : f32
    %188 = arith.addf %185, %187 : f32
    %c104 = arith.constant 104 : index
    %189 = memref.load %arg2[%c104] : memref<120xf32, #tpu.memory_space<smem>>
    %cst_66 = arith.constant 2.000000e+00 : f32
    %190 = arith.mulf %cst_66, %189 : f32
    %191 = arith.addf %188, %190 : f32
    %c2_67 = arith.constant 2 : index
    %192 = memref.load %arg3[%c2_67] : memref<40xf32, #tpu.memory_space<smem>>
    %c10 = arith.constant 10 : index
    %193 = memref.load %arg3[%c10] : memref<40xf32, #tpu.memory_space<smem>>
    %cst_68 = arith.constant 2.000000e+00 : f32
    %194 = arith.mulf %cst_68, %193 : f32
    %195 = arith.addf %192, %194 : f32
    %c18 = arith.constant 18 : index
    %196 = memref.load %arg3[%c18] : memref<40xf32, #tpu.memory_space<smem>>
    %cst_69 = arith.constant 2.000000e+00 : f32
    %197 = arith.mulf %cst_69, %196 : f32
    %198 = arith.addf %195, %197 : f32
    %c26_70 = arith.constant 26 : index
    %199 = memref.load %arg3[%c26_70] : memref<40xf32, #tpu.memory_space<smem>>
    %cst_71 = arith.constant 2.000000e+00 : f32
    %200 = arith.mulf %cst_71, %199 : f32
    %201 = arith.addf %198, %200 : f32
    %c34 = arith.constant 34 : index
    %202 = memref.load %arg3[%c34] : memref<40xf32, #tpu.memory_space<smem>>
    %cst_72 = arith.constant 2.000000e+00 : f32
    %203 = arith.mulf %cst_72, %202 : f32
    %204 = arith.addf %201, %203 : f32
    %205 = vector.extract_strided_slice %2 {offsets = [0, 0, 0], sizes = [1, 64, 64], strides = [1, 1, 1]} : vector<3x64x64xf32> to vector<1x64x64xf32>
    %206 = vector.shape_cast %205 : vector<1x64x64xf32> to vector<64x64xf32>
    %207 = vector.broadcast %165 : f32 to vector<64x64xf32>
    %208 = arith.mulf %207, %206 : vector<64x64xf32>
    %209 = vector.extract_strided_slice %2 {offsets = [1, 0, 0], sizes = [1, 64, 64], strides = [1, 1, 1]} : vector<3x64x64xf32> to vector<1x64x64xf32>
    %210 = vector.shape_cast %209 : vector<1x64x64xf32> to vector<64x64xf32>
    %211 = vector.broadcast %178 : f32 to vector<64x64xf32>
    %212 = arith.mulf %211, %210 : vector<64x64xf32>
    %213 = arith.addf %208, %212 : vector<64x64xf32>
    %214 = vector.extract_strided_slice %2 {offsets = [2, 0, 0], sizes = [1, 64, 64], strides = [1, 1, 1]} : vector<3x64x64xf32> to vector<1x64x64xf32>
    %215 = vector.shape_cast %214 : vector<1x64x64xf32> to vector<64x64xf32>
    %216 = vector.broadcast %191 : f32 to vector<64x64xf32>
    %217 = arith.mulf %216, %215 : vector<64x64xf32>
    %218 = arith.addf %213, %217 : vector<64x64xf32>
    %219 = vector.broadcast %204 : f32 to vector<64x64xf32>
    %220 = arith.addf %218, %219 : vector<64x64xf32>
    %221 = vector.broadcast %204 : f32 to vector<66x66xf32>
    %c2_73 = arith.constant 2 : index
    %c0_74 = arith.constant 0 : index
    %c0_75 = arith.constant 0 : index
    %222 = vector.load %arg4[%c2_73, %c0_74, %c0_75] : memref<8x66x66xf32, #tpu.memory_space<vmem>>, vector<1x66x66xf32>
    %223 = vector.shape_cast %222 : vector<1x66x66xf32> to vector<66x66xf32>
    %224 = vector.shape_cast %221 : vector<66x66xf32> to vector<1x66x66xf32>
    tpu.vector_store %arg4[%c2_73, %c0_74, %c0_75], %224 {strides = array<i32>} : memref<8x66x66xf32, #tpu.memory_space<vmem>>, vector<1x66x66xf32>,
    %c2_76 = arith.constant 2 : index
    %c1_77 = arith.constant 1 : index
    %c1_78 = arith.constant 1 : index
    %225 = vector.load %arg4[%c2_76, %c1_77, %c1_78] : memref<8x66x66xf32, #tpu.memory_space<vmem>>, vector<1x64x64xf32>
    %226 = vector.shape_cast %225 : vector<1x64x64xf32> to vector<64x64xf32>
    %227 = vector.shape_cast %220 : vector<64x64xf32> to vector<1x64x64xf32>
    tpu.vector_store %arg4[%c2_76, %c1_77, %c1_78], %227 {strides = array<i32>} : memref<8x66x66xf32, #tpu.memory_space<vmem>>, vector<1x64x64xf32>,
    %c9_79 = arith.constant 9 : index
    %228 = memref.load %arg2[%c9_79] : memref<120xf32, #tpu.memory_space<smem>>
    %c33_80 = arith.constant 33 : index
    %229 = memref.load %arg2[%c33_80] : memref<120xf32, #tpu.memory_space<smem>>
    %cst_81 = arith.constant 2.000000e+00 : f32
    %230 = arith.mulf %cst_81, %229 : f32
    %231 = arith.addf %228, %230 : f32
    %c57 = arith.constant 57 : index
    %232 = memref.load %arg2[%c57] : memref<120xf32, #tpu.memory_space<smem>>
    %cst_82 = arith.constant 2.000000e+00 : f32
    %233 = arith.mulf %cst_82, %232 : f32
    %234 = arith.addf %231, %233 : f32
    %c81 = arith.constant 81 : index
    %235 = memref.load %arg2[%c81] : memref<120xf32, #tpu.memory_space<smem>>
    %cst_83 = arith.constant 2.000000e+00 : f32
    %236 = arith.mulf %cst_83, %235 : f32
    %237 = arith.addf %234, %236 : f32
    %c105 = arith.constant 105 : index
    %238 = memref.load %arg2[%c105] : memref<120xf32, #tpu.memory_space<smem>>
    %cst_84 = arith.constant 2.000000e+00 : f32
    %239 = arith.mulf %cst_84, %238 : f32
    %240 = arith.addf %237, %239 : f32
    %c10_85 = arith.constant 10 : index
    %241 = memref.load %arg2[%c10_85] : memref<120xf32, #tpu.memory_space<smem>>
    %c34_86 = arith.constant 34 : index
    %242 = memref.load %arg2[%c34_86] : memref<120xf32, #tpu.memory_space<smem>>
    %cst_87 = arith.constant 2.000000e+00 : f32
    %243 = arith.mulf %cst_87, %242 : f32
    %244 = arith.addf %241, %243 : f32
    %c58 = arith.constant 58 : index
    %245 = memref.load %arg2[%c58] : memref<120xf32, #tpu.memory_space<smem>>
    %cst_88 = arith.constant 2.000000e+00 : f32
    %246 = arith.mulf %cst_88, %245 : f32
    %247 = arith.addf %244, %246 : f32
    %c82 = arith.constant 82 : index
    %248 = memref.load %arg2[%c82] : memref<120xf32, #tpu.memory_space<smem>>
    %cst_89 = arith.constant 2.000000e+00 : f32
    %249 = arith.mulf %cst_89, %248 : f32
    %250 = arith.addf %247, %249 : f32
    %c106 = arith.constant 106 : index
    %251 = memref.load %arg2[%c106] : memref<120xf32, #tpu.memory_space<smem>>
    %cst_90 = arith.constant 2.000000e+00 : f32
    %252 = arith.mulf %cst_90, %251 : f32
    %253 = arith.addf %250, %252 : f32
    %c11 = arith.constant 11 : index
    %254 = memref.load %arg2[%c11] : memref<120xf32, #tpu.memory_space<smem>>
    %c35 = arith.constant 35 : index
    %255 = memref.load %arg2[%c35] : memref<120xf32, #tpu.memory_space<smem>>
    %cst_91 = arith.constant 2.000000e+00 : f32
    %256 = arith.mulf %cst_91, %255 : f32
    %257 = arith.addf %254, %256 : f32
    %c59 = arith.constant 59 : index
    %258 = memref.load %arg2[%c59] : memref<120xf32, #tpu.memory_space<smem>>
    %cst_92 = arith.constant 2.000000e+00 : f32
    %259 = arith.mulf %cst_92, %258 : f32
    %260 = arith.addf %257, %259 : f32
    %c83 = arith.constant 83 : index
    %261 = memref.load %arg2[%c83] : memref<120xf32, #tpu.memory_space<smem>>
    %cst_93 = arith.constant 2.000000e+00 : f32
    %262 = arith.mulf %cst_93, %261 : f32
    %263 = arith.addf %260, %262 : f32
    %c107 = arith.constant 107 : index
    %264 = memref.load %arg2[%c107] : memref<120xf32, #tpu.memory_space<smem>>
    %cst_94 = arith.constant 2.000000e+00 : f32
    %265 = arith.mulf %cst_94, %264 : f32
    %266 = arith.addf %263, %265 : f32
    %c3_95 = arith.constant 3 : index
    %267 = memref.load %arg3[%c3_95] : memref<40xf32, #tpu.memory_space<smem>>
    %c11_96 = arith.constant 11 : index
    %268 = memref.load %arg3[%c11_96] : memref<40xf32, #tpu.memory_space<smem>>
    %cst_97 = arith.constant 2.000000e+00 : f32
    %269 = arith.mulf %cst_97, %268 : f32
    %270 = arith.addf %267, %269 : f32
    %c19 = arith.constant 19 : index
    %271 = memref.load %arg3[%c19] : memref<40xf32, #tpu.memory_space<smem>>
    %cst_98 = arith.constant 2.000000e+00 : f32
    %272 = arith.mulf %cst_98, %271 : f32
    %273 = arith.addf %270, %272 : f32
    %c27_99 = arith.constant 27 : index
    %274 = memref.load %arg3[%c27_99] : memref<40xf32, #tpu.memory_space<smem>>
    %cst_100 = arith.constant 2.000000e+00 : f32
    %275 = arith.mulf %cst_100, %274 : f32
    %276 = arith.addf %273, %275 : f32
    %c35_101 = arith.constant 35 : index
    %277 = memref.load %arg3[%c35_101] : memref<40xf32, #tpu.memory_space<smem>>
    %cst_102 = arith.constant 2.000000e+00 : f32
    %278 = arith.mulf %cst_102, %277 : f32
    %279 = arith.addf %276, %278 : f32
    %280 = vector.extract_strided_slice %2 {offsets = [0, 0, 0], sizes = [1, 64, 64], strides = [1, 1, 1]} : vector<3x64x64xf32> to vector<1x64x64xf32>
    %281 = vector.shape_cast %280 : vector<1x64x64xf32> to vector<64x64xf32>
    %282 = vector.broadcast %240 : f32 to vector<64x64xf32>
    %283 = arith.mulf %282, %281 : vector<64x64xf32>
    %284 = vector.extract_strided_slice %2 {offsets = [1, 0, 0], sizes = [1, 64, 64], strides = [1, 1, 1]} : vector<3x64x64xf32> to vector<1x64x64xf32>
    %285 = vector.shape_cast %284 : vector<1x64x64xf32> to vector<64x64xf32>
    %286 = vector.broadcast %253 : f32 to vector<64x64xf32>
    %287 = arith.mulf %286, %285 : vector<64x64xf32>
    %288 = arith.addf %283, %287 : vector<64x64xf32>
    %289 = vector.extract_strided_slice %2 {offsets = [2, 0, 0], sizes = [1, 64, 64], strides = [1, 1, 1]} : vector<3x64x64xf32> to vector<1x64x64xf32>
    %290 = vector.shape_cast %289 : vector<1x64x64xf32> to vector<64x64xf32>
    %291 = vector.broadcast %266 : f32 to vector<64x64xf32>
    %292 = arith.mulf %291, %290 : vector<64x64xf32>
    %293 = arith.addf %288, %292 : vector<64x64xf32>
    %294 = vector.broadcast %279 : f32 to vector<64x64xf32>
    %295 = arith.addf %293, %294 : vector<64x64xf32>
    %296 = vector.broadcast %279 : f32 to vector<66x66xf32>
    %c3_103 = arith.constant 3 : index
    %c0_104 = arith.constant 0 : index
    %c0_105 = arith.constant 0 : index
    %297 = vector.load %arg4[%c3_103, %c0_104, %c0_105] : memref<8x66x66xf32, #tpu.memory_space<vmem>>, vector<1x66x66xf32>
    %298 = vector.shape_cast %297 : vector<1x66x66xf32> to vector<66x66xf32>
    %299 = vector.shape_cast %296 : vector<66x66xf32> to vector<1x66x66xf32>
    tpu.vector_store %arg4[%c3_103, %c0_104, %c0_105], %299 {strides = array<i32>} : memref<8x66x66xf32, #tpu.memory_space<vmem>>, vector<1x66x66xf32>,
    %c3_106 = arith.constant 3 : index
    %c1_107 = arith.constant 1 : index
    %c1_108 = arith.constant 1 : index
    %300 = vector.load %arg4[%c3_106, %c1_107, %c1_108] : memref<8x66x66xf32, #tpu.memory_space<vmem>>, vector<1x64x64xf32>
    %301 = vector.shape_cast %300 : vector<1x64x64xf32> to vector<64x64xf32>
    %302 = vector.shape_cast %295 : vector<64x64xf32> to vector<1x64x64xf32>
    tpu.vector_store %arg4[%c3_106, %c1_107, %c1_108], %302 {strides = array<i32>} : memref<8x66x66xf32, #tpu.memory_space<vmem>>, vector<1x64x64xf32>,
    %c12 = arith.constant 12 : index
    %303 = memref.load %arg2[%c12] : memref<120xf32, #tpu.memory_space<smem>>
    %c36 = arith.constant 36 : index
    %304 = memref.load %arg2[%c36] : memref<120xf32, #tpu.memory_space<smem>>
    %cst_109 = arith.constant 2.000000e+00 : f32
    %305 = arith.mulf %cst_109, %304 : f32
    %306 = arith.addf %303, %305 : f32
    %c60 = arith.constant 60 : index
    %307 = memref.load %arg2[%c60] : memref<120xf32, #tpu.memory_space<smem>>
    %cst_110 = arith.constant 2.000000e+00 : f32
    %308 = arith.mulf %cst_110, %307 : f32
    %309 = arith.addf %306, %308 : f32
    %c84 = arith.constant 84 : index
    %310 = memref.load %arg2[%c84] : memref<120xf32, #tpu.memory_space<smem>>
    %cst_111 = arith.constant 2.000000e+00 : f32
    %311 = arith.mulf %cst_111, %310 : f32
    %312 = arith.addf %309, %311 : f32
    %c108 = arith.constant 108 : index
    %313 = memref.load %arg2[%c108] : memref<120xf32, #tpu.memory_space<smem>>
    %cst_112 = arith.constant 2.000000e+00 : f32
    %314 = arith.mulf %cst_112, %313 : f32
    %315 = arith.addf %312, %314 : f32
    %c13 = arith.constant 13 : index
    %316 = memref.load %arg2[%c13] : memref<120xf32, #tpu.memory_space<smem>>
    %c37 = arith.constant 37 : index
    %317 = memref.load %arg2[%c37] : memref<120xf32, #tpu.memory_space<smem>>
    %cst_113 = arith.constant 2.000000e+00 : f32
    %318 = arith.mulf %cst_113, %317 : f32
    %319 = arith.addf %316, %318 : f32
    %c61 = arith.constant 61 : index
    %320 = memref.load %arg2[%c61] : memref<120xf32, #tpu.memory_space<smem>>
    %cst_114 = arith.constant 2.000000e+00 : f32
    %321 = arith.mulf %cst_114, %320 : f32
    %322 = arith.addf %319, %321 : f32
    %c85 = arith.constant 85 : index
    %323 = memref.load %arg2[%c85] : memref<120xf32, #tpu.memory_space<smem>>
    %cst_115 = arith.constant 2.000000e+00 : f32
    %324 = arith.mulf %cst_115, %323 : f32
    %325 = arith.addf %322, %324 : f32
    %c109 = arith.constant 109 : index
    %326 = memref.load %arg2[%c109] : memref<120xf32, #tpu.memory_space<smem>>
    %cst_116 = arith.constant 2.000000e+00 : f32
    %327 = arith.mulf %cst_116, %326 : f32
    %328 = arith.addf %325, %327 : f32
    %c14 = arith.constant 14 : index
    %329 = memref.load %arg2[%c14] : memref<120xf32, #tpu.memory_space<smem>>
    %c38 = arith.constant 38 : index
    %330 = memref.load %arg2[%c38] : memref<120xf32, #tpu.memory_space<smem>>
    %cst_117 = arith.constant 2.000000e+00 : f32
    %331 = arith.mulf %cst_117, %330 : f32
    %332 = arith.addf %329, %331 : f32
    %c62 = arith.constant 62 : index
    %333 = memref.load %arg2[%c62] : memref<120xf32, #tpu.memory_space<smem>>
    %cst_118 = arith.constant 2.000000e+00 : f32
    %334 = arith.mulf %cst_118, %333 : f32
    %335 = arith.addf %332, %334 : f32
    %c86 = arith.constant 86 : index
    %336 = memref.load %arg2[%c86] : memref<120xf32, #tpu.memory_space<smem>>
    %cst_119 = arith.constant 2.000000e+00 : f32
    %337 = arith.mulf %cst_119, %336 : f32
    %338 = arith.addf %335, %337 : f32
    %c110 = arith.constant 110 : index
    %339 = memref.load %arg2[%c110] : memref<120xf32, #tpu.memory_space<smem>>
    %cst_120 = arith.constant 2.000000e+00 : f32
    %340 = arith.mulf %cst_120, %339 : f32
    %341 = arith.addf %338, %340 : f32
    %c4_121 = arith.constant 4 : index
    %342 = memref.load %arg3[%c4_121] : memref<40xf32, #tpu.memory_space<smem>>
    %c12_122 = arith.constant 12 : index
    %343 = memref.load %arg3[%c12_122] : memref<40xf32, #tpu.memory_space<smem>>
    %cst_123 = arith.constant 2.000000e+00 : f32
    %344 = arith.mulf %cst_123, %343 : f32
    %345 = arith.addf %342, %344 : f32
    %c20 = arith.constant 20 : index
    %346 = memref.load %arg3[%c20] : memref<40xf32, #tpu.memory_space<smem>>
    %cst_124 = arith.constant 2.000000e+00 : f32
    %347 = arith.mulf %cst_124, %346 : f32
    %348 = arith.addf %345, %347 : f32
    %c28_125 = arith.constant 28 : index
    %349 = memref.load %arg3[%c28_125] : memref<40xf32, #tpu.memory_space<smem>>
    %cst_126 = arith.constant 2.000000e+00 : f32
    %350 = arith.mulf %cst_126, %349 : f32
    %351 = arith.addf %348, %350 : f32
    %c36_127 = arith.constant 36 : index
    %352 = memref.load %arg3[%c36_127] : memref<40xf32, #tpu.memory_space<smem>>
    %cst_128 = arith.constant 2.000000e+00 : f32
    %353 = arith.mulf %cst_128, %352 : f32
    %354 = arith.addf %351, %353 : f32
    %355 = vector.extract_strided_slice %2 {offsets = [0, 0, 0], sizes = [1, 64, 64], strides = [1, 1, 1]} : vector<3x64x64xf32> to vector<1x64x64xf32>
    %356 = vector.shape_cast %355 : vector<1x64x64xf32> to vector<64x64xf32>
    %357 = vector.broadcast %315 : f32 to vector<64x64xf32>
    %358 = arith.mulf %357, %356 : vector<64x64xf32>
    %359 = vector.extract_strided_slice %2 {offsets = [1, 0, 0], sizes = [1, 64, 64], strides = [1, 1, 1]} : vector<3x64x64xf32> to vector<1x64x64xf32>
    %360 = vector.shape_cast %359 : vector<1x64x64xf32> to vector<64x64xf32>
    %361 = vector.broadcast %328 : f32 to vector<64x64xf32>
    %362 = arith.mulf %361, %360 : vector<64x64xf32>
    %363 = arith.addf %358, %362 : vector<64x64xf32>
    %364 = vector.extract_strided_slice %2 {offsets = [2, 0, 0], sizes = [1, 64, 64], strides = [1, 1, 1]} : vector<3x64x64xf32> to vector<1x64x64xf32>
    %365 = vector.shape_cast %364 : vector<1x64x64xf32> to vector<64x64xf32>
    %366 = vector.broadcast %341 : f32 to vector<64x64xf32>
    %367 = arith.mulf %366, %365 : vector<64x64xf32>
    %368 = arith.addf %363, %367 : vector<64x64xf32>
    %369 = vector.broadcast %354 : f32 to vector<64x64xf32>
    %370 = arith.addf %368, %369 : vector<64x64xf32>
    %371 = vector.broadcast %354 : f32 to vector<66x66xf32>
    %c4_129 = arith.constant 4 : index
    %c0_130 = arith.constant 0 : index
    %c0_131 = arith.constant 0 : index
    %372 = vector.load %arg4[%c4_129, %c0_130, %c0_131] : memref<8x66x66xf32, #tpu.memory_space<vmem>>, vector<1x66x66xf32>
    %373 = vector.shape_cast %372 : vector<1x66x66xf32> to vector<66x66xf32>
    %374 = vector.shape_cast %371 : vector<66x66xf32> to vector<1x66x66xf32>
    tpu.vector_store %arg4[%c4_129, %c0_130, %c0_131], %374 {strides = array<i32>} : memref<8x66x66xf32, #tpu.memory_space<vmem>>, vector<1x66x66xf32>,
    %c4_132 = arith.constant 4 : index
    %c1_133 = arith.constant 1 : index
    %c1_134 = arith.constant 1 : index
    %375 = vector.load %arg4[%c4_132, %c1_133, %c1_134] : memref<8x66x66xf32, #tpu.memory_space<vmem>>, vector<1x64x64xf32>
    %376 = vector.shape_cast %375 : vector<1x64x64xf32> to vector<64x64xf32>
    %377 = vector.shape_cast %370 : vector<64x64xf32> to vector<1x64x64xf32>
    tpu.vector_store %arg4[%c4_132, %c1_133, %c1_134], %377 {strides = array<i32>} : memref<8x66x66xf32, #tpu.memory_space<vmem>>, vector<1x64x64xf32>,
    %c15 = arith.constant 15 : index
    %378 = memref.load %arg2[%c15] : memref<120xf32, #tpu.memory_space<smem>>
    %c39 = arith.constant 39 : index
    %379 = memref.load %arg2[%c39] : memref<120xf32, #tpu.memory_space<smem>>
    %cst_135 = arith.constant 2.000000e+00 : f32
    %380 = arith.mulf %cst_135, %379 : f32
    %381 = arith.addf %378, %380 : f32
    %c63 = arith.constant 63 : index
    %382 = memref.load %arg2[%c63] : memref<120xf32, #tpu.memory_space<smem>>
    %cst_136 = arith.constant 2.000000e+00 : f32
    %383 = arith.mulf %cst_136, %382 : f32
    %384 = arith.addf %381, %383 : f32
    %c87 = arith.constant 87 : index
    %385 = memref.load %arg2[%c87] : memref<120xf32, #tpu.memory_space<smem>>
    %cst_137 = arith.constant 2.000000e+00 : f32
    %386 = arith.mulf %cst_137, %385 : f32
    %387 = arith.addf %384, %386 : f32
    %c111 = arith.constant 111 : index
    %388 = memref.load %arg2[%c111] : memref<120xf32, #tpu.memory_space<smem>>
    %cst_138 = arith.constant 2.000000e+00 : f32
    %389 = arith.mulf %cst_138, %388 : f32
    %390 = arith.addf %387, %389 : f32
    %c16_139 = arith.constant 16 : index
    %391 = memref.load %arg2[%c16_139] : memref<120xf32, #tpu.memory_space<smem>>
    %c40 = arith.constant 40 : index
    %392 = memref.load %arg2[%c40] : memref<120xf32, #tpu.memory_space<smem>>
    %cst_140 = arith.constant 2.000000e+00 : f32
    %393 = arith.mulf %cst_140, %392 : f32
    %394 = arith.addf %391, %393 : f32
    %c64 = arith.constant 64 : index
    %395 = memref.load %arg2[%c64] : memref<120xf32, #tpu.memory_space<smem>>
    %cst_141 = arith.constant 2.000000e+00 : f32
    %396 = arith.mulf %cst_141, %395 : f32
    %397 = arith.addf %394, %396 : f32
    %c88 = arith.constant 88 : index
    %398 = memref.load %arg2[%c88] : memref<120xf32, #tpu.memory_space<smem>>
    %cst_142 = arith.constant 2.000000e+00 : f32
    %399 = arith.mulf %cst_142, %398 : f32
    %400 = arith.addf %397, %399 : f32
    %c112 = arith.constant 112 : index
    %401 = memref.load %arg2[%c112] : memref<120xf32, #tpu.memory_space<smem>>
    %cst_143 = arith.constant 2.000000e+00 : f32
    %402 = arith.mulf %cst_143, %401 : f32
    %403 = arith.addf %400, %402 : f32
    %c17_144 = arith.constant 17 : index
    %404 = memref.load %arg2[%c17_144] : memref<120xf32, #tpu.memory_space<smem>>
    %c41 = arith.constant 41 : index
    %405 = memref.load %arg2[%c41] : memref<120xf32, #tpu.memory_space<smem>>
    %cst_145 = arith.constant 2.000000e+00 : f32
    %406 = arith.mulf %cst_145, %405 : f32
    %407 = arith.addf %404, %406 : f32
    %c65 = arith.constant 65 : index
    %408 = memref.load %arg2[%c65] : memref<120xf32, #tpu.memory_space<smem>>
    %cst_146 = arith.constant 2.000000e+00 : f32
    %409 = arith.mulf %cst_146, %408 : f32
    %410 = arith.addf %407, %409 : f32
    %c89 = arith.constant 89 : index
    %411 = memref.load %arg2[%c89] : memref<120xf32, #tpu.memory_space<smem>>
    %cst_147 = arith.constant 2.000000e+00 : f32
    %412 = arith.mulf %cst_147, %411 : f32
    %413 = arith.addf %410, %412 : f32
    %c113 = arith.constant 113 : index
    %414 = memref.load %arg2[%c113] : memref<120xf32, #tpu.memory_space<smem>>
    %cst_148 = arith.constant 2.000000e+00 : f32
    %415 = arith.mulf %cst_148, %414 : f32
    %416 = arith.addf %413, %415 : f32
    %c5_149 = arith.constant 5 : index
    %417 = memref.load %arg3[%c5_149] : memref<40xf32, #tpu.memory_space<smem>>
    %c13_150 = arith.constant 13 : index
    %418 = memref.load %arg3[%c13_150] : memref<40xf32, #tpu.memory_space<smem>>
    %cst_151 = arith.constant 2.000000e+00 : f32
    %419 = arith.mulf %cst_151, %418 : f32
    %420 = arith.addf %417, %419 : f32
    %c21 = arith.constant 21 : index
    %421 = memref.load %arg3[%c21] : memref<40xf32, #tpu.memory_space<smem>>
    %cst_152 = arith.constant 2.000000e+00 : f32
    %422 = arith.mulf %cst_152, %421 : f32
    %423 = arith.addf %420, %422 : f32
    %c29_153 = arith.constant 29 : index
    %424 = memref.load %arg3[%c29_153] : memref<40xf32, #tpu.memory_space<smem>>
    %cst_154 = arith.constant 2.000000e+00 : f32
    %425 = arith.mulf %cst_154, %424 : f32
    %426 = arith.addf %423, %425 : f32
    %c37_155 = arith.constant 37 : index
    %427 = memref.load %arg3[%c37_155] : memref<40xf32, #tpu.memory_space<smem>>
    %cst_156 = arith.constant 2.000000e+00 : f32
    %428 = arith.mulf %cst_156, %427 : f32
    %429 = arith.addf %426, %428 : f32
    %430 = vector.extract_strided_slice %2 {offsets = [0, 0, 0], sizes = [1, 64, 64], strides = [1, 1, 1]} : vector<3x64x64xf32> to vector<1x64x64xf32>
    %431 = vector.shape_cast %430 : vector<1x64x64xf32> to vector<64x64xf32>
    %432 = vector.broadcast %390 : f32 to vector<64x64xf32>
    %433 = arith.mulf %432, %431 : vector<64x64xf32>
    %434 = vector.extract_strided_slice %2 {offsets = [1, 0, 0], sizes = [1, 64, 64], strides = [1, 1, 1]} : vector<3x64x64xf32> to vector<1x64x64xf32>
    %435 = vector.shape_cast %434 : vector<1x64x64xf32> to vector<64x64xf32>
    %436 = vector.broadcast %403 : f32 to vector<64x64xf32>
    %437 = arith.mulf %436, %435 : vector<64x64xf32>
    %438 = arith.addf %433, %437 : vector<64x64xf32>
    %439 = vector.extract_strided_slice %2 {offsets = [2, 0, 0], sizes = [1, 64, 64], strides = [1, 1, 1]} : vector<3x64x64xf32> to vector<1x64x64xf32>
    %440 = vector.shape_cast %439 : vector<1x64x64xf32> to vector<64x64xf32>
    %441 = vector.broadcast %416 : f32 to vector<64x64xf32>
    %442 = arith.mulf %441, %440 : vector<64x64xf32>
    %443 = arith.addf %438, %442 : vector<64x64xf32>
    %444 = vector.broadcast %429 : f32 to vector<64x64xf32>
    %445 = arith.addf %443, %444 : vector<64x64xf32>
    %446 = vector.broadcast %429 : f32 to vector<66x66xf32>
    %c5_157 = arith.constant 5 : index
    %c0_158 = arith.constant 0 : index
    %c0_159 = arith.constant 0 : index
    %447 = vector.load %arg4[%c5_157, %c0_158, %c0_159] : memref<8x66x66xf32, #tpu.memory_space<vmem>>, vector<1x66x66xf32>
    %448 = vector.shape_cast %447 : vector<1x66x66xf32> to vector<66x66xf32>
    %449 = vector.shape_cast %446 : vector<66x66xf32> to vector<1x66x66xf32>
    tpu.vector_store %arg4[%c5_157, %c0_158, %c0_159], %449 {strides = array<i32>} : memref<8x66x66xf32, #tpu.memory_space<vmem>>, vector<1x66x66xf32>,
    %c5_160 = arith.constant 5 : index
    %c1_161 = arith.constant 1 : index
    %c1_162 = arith.constant 1 : index
    %450 = vector.load %arg4[%c5_160, %c1_161, %c1_162] : memref<8x66x66xf32, #tpu.memory_space<vmem>>, vector<1x64x64xf32>
    %451 = vector.shape_cast %450 : vector<1x64x64xf32> to vector<64x64xf32>
    %452 = vector.shape_cast %445 : vector<64x64xf32> to vector<1x64x64xf32>
    tpu.vector_store %arg4[%c5_160, %c1_161, %c1_162], %452 {strides = array<i32>} : memref<8x66x66xf32, #tpu.memory_space<vmem>>, vector<1x64x64xf32>,
    %c18_163 = arith.constant 18 : index
    %453 = memref.load %arg2[%c18_163] : memref<120xf32, #tpu.memory_space<smem>>
    %c42 = arith.constant 42 : index
    %454 = memref.load %arg2[%c42] : memref<120xf32, #tpu.memory_space<smem>>
    %cst_164 = arith.constant 2.000000e+00 : f32
    %455 = arith.mulf %cst_164, %454 : f32
    %456 = arith.addf %453, %455 : f32
    %c66 = arith.constant 66 : index
    %457 = memref.load %arg2[%c66] : memref<120xf32, #tpu.memory_space<smem>>
    %cst_165 = arith.constant 2.000000e+00 : f32
    %458 = arith.mulf %cst_165, %457 : f32
    %459 = arith.addf %456, %458 : f32
    %c90 = arith.constant 90 : index
    %460 = memref.load %arg2[%c90] : memref<120xf32, #tpu.memory_space<smem>>
    %cst_166 = arith.constant 2.000000e+00 : f32
    %461 = arith.mulf %cst_166, %460 : f32
    %462 = arith.addf %459, %461 : f32
    %c114 = arith.constant 114 : index
    %463 = memref.load %arg2[%c114] : memref<120xf32, #tpu.memory_space<smem>>
    %cst_167 = arith.constant 2.000000e+00 : f32
    %464 = arith.mulf %cst_167, %463 : f32
    %465 = arith.addf %462, %464 : f32
    %c19_168 = arith.constant 19 : index
    %466 = memref.load %arg2[%c19_168] : memref<120xf32, #tpu.memory_space<smem>>
    %c43 = arith.constant 43 : index
    %467 = memref.load %arg2[%c43] : memref<120xf32, #tpu.memory_space<smem>>
    %cst_169 = arith.constant 2.000000e+00 : f32
    %468 = arith.mulf %cst_169, %467 : f32
    %469 = arith.addf %466, %468 : f32
    %c67 = arith.constant 67 : index
    %470 = memref.load %arg2[%c67] : memref<120xf32, #tpu.memory_space<smem>>
    %cst_170 = arith.constant 2.000000e+00 : f32
    %471 = arith.mulf %cst_170, %470 : f32
    %472 = arith.addf %469, %471 : f32
    %c91 = arith.constant 91 : index
    %473 = memref.load %arg2[%c91] : memref<120xf32, #tpu.memory_space<smem>>
    %cst_171 = arith.constant 2.000000e+00 : f32
    %474 = arith.mulf %cst_171, %473 : f32
    %475 = arith.addf %472, %474 : f32
    %c115 = arith.constant 115 : index
    %476 = memref.load %arg2[%c115] : memref<120xf32, #tpu.memory_space<smem>>
    %cst_172 = arith.constant 2.000000e+00 : f32
    %477 = arith.mulf %cst_172, %476 : f32
    %478 = arith.addf %475, %477 : f32
    %c20_173 = arith.constant 20 : index
    %479 = memref.load %arg2[%c20_173] : memref<120xf32, #tpu.memory_space<smem>>
    %c44 = arith.constant 44 : index
    %480 = memref.load %arg2[%c44] : memref<120xf32, #tpu.memory_space<smem>>
    %cst_174 = arith.constant 2.000000e+00 : f32
    %481 = arith.mulf %cst_174, %480 : f32
    %482 = arith.addf %479, %481 : f32
    %c68 = arith.constant 68 : index
    %483 = memref.load %arg2[%c68] : memref<120xf32, #tpu.memory_space<smem>>
    %cst_175 = arith.constant 2.000000e+00 : f32
    %484 = arith.mulf %cst_175, %483 : f32
    %485 = arith.addf %482, %484 : f32
    %c92 = arith.constant 92 : index
    %486 = memref.load %arg2[%c92] : memref<120xf32, #tpu.memory_space<smem>>
    %cst_176 = arith.constant 2.000000e+00 : f32
    %487 = arith.mulf %cst_176, %486 : f32
    %488 = arith.addf %485, %487 : f32
    %c116 = arith.constant 116 : index
    %489 = memref.load %arg2[%c116] : memref<120xf32, #tpu.memory_space<smem>>
    %cst_177 = arith.constant 2.000000e+00 : f32
    %490 = arith.mulf %cst_177, %489 : f32
    %491 = arith.addf %488, %490 : f32
    %c6_178 = arith.constant 6 : index
    %492 = memref.load %arg3[%c6_178] : memref<40xf32, #tpu.memory_space<smem>>
    %c14_179 = arith.constant 14 : index
    %493 = memref.load %arg3[%c14_179] : memref<40xf32, #tpu.memory_space<smem>>
    %cst_180 = arith.constant 2.000000e+00 : f32
    %494 = arith.mulf %cst_180, %493 : f32
    %495 = arith.addf %492, %494 : f32
    %c22 = arith.constant 22 : index
    %496 = memref.load %arg3[%c22] : memref<40xf32, #tpu.memory_space<smem>>
    %cst_181 = arith.constant 2.000000e+00 : f32
    %497 = arith.mulf %cst_181, %496 : f32
    %498 = arith.addf %495, %497 : f32
    %c30_182 = arith.constant 30 : index
    %499 = memref.load %arg3[%c30_182] : memref<40xf32, #tpu.memory_space<smem>>
    %cst_183 = arith.constant 2.000000e+00 : f32
    %500 = arith.mulf %cst_183, %499 : f32
    %501 = arith.addf %498, %500 : f32
    %c38_184 = arith.constant 38 : index
    %502 = memref.load %arg3[%c38_184] : memref<40xf32, #tpu.memory_space<smem>>
    %cst_185 = arith.constant 2.000000e+00 : f32
    %503 = arith.mulf %cst_185, %502 : f32
    %504 = arith.addf %501, %503 : f32
    %505 = vector.extract_strided_slice %2 {offsets = [0, 0, 0], sizes = [1, 64, 64], strides = [1, 1, 1]} : vector<3x64x64xf32> to vector<1x64x64xf32>
    %506 = vector.shape_cast %505 : vector<1x64x64xf32> to vector<64x64xf32>
    %507 = vector.broadcast %465 : f32 to vector<64x64xf32>
    %508 = arith.mulf %507, %506 : vector<64x64xf32>
    %509 = vector.extract_strided_slice %2 {offsets = [1, 0, 0], sizes = [1, 64, 64], strides = [1, 1, 1]} : vector<3x64x64xf32> to vector<1x64x64xf32>
    %510 = vector.shape_cast %509 : vector<1x64x64xf32> to vector<64x64xf32>
    %511 = vector.broadcast %478 : f32 to vector<64x64xf32>
    %512 = arith.mulf %511, %510 : vector<64x64xf32>
    %513 = arith.addf %508, %512 : vector<64x64xf32>
    %514 = vector.extract_strided_slice %2 {offsets = [2, 0, 0], sizes = [1, 64, 64], strides = [1, 1, 1]} : vector<3x64x64xf32> to vector<1x64x64xf32>
    %515 = vector.shape_cast %514 : vector<1x64x64xf32> to vector<64x64xf32>
    %516 = vector.broadcast %491 : f32 to vector<64x64xf32>
    %517 = arith.mulf %516, %515 : vector<64x64xf32>
    %518 = arith.addf %513, %517 : vector<64x64xf32>
    %519 = vector.broadcast %504 : f32 to vector<64x64xf32>
    %520 = arith.addf %518, %519 : vector<64x64xf32>
    %521 = vector.broadcast %504 : f32 to vector<66x66xf32>
    %c6_186 = arith.constant 6 : index
    %c0_187 = arith.constant 0 : index
    %c0_188 = arith.constant 0 : index
    %522 = vector.load %arg4[%c6_186, %c0_187, %c0_188] : memref<8x66x66xf32, #tpu.memory_space<vmem>>, vector<1x66x66xf32>
    %523 = vector.shape_cast %522 : vector<1x66x66xf32> to vector<66x66xf32>
    %524 = vector.shape_cast %521 : vector<66x66xf32> to vector<1x66x66xf32>
    tpu.vector_store %arg4[%c6_186, %c0_187, %c0_188], %524 {strides = array<i32>} : memref<8x66x66xf32, #tpu.memory_space<vmem>>, vector<1x66x66xf32>,
    %c6_189 = arith.constant 6 : index
    %c1_190 = arith.constant 1 : index
    %c1_191 = arith.constant 1 : index
    %525 = vector.load %arg4[%c6_189, %c1_190, %c1_191] : memref<8x66x66xf32, #tpu.memory_space<vmem>>, vector<1x64x64xf32>
    %526 = vector.shape_cast %525 : vector<1x64x64xf32> to vector<64x64xf32>
    %527 = vector.shape_cast %520 : vector<64x64xf32> to vector<1x64x64xf32>
    tpu.vector_store %arg4[%c6_189, %c1_190, %c1_191], %527 {strides = array<i32>} : memref<8x66x66xf32, #tpu.memory_space<vmem>>, vector<1x64x64xf32>,
    %c21_192 = arith.constant 21 : index
    %528 = memref.load %arg2[%c21_192] : memref<120xf32, #tpu.memory_space<smem>>
    %c45 = arith.constant 45 : index
    %529 = memref.load %arg2[%c45] : memref<120xf32, #tpu.memory_space<smem>>
    %cst_193 = arith.constant 2.000000e+00 : f32
    %530 = arith.mulf %cst_193, %529 : f32
    %531 = arith.addf %528, %530 : f32
    %c69 = arith.constant 69 : index
    %532 = memref.load %arg2[%c69] : memref<120xf32, #tpu.memory_space<smem>>
    %cst_194 = arith.constant 2.000000e+00 : f32
    %533 = arith.mulf %cst_194, %532 : f32
    %534 = arith.addf %531, %533 : f32
    %c93 = arith.constant 93 : index
    %535 = memref.load %arg2[%c93] : memref<120xf32, #tpu.memory_space<smem>>
    %cst_195 = arith.constant 2.000000e+00 : f32
    %536 = arith.mulf %cst_195, %535 : f32
    %537 = arith.addf %534, %536 : f32
    %c117 = arith.constant 117 : index
    %538 = memref.load %arg2[%c117] : memref<120xf32, #tpu.memory_space<smem>>
    %cst_196 = arith.constant 2.000000e+00 : f32
    %539 = arith.mulf %cst_196, %538 : f32
    %540 = arith.addf %537, %539 : f32
    %c22_197 = arith.constant 22 : index
    %541 = memref.load %arg2[%c22_197] : memref<120xf32, #tpu.memory_space<smem>>
    %c46 = arith.constant 46 : index
    %542 = memref.load %arg2[%c46] : memref<120xf32, #tpu.memory_space<smem>>
    %cst_198 = arith.constant 2.000000e+00 : f32
    %543 = arith.mulf %cst_198, %542 : f32
    %544 = arith.addf %541, %543 : f32
    %c70 = arith.constant 70 : index
    %545 = memref.load %arg2[%c70] : memref<120xf32, #tpu.memory_space<smem>>
    %cst_199 = arith.constant 2.000000e+00 : f32
    %546 = arith.mulf %cst_199, %545 : f32
    %547 = arith.addf %544, %546 : f32
    %c94 = arith.constant 94 : index
    %548 = memref.load %arg2[%c94] : memref<120xf32, #tpu.memory_space<smem>>
    %cst_200 = arith.constant 2.000000e+00 : f32
    %549 = arith.mulf %cst_200, %548 : f32
    %550 = arith.addf %547, %549 : f32
    %c118 = arith.constant 118 : index
    %551 = memref.load %arg2[%c118] : memref<120xf32, #tpu.memory_space<smem>>
    %cst_201 = arith.constant 2.000000e+00 : f32
    %552 = arith.mulf %cst_201, %551 : f32
    %553 = arith.addf %550, %552 : f32
    %c23 = arith.constant 23 : index
    %554 = memref.load %arg2[%c23] : memref<120xf32, #tpu.memory_space<smem>>
    %c47 = arith.constant 47 : index
    %555 = memref.load %arg2[%c47] : memref<120xf32, #tpu.memory_space<smem>>
    %cst_202 = arith.constant 2.000000e+00 : f32
    %556 = arith.mulf %cst_202, %555 : f32
    %557 = arith.addf %554, %556 : f32
    %c71 = arith.constant 71 : index
    %558 = memref.load %arg2[%c71] : memref<120xf32, #tpu.memory_space<smem>>
    %cst_203 = arith.constant 2.000000e+00 : f32
    %559 = arith.mulf %cst_203, %558 : f32
    %560 = arith.addf %557, %559 : f32
    %c95 = arith.constant 95 : index
    %561 = memref.load %arg2[%c95] : memref<120xf32, #tpu.memory_space<smem>>
    %cst_204 = arith.constant 2.000000e+00 : f32
    %562 = arith.mulf %cst_204, %561 : f32
    %563 = arith.addf %560, %562 : f32
    %c119 = arith.constant 119 : index
    %564 = memref.load %arg2[%c119] : memref<120xf32, #tpu.memory_space<smem>>
    %cst_205 = arith.constant 2.000000e+00 : f32
    %565 = arith.mulf %cst_205, %564 : f32
    %566 = arith.addf %563, %565 : f32
    %c7_206 = arith.constant 7 : index
    %567 = memref.load %arg3[%c7_206] : memref<40xf32, #tpu.memory_space<smem>>
    %c15_207 = arith.constant 15 : index
    %568 = memref.load %arg3[%c15_207] : memref<40xf32, #tpu.memory_space<smem>>
    %cst_208 = arith.constant 2.000000e+00 : f32
    %569 = arith.mulf %cst_208, %568 : f32
    %570 = arith.addf %567, %569 : f32
    %c23_209 = arith.constant 23 : index
    %571 = memref.load %arg3[%c23_209] : memref<40xf32, #tpu.memory_space<smem>>
    %cst_210 = arith.constant 2.000000e+00 : f32
    %572 = arith.mulf %cst_210, %571 : f32
    %573 = arith.addf %570, %572 : f32
    %c31_211 = arith.constant 31 : index
    %574 = memref.load %arg3[%c31_211] : memref<40xf32, #tpu.memory_space<smem>>
    %cst_212 = arith.constant 2.000000e+00 : f32
    %575 = arith.mulf %cst_212, %574 : f32
    %576 = arith.addf %573, %575 : f32
    %c39_213 = arith.constant 39 : index
    %577 = memref.load %arg3[%c39_213] : memref<40xf32, #tpu.memory_space<smem>>
    %cst_214 = arith.constant 2.000000e+00 : f32
    %578 = arith.mulf %cst_214, %577 : f32
    %579 = arith.addf %576, %578 : f32
    %580 = vector.extract_strided_slice %2 {offsets = [0, 0, 0], sizes = [1, 64, 64], strides = [1, 1, 1]} : vector<3x64x64xf32> to vector<1x64x64xf32>
    %581 = vector.shape_cast %580 : vector<1x64x64xf32> to vector<64x64xf32>
    %582 = vector.broadcast %540 : f32 to vector<64x64xf32>
    %583 = arith.mulf %582, %581 : vector<64x64xf32>
    %584 = vector.extract_strided_slice %2 {offsets = [1, 0, 0], sizes = [1, 64, 64], strides = [1, 1, 1]} : vector<3x64x64xf32> to vector<1x64x64xf32>
    %585 = vector.shape_cast %584 : vector<1x64x64xf32> to vector<64x64xf32>
    %586 = vector.broadcast %553 : f32 to vector<64x64xf32>
    %587 = arith.mulf %586, %585 : vector<64x64xf32>
    %588 = arith.addf %583, %587 : vector<64x64xf32>
    %589 = vector.extract_strided_slice %2 {offsets = [2, 0, 0], sizes = [1, 64, 64], strides = [1, 1, 1]} : vector<3x64x64xf32> to vector<1x64x64xf32>
    %590 = vector.shape_cast %589 : vector<1x64x64xf32> to vector<64x64xf32>
    %591 = vector.broadcast %566 : f32 to vector<64x64xf32>
    %592 = arith.mulf %591, %590 : vector<64x64xf32>
    %593 = arith.addf %588, %592 : vector<64x64xf32>
    %594 = vector.broadcast %579 : f32 to vector<64x64xf32>
    %595 = arith.addf %593, %594 : vector<64x64xf32>
    %596 = vector.broadcast %579 : f32 to vector<66x66xf32>
    %c7_215 = arith.constant 7 : index
    %c0_216 = arith.constant 0 : index
    %c0_217 = arith.constant 0 : index
    %597 = vector.load %arg4[%c7_215, %c0_216, %c0_217] : memref<8x66x66xf32, #tpu.memory_space<vmem>>, vector<1x66x66xf32>
    %598 = vector.shape_cast %597 : vector<1x66x66xf32> to vector<66x66xf32>
    %599 = vector.shape_cast %596 : vector<66x66xf32> to vector<1x66x66xf32>
    tpu.vector_store %arg4[%c7_215, %c0_216, %c0_217], %599 {strides = array<i32>} : memref<8x66x66xf32, #tpu.memory_space<vmem>>, vector<1x66x66xf32>,
    %c7_218 = arith.constant 7 : index
    %c1_219 = arith.constant 1 : index
    %c1_220 = arith.constant 1 : index
    %600 = vector.load %arg4[%c7_218, %c1_219, %c1_220] : memref<8x66x66xf32, #tpu.memory_space<vmem>>, vector<1x64x64xf32>
    %601 = vector.shape_cast %600 : vector<1x64x64xf32> to vector<64x64xf32>
    %602 = vector.shape_cast %595 : vector<64x64xf32> to vector<1x64x64xf32>
    tpu.vector_store %arg4[%c7_218, %c1_219, %c1_220], %602 {strides = array<i32>} : memref<8x66x66xf32, #tpu.memory_space<vmem>>, vector<1x64x64xf32>,
    return
  }
}

module attributes {stable_mosaic.version = 11 : i64} {
  func.func @_interior_conv_kernel(%arg0: memref<3x32x128xf32, #tpu.memory_space<vmem>>, %arg1: memref<3x32x128xf32, #tpu.memory_space<vmem>>, %arg2: memref<120xf32, #tpu.memory_space<smem>>, %arg3: memref<40xf32, #tpu.memory_space<smem>>, %arg4: memref<8x32x128xf32, #tpu.memory_space<vmem>>) attributes {dimension_semantics = [], scalar_prefetch = 0 : i64, scratch_operands = 0 : i64, tpu.core_type = #tpu.core_type<tc>} {
    %c0 = arith.constant 0 : index
    %c0_0 = arith.constant 0 : index
    %c0_1 = arith.constant 0 : index
    %0 = vector.load %arg0[%c0, %c0_0, %c0_1] : memref<3x32x128xf32, #tpu.memory_space<vmem>>, vector<3x32x128xf32>
    %c0_2 = arith.constant 0 : index
    %c0_3 = arith.constant 0 : index
    %c0_4 = arith.constant 0 : index
    %1 = vector.load %arg1[%c0_2, %c0_3, %c0_4] : memref<3x32x128xf32, #tpu.memory_space<vmem>>, vector<3x32x128xf32>
    %2 = arith.addf %0, %1 : vector<3x32x128xf32>
    %c0_5 = arith.constant 0 : index
    %3 = memref.load %arg2[%c0_5] : memref<120xf32, #tpu.memory_space<smem>>
    %c24 = arith.constant 24 : index
    %4 = memref.load %arg2[%c24] : memref<120xf32, #tpu.memory_space<smem>>
    %cst = arith.constant 2.000000e+00 : f32
    %5 = arith.mulf %cst, %4 : f32
    %6 = arith.addf %3, %5 : f32
    %c48 = arith.constant 48 : index
    %7 = memref.load %arg2[%c48] : memref<120xf32, #tpu.memory_space<smem>>
    %cst_6 = arith.constant 2.000000e+00 : f32
    %8 = arith.mulf %cst_6, %7 : f32
    %9 = arith.addf %6, %8 : f32
    %c72 = arith.constant 72 : index
    %10 = memref.load %arg2[%c72] : memref<120xf32, #tpu.memory_space<smem>>
    %cst_7 = arith.constant 2.000000e+00 : f32
    %11 = arith.mulf %cst_7, %10 : f32
    %12 = arith.addf %9, %11 : f32
    %c96 = arith.constant 96 : index
    %13 = memref.load %arg2[%c96] : memref<120xf32, #tpu.memory_space<smem>>
    %cst_8 = arith.constant 2.000000e+00 : f32
    %14 = arith.mulf %cst_8, %13 : f32
    %15 = arith.addf %12, %14 : f32
    %c1 = arith.constant 1 : index
    %16 = memref.load %arg2[%c1] : memref<120xf32, #tpu.memory_space<smem>>
    %c25 = arith.constant 25 : index
    %17 = memref.load %arg2[%c25] : memref<120xf32, #tpu.memory_space<smem>>
    %cst_9 = arith.constant 2.000000e+00 : f32
    %18 = arith.mulf %cst_9, %17 : f32
    %19 = arith.addf %16, %18 : f32
    %c49 = arith.constant 49 : index
    %20 = memref.load %arg2[%c49] : memref<120xf32, #tpu.memory_space<smem>>
    %cst_10 = arith.constant 2.000000e+00 : f32
    %21 = arith.mulf %cst_10, %20 : f32
    %22 = arith.addf %19, %21 : f32
    %c73 = arith.constant 73 : index
    %23 = memref.load %arg2[%c73] : memref<120xf32, #tpu.memory_space<smem>>
    %cst_11 = arith.constant 2.000000e+00 : f32
    %24 = arith.mulf %cst_11, %23 : f32
    %25 = arith.addf %22, %24 : f32
    %c97 = arith.constant 97 : index
    %26 = memref.load %arg2[%c97] : memref<120xf32, #tpu.memory_space<smem>>
    %cst_12 = arith.constant 2.000000e+00 : f32
    %27 = arith.mulf %cst_12, %26 : f32
    %28 = arith.addf %25, %27 : f32
    %c2 = arith.constant 2 : index
    %29 = memref.load %arg2[%c2] : memref<120xf32, #tpu.memory_space<smem>>
    %c26 = arith.constant 26 : index
    %30 = memref.load %arg2[%c26] : memref<120xf32, #tpu.memory_space<smem>>
    %cst_13 = arith.constant 2.000000e+00 : f32
    %31 = arith.mulf %cst_13, %30 : f32
    %32 = arith.addf %29, %31 : f32
    %c50 = arith.constant 50 : index
    %33 = memref.load %arg2[%c50] : memref<120xf32, #tpu.memory_space<smem>>
    %cst_14 = arith.constant 2.000000e+00 : f32
    %34 = arith.mulf %cst_14, %33 : f32
    %35 = arith.addf %32, %34 : f32
    %c74 = arith.constant 74 : index
    %36 = memref.load %arg2[%c74] : memref<120xf32, #tpu.memory_space<smem>>
    %cst_15 = arith.constant 2.000000e+00 : f32
    %37 = arith.mulf %cst_15, %36 : f32
    %38 = arith.addf %35, %37 : f32
    %c98 = arith.constant 98 : index
    %39 = memref.load %arg2[%c98] : memref<120xf32, #tpu.memory_space<smem>>
    %cst_16 = arith.constant 2.000000e+00 : f32
    %40 = arith.mulf %cst_16, %39 : f32
    %41 = arith.addf %38, %40 : f32
    %c0_17 = arith.constant 0 : index
    %42 = memref.load %arg3[%c0_17] : memref<40xf32, #tpu.memory_space<smem>>
    %c8 = arith.constant 8 : index
    %43 = memref.load %arg3[%c8] : memref<40xf32, #tpu.memory_space<smem>>
    %cst_18 = arith.constant 2.000000e+00 : f32
    %44 = arith.mulf %cst_18, %43 : f32
    %45 = arith.addf %42, %44 : f32
    %c16 = arith.constant 16 : index
    %46 = memref.load %arg3[%c16] : memref<40xf32, #tpu.memory_space<smem>>
    %cst_19 = arith.constant 2.000000e+00 : f32
    %47 = arith.mulf %cst_19, %46 : f32
    %48 = arith.addf %45, %47 : f32
    %c24_20 = arith.constant 24 : index
    %49 = memref.load %arg3[%c24_20] : memref<40xf32, #tpu.memory_space<smem>>
    %cst_21 = arith.constant 2.000000e+00 : f32
    %50 = arith.mulf %cst_21, %49 : f32
    %51 = arith.addf %48, %50 : f32
    %c32 = arith.constant 32 : index
    %52 = memref.load %arg3[%c32] : memref<40xf32, #tpu.memory_space<smem>>
    %cst_22 = arith.constant 2.000000e+00 : f32
    %53 = arith.mulf %cst_22, %52 : f32
    %54 = arith.addf %51, %53 : f32
    %55 = vector.extract_strided_slice %2 {offsets = [0, 0, 0], sizes = [1, 32, 128], strides = [1, 1, 1]} : vector<3x32x128xf32> to vector<1x32x128xf32>
    %56 = vector.shape_cast %55 : vector<1x32x128xf32> to vector<32x128xf32>
    %57 = vector.broadcast %15 : f32 to vector<32x128xf32>
    %58 = arith.mulf %57, %56 : vector<32x128xf32>
    %59 = vector.extract_strided_slice %2 {offsets = [1, 0, 0], sizes = [1, 32, 128], strides = [1, 1, 1]} : vector<3x32x128xf32> to vector<1x32x128xf32>
    %60 = vector.shape_cast %59 : vector<1x32x128xf32> to vector<32x128xf32>
    %61 = vector.broadcast %28 : f32 to vector<32x128xf32>
    %62 = arith.mulf %61, %60 : vector<32x128xf32>
    %63 = arith.addf %58, %62 : vector<32x128xf32>
    %64 = vector.extract_strided_slice %2 {offsets = [2, 0, 0], sizes = [1, 32, 128], strides = [1, 1, 1]} : vector<3x32x128xf32> to vector<1x32x128xf32>
    %65 = vector.shape_cast %64 : vector<1x32x128xf32> to vector<32x128xf32>
    %66 = vector.broadcast %41 : f32 to vector<32x128xf32>
    %67 = arith.mulf %66, %65 : vector<32x128xf32>
    %68 = arith.addf %63, %67 : vector<32x128xf32>
    %69 = vector.broadcast %54 : f32 to vector<32x128xf32>
    %70 = arith.addf %68, %69 : vector<32x128xf32>
    %c0_23 = arith.constant 0 : index
    %c0_24 = arith.constant 0 : index
    %c0_25 = arith.constant 0 : index
    %71 = vector.load %arg4[%c0_23, %c0_24, %c0_25] : memref<8x32x128xf32, #tpu.memory_space<vmem>>, vector<1x32x128xf32>
    %72 = vector.shape_cast %71 : vector<1x32x128xf32> to vector<32x128xf32>
    %73 = vector.shape_cast %70 : vector<32x128xf32> to vector<1x32x128xf32>
    tpu.vector_store %arg4[%c0_23, %c0_24, %c0_25], %73 {strides = array<i32>} : memref<8x32x128xf32, #tpu.memory_space<vmem>>, vector<1x32x128xf32>,
    %c3 = arith.constant 3 : index
    %74 = memref.load %arg2[%c3] : memref<120xf32, #tpu.memory_space<smem>>
    %c27 = arith.constant 27 : index
    %75 = memref.load %arg2[%c27] : memref<120xf32, #tpu.memory_space<smem>>
    %cst_26 = arith.constant 2.000000e+00 : f32
    %76 = arith.mulf %cst_26, %75 : f32
    %77 = arith.addf %74, %76 : f32
    %c51 = arith.constant 51 : index
    %78 = memref.load %arg2[%c51] : memref<120xf32, #tpu.memory_space<smem>>
    %cst_27 = arith.constant 2.000000e+00 : f32
    %79 = arith.mulf %cst_27, %78 : f32
    %80 = arith.addf %77, %79 : f32
    %c75 = arith.constant 75 : index
    %81 = memref.load %arg2[%c75] : memref<120xf32, #tpu.memory_space<smem>>
    %cst_28 = arith.constant 2.000000e+00 : f32
    %82 = arith.mulf %cst_28, %81 : f32
    %83 = arith.addf %80, %82 : f32
    %c99 = arith.constant 99 : index
    %84 = memref.load %arg2[%c99] : memref<120xf32, #tpu.memory_space<smem>>
    %cst_29 = arith.constant 2.000000e+00 : f32
    %85 = arith.mulf %cst_29, %84 : f32
    %86 = arith.addf %83, %85 : f32
    %c4 = arith.constant 4 : index
    %87 = memref.load %arg2[%c4] : memref<120xf32, #tpu.memory_space<smem>>
    %c28 = arith.constant 28 : index
    %88 = memref.load %arg2[%c28] : memref<120xf32, #tpu.memory_space<smem>>
    %cst_30 = arith.constant 2.000000e+00 : f32
    %89 = arith.mulf %cst_30, %88 : f32
    %90 = arith.addf %87, %89 : f32
    %c52 = arith.constant 52 : index
    %91 = memref.load %arg2[%c52] : memref<120xf32, #tpu.memory_space<smem>>
    %cst_31 = arith.constant 2.000000e+00 : f32
    %92 = arith.mulf %cst_31, %91 : f32
    %93 = arith.addf %90, %92 : f32
    %c76 = arith.constant 76 : index
    %94 = memref.load %arg2[%c76] : memref<120xf32, #tpu.memory_space<smem>>
    %cst_32 = arith.constant 2.000000e+00 : f32
    %95 = arith.mulf %cst_32, %94 : f32
    %96 = arith.addf %93, %95 : f32
    %c100 = arith.constant 100 : index
    %97 = memref.load %arg2[%c100] : memref<120xf32, #tpu.memory_space<smem>>
    %cst_33 = arith.constant 2.000000e+00 : f32
    %98 = arith.mulf %cst_33, %97 : f32
    %99 = arith.addf %96, %98 : f32
    %c5 = arith.constant 5 : index
    %100 = memref.load %arg2[%c5] : memref<120xf32, #tpu.memory_space<smem>>
    %c29 = arith.constant 29 : index
    %101 = memref.load %arg2[%c29] : memref<120xf32, #tpu.memory_space<smem>>
    %cst_34 = arith.constant 2.000000e+00 : f32
    %102 = arith.mulf %cst_34, %101 : f32
    %103 = arith.addf %100, %102 : f32
    %c53 = arith.constant 53 : index
    %104 = memref.load %arg2[%c53] : memref<120xf32, #tpu.memory_space<smem>>
    %cst_35 = arith.constant 2.000000e+00 : f32
    %105 = arith.mulf %cst_35, %104 : f32
    %106 = arith.addf %103, %105 : f32
    %c77 = arith.constant 77 : index
    %107 = memref.load %arg2[%c77] : memref<120xf32, #tpu.memory_space<smem>>
    %cst_36 = arith.constant 2.000000e+00 : f32
    %108 = arith.mulf %cst_36, %107 : f32
    %109 = arith.addf %106, %108 : f32
    %c101 = arith.constant 101 : index
    %110 = memref.load %arg2[%c101] : memref<120xf32, #tpu.memory_space<smem>>
    %cst_37 = arith.constant 2.000000e+00 : f32
    %111 = arith.mulf %cst_37, %110 : f32
    %112 = arith.addf %109, %111 : f32
    %c1_38 = arith.constant 1 : index
    %113 = memref.load %arg3[%c1_38] : memref<40xf32, #tpu.memory_space<smem>>
    %c9 = arith.constant 9 : index
    %114 = memref.load %arg3[%c9] : memref<40xf32, #tpu.memory_space<smem>>
    %cst_39 = arith.constant 2.000000e+00 : f32
    %115 = arith.mulf %cst_39, %114 : f32
    %116 = arith.addf %113, %115 : f32
    %c17 = arith.constant 17 : index
    %117 = memref.load %arg3[%c17] : memref<40xf32, #tpu.memory_space<smem>>
    %cst_40 = arith.constant 2.000000e+00 : f32
    %118 = arith.mulf %cst_40, %117 : f32
    %119 = arith.addf %116, %118 : f32
    %c25_41 = arith.constant 25 : index
    %120 = memref.load %arg3[%c25_41] : memref<40xf32, #tpu.memory_space<smem>>
    %cst_42 = arith.constant 2.000000e+00 : f32
    %121 = arith.mulf %cst_42, %120 : f32
    %122 = arith.addf %119, %121 : f32
    %c33 = arith.constant 33 : index
    %123 = memref.load %arg3[%c33] : memref<40xf32, #tpu.memory_space<smem>>
    %cst_43 = arith.constant 2.000000e+00 : f32
    %124 = arith.mulf %cst_43, %123 : f32
    %125 = arith.addf %122, %124 : f32
    %126 = vector.extract_strided_slice %2 {offsets = [0, 0, 0], sizes = [1, 32, 128], strides = [1, 1, 1]} : vector<3x32x128xf32> to vector<1x32x128xf32>
    %127 = vector.shape_cast %126 : vector<1x32x128xf32> to vector<32x128xf32>
    %128 = vector.broadcast %86 : f32 to vector<32x128xf32>
    %129 = arith.mulf %128, %127 : vector<32x128xf32>
    %130 = vector.extract_strided_slice %2 {offsets = [1, 0, 0], sizes = [1, 32, 128], strides = [1, 1, 1]} : vector<3x32x128xf32> to vector<1x32x128xf32>
    %131 = vector.shape_cast %130 : vector<1x32x128xf32> to vector<32x128xf32>
    %132 = vector.broadcast %99 : f32 to vector<32x128xf32>
    %133 = arith.mulf %132, %131 : vector<32x128xf32>
    %134 = arith.addf %129, %133 : vector<32x128xf32>
    %135 = vector.extract_strided_slice %2 {offsets = [2, 0, 0], sizes = [1, 32, 128], strides = [1, 1, 1]} : vector<3x32x128xf32> to vector<1x32x128xf32>
    %136 = vector.shape_cast %135 : vector<1x32x128xf32> to vector<32x128xf32>
    %137 = vector.broadcast %112 : f32 to vector<32x128xf32>
    %138 = arith.mulf %137, %136 : vector<32x128xf32>
    %139 = arith.addf %134, %138 : vector<32x128xf32>
    %140 = vector.broadcast %125 : f32 to vector<32x128xf32>
    %141 = arith.addf %139, %140 : vector<32x128xf32>
    %c1_44 = arith.constant 1 : index
    %c0_45 = arith.constant 0 : index
    %c0_46 = arith.constant 0 : index
    %142 = vector.load %arg4[%c1_44, %c0_45, %c0_46] : memref<8x32x128xf32, #tpu.memory_space<vmem>>, vector<1x32x128xf32>
    %143 = vector.shape_cast %142 : vector<1x32x128xf32> to vector<32x128xf32>
    %144 = vector.shape_cast %141 : vector<32x128xf32> to vector<1x32x128xf32>
    tpu.vector_store %arg4[%c1_44, %c0_45, %c0_46], %144 {strides = array<i32>} : memref<8x32x128xf32, #tpu.memory_space<vmem>>, vector<1x32x128xf32>,
    %c6 = arith.constant 6 : index
    %145 = memref.load %arg2[%c6] : memref<120xf32, #tpu.memory_space<smem>>
    %c30 = arith.constant 30 : index
    %146 = memref.load %arg2[%c30] : memref<120xf32, #tpu.memory_space<smem>>
    %cst_47 = arith.constant 2.000000e+00 : f32
    %147 = arith.mulf %cst_47, %146 : f32
    %148 = arith.addf %145, %147 : f32
    %c54 = arith.constant 54 : index
    %149 = memref.load %arg2[%c54] : memref<120xf32, #tpu.memory_space<smem>>
    %cst_48 = arith.constant 2.000000e+00 : f32
    %150 = arith.mulf %cst_48, %149 : f32
    %151 = arith.addf %148, %150 : f32
    %c78 = arith.constant 78 : index
    %152 = memref.load %arg2[%c78] : memref<120xf32, #tpu.memory_space<smem>>
    %cst_49 = arith.constant 2.000000e+00 : f32
    %153 = arith.mulf %cst_49, %152 : f32
    %154 = arith.addf %151, %153 : f32
    %c102 = arith.constant 102 : index
    %155 = memref.load %arg2[%c102] : memref<120xf32, #tpu.memory_space<smem>>
    %cst_50 = arith.constant 2.000000e+00 : f32
    %156 = arith.mulf %cst_50, %155 : f32
    %157 = arith.addf %154, %156 : f32
    %c7 = arith.constant 7 : index
    %158 = memref.load %arg2[%c7] : memref<120xf32, #tpu.memory_space<smem>>
    %c31 = arith.constant 31 : index
    %159 = memref.load %arg2[%c31] : memref<120xf32, #tpu.memory_space<smem>>
    %cst_51 = arith.constant 2.000000e+00 : f32
    %160 = arith.mulf %cst_51, %159 : f32
    %161 = arith.addf %158, %160 : f32
    %c55 = arith.constant 55 : index
    %162 = memref.load %arg2[%c55] : memref<120xf32, #tpu.memory_space<smem>>
    %cst_52 = arith.constant 2.000000e+00 : f32
    %163 = arith.mulf %cst_52, %162 : f32
    %164 = arith.addf %161, %163 : f32
    %c79 = arith.constant 79 : index
    %165 = memref.load %arg2[%c79] : memref<120xf32, #tpu.memory_space<smem>>
    %cst_53 = arith.constant 2.000000e+00 : f32
    %166 = arith.mulf %cst_53, %165 : f32
    %167 = arith.addf %164, %166 : f32
    %c103 = arith.constant 103 : index
    %168 = memref.load %arg2[%c103] : memref<120xf32, #tpu.memory_space<smem>>
    %cst_54 = arith.constant 2.000000e+00 : f32
    %169 = arith.mulf %cst_54, %168 : f32
    %170 = arith.addf %167, %169 : f32
    %c8_55 = arith.constant 8 : index
    %171 = memref.load %arg2[%c8_55] : memref<120xf32, #tpu.memory_space<smem>>
    %c32_56 = arith.constant 32 : index
    %172 = memref.load %arg2[%c32_56] : memref<120xf32, #tpu.memory_space<smem>>
    %cst_57 = arith.constant 2.000000e+00 : f32
    %173 = arith.mulf %cst_57, %172 : f32
    %174 = arith.addf %171, %173 : f32
    %c56 = arith.constant 56 : index
    %175 = memref.load %arg2[%c56] : memref<120xf32, #tpu.memory_space<smem>>
    %cst_58 = arith.constant 2.000000e+00 : f32
    %176 = arith.mulf %cst_58, %175 : f32
    %177 = arith.addf %174, %176 : f32
    %c80 = arith.constant 80 : index
    %178 = memref.load %arg2[%c80] : memref<120xf32, #tpu.memory_space<smem>>
    %cst_59 = arith.constant 2.000000e+00 : f32
    %179 = arith.mulf %cst_59, %178 : f32
    %180 = arith.addf %177, %179 : f32
    %c104 = arith.constant 104 : index
    %181 = memref.load %arg2[%c104] : memref<120xf32, #tpu.memory_space<smem>>
    %cst_60 = arith.constant 2.000000e+00 : f32
    %182 = arith.mulf %cst_60, %181 : f32
    %183 = arith.addf %180, %182 : f32
    %c2_61 = arith.constant 2 : index
    %184 = memref.load %arg3[%c2_61] : memref<40xf32, #tpu.memory_space<smem>>
    %c10 = arith.constant 10 : index
    %185 = memref.load %arg3[%c10] : memref<40xf32, #tpu.memory_space<smem>>
    %cst_62 = arith.constant 2.000000e+00 : f32
    %186 = arith.mulf %cst_62, %185 : f32
    %187 = arith.addf %184, %186 : f32
    %c18 = arith.constant 18 : index
    %188 = memref.load %arg3[%c18] : memref<40xf32, #tpu.memory_space<smem>>
    %cst_63 = arith.constant 2.000000e+00 : f32
    %189 = arith.mulf %cst_63, %188 : f32
    %190 = arith.addf %187, %189 : f32
    %c26_64 = arith.constant 26 : index
    %191 = memref.load %arg3[%c26_64] : memref<40xf32, #tpu.memory_space<smem>>
    %cst_65 = arith.constant 2.000000e+00 : f32
    %192 = arith.mulf %cst_65, %191 : f32
    %193 = arith.addf %190, %192 : f32
    %c34 = arith.constant 34 : index
    %194 = memref.load %arg3[%c34] : memref<40xf32, #tpu.memory_space<smem>>
    %cst_66 = arith.constant 2.000000e+00 : f32
    %195 = arith.mulf %cst_66, %194 : f32
    %196 = arith.addf %193, %195 : f32
    %197 = vector.extract_strided_slice %2 {offsets = [0, 0, 0], sizes = [1, 32, 128], strides = [1, 1, 1]} : vector<3x32x128xf32> to vector<1x32x128xf32>
    %198 = vector.shape_cast %197 : vector<1x32x128xf32> to vector<32x128xf32>
    %199 = vector.broadcast %157 : f32 to vector<32x128xf32>
    %200 = arith.mulf %199, %198 : vector<32x128xf32>
    %201 = vector.extract_strided_slice %2 {offsets = [1, 0, 0], sizes = [1, 32, 128], strides = [1, 1, 1]} : vector<3x32x128xf32> to vector<1x32x128xf32>
    %202 = vector.shape_cast %201 : vector<1x32x128xf32> to vector<32x128xf32>
    %203 = vector.broadcast %170 : f32 to vector<32x128xf32>
    %204 = arith.mulf %203, %202 : vector<32x128xf32>
    %205 = arith.addf %200, %204 : vector<32x128xf32>
    %206 = vector.extract_strided_slice %2 {offsets = [2, 0, 0], sizes = [1, 32, 128], strides = [1, 1, 1]} : vector<3x32x128xf32> to vector<1x32x128xf32>
    %207 = vector.shape_cast %206 : vector<1x32x128xf32> to vector<32x128xf32>
    %208 = vector.broadcast %183 : f32 to vector<32x128xf32>
    %209 = arith.mulf %208, %207 : vector<32x128xf32>
    %210 = arith.addf %205, %209 : vector<32x128xf32>
    %211 = vector.broadcast %196 : f32 to vector<32x128xf32>
    %212 = arith.addf %210, %211 : vector<32x128xf32>
    %c2_67 = arith.constant 2 : index
    %c0_68 = arith.constant 0 : index
    %c0_69 = arith.constant 0 : index
    %213 = vector.load %arg4[%c2_67, %c0_68, %c0_69] : memref<8x32x128xf32, #tpu.memory_space<vmem>>, vector<1x32x128xf32>
    %214 = vector.shape_cast %213 : vector<1x32x128xf32> to vector<32x128xf32>
    %215 = vector.shape_cast %212 : vector<32x128xf32> to vector<1x32x128xf32>
    tpu.vector_store %arg4[%c2_67, %c0_68, %c0_69], %215 {strides = array<i32>} : memref<8x32x128xf32, #tpu.memory_space<vmem>>, vector<1x32x128xf32>,
    %c9_70 = arith.constant 9 : index
    %216 = memref.load %arg2[%c9_70] : memref<120xf32, #tpu.memory_space<smem>>
    %c33_71 = arith.constant 33 : index
    %217 = memref.load %arg2[%c33_71] : memref<120xf32, #tpu.memory_space<smem>>
    %cst_72 = arith.constant 2.000000e+00 : f32
    %218 = arith.mulf %cst_72, %217 : f32
    %219 = arith.addf %216, %218 : f32
    %c57 = arith.constant 57 : index
    %220 = memref.load %arg2[%c57] : memref<120xf32, #tpu.memory_space<smem>>
    %cst_73 = arith.constant 2.000000e+00 : f32
    %221 = arith.mulf %cst_73, %220 : f32
    %222 = arith.addf %219, %221 : f32
    %c81 = arith.constant 81 : index
    %223 = memref.load %arg2[%c81] : memref<120xf32, #tpu.memory_space<smem>>
    %cst_74 = arith.constant 2.000000e+00 : f32
    %224 = arith.mulf %cst_74, %223 : f32
    %225 = arith.addf %222, %224 : f32
    %c105 = arith.constant 105 : index
    %226 = memref.load %arg2[%c105] : memref<120xf32, #tpu.memory_space<smem>>
    %cst_75 = arith.constant 2.000000e+00 : f32
    %227 = arith.mulf %cst_75, %226 : f32
    %228 = arith.addf %225, %227 : f32
    %c10_76 = arith.constant 10 : index
    %229 = memref.load %arg2[%c10_76] : memref<120xf32, #tpu.memory_space<smem>>
    %c34_77 = arith.constant 34 : index
    %230 = memref.load %arg2[%c34_77] : memref<120xf32, #tpu.memory_space<smem>>
    %cst_78 = arith.constant 2.000000e+00 : f32
    %231 = arith.mulf %cst_78, %230 : f32
    %232 = arith.addf %229, %231 : f32
    %c58 = arith.constant 58 : index
    %233 = memref.load %arg2[%c58] : memref<120xf32, #tpu.memory_space<smem>>
    %cst_79 = arith.constant 2.000000e+00 : f32
    %234 = arith.mulf %cst_79, %233 : f32
    %235 = arith.addf %232, %234 : f32
    %c82 = arith.constant 82 : index
    %236 = memref.load %arg2[%c82] : memref<120xf32, #tpu.memory_space<smem>>
    %cst_80 = arith.constant 2.000000e+00 : f32
    %237 = arith.mulf %cst_80, %236 : f32
    %238 = arith.addf %235, %237 : f32
    %c106 = arith.constant 106 : index
    %239 = memref.load %arg2[%c106] : memref<120xf32, #tpu.memory_space<smem>>
    %cst_81 = arith.constant 2.000000e+00 : f32
    %240 = arith.mulf %cst_81, %239 : f32
    %241 = arith.addf %238, %240 : f32
    %c11 = arith.constant 11 : index
    %242 = memref.load %arg2[%c11] : memref<120xf32, #tpu.memory_space<smem>>
    %c35 = arith.constant 35 : index
    %243 = memref.load %arg2[%c35] : memref<120xf32, #tpu.memory_space<smem>>
    %cst_82 = arith.constant 2.000000e+00 : f32
    %244 = arith.mulf %cst_82, %243 : f32
    %245 = arith.addf %242, %244 : f32
    %c59 = arith.constant 59 : index
    %246 = memref.load %arg2[%c59] : memref<120xf32, #tpu.memory_space<smem>>
    %cst_83 = arith.constant 2.000000e+00 : f32
    %247 = arith.mulf %cst_83, %246 : f32
    %248 = arith.addf %245, %247 : f32
    %c83 = arith.constant 83 : index
    %249 = memref.load %arg2[%c83] : memref<120xf32, #tpu.memory_space<smem>>
    %cst_84 = arith.constant 2.000000e+00 : f32
    %250 = arith.mulf %cst_84, %249 : f32
    %251 = arith.addf %248, %250 : f32
    %c107 = arith.constant 107 : index
    %252 = memref.load %arg2[%c107] : memref<120xf32, #tpu.memory_space<smem>>
    %cst_85 = arith.constant 2.000000e+00 : f32
    %253 = arith.mulf %cst_85, %252 : f32
    %254 = arith.addf %251, %253 : f32
    %c3_86 = arith.constant 3 : index
    %255 = memref.load %arg3[%c3_86] : memref<40xf32, #tpu.memory_space<smem>>
    %c11_87 = arith.constant 11 : index
    %256 = memref.load %arg3[%c11_87] : memref<40xf32, #tpu.memory_space<smem>>
    %cst_88 = arith.constant 2.000000e+00 : f32
    %257 = arith.mulf %cst_88, %256 : f32
    %258 = arith.addf %255, %257 : f32
    %c19 = arith.constant 19 : index
    %259 = memref.load %arg3[%c19] : memref<40xf32, #tpu.memory_space<smem>>
    %cst_89 = arith.constant 2.000000e+00 : f32
    %260 = arith.mulf %cst_89, %259 : f32
    %261 = arith.addf %258, %260 : f32
    %c27_90 = arith.constant 27 : index
    %262 = memref.load %arg3[%c27_90] : memref<40xf32, #tpu.memory_space<smem>>
    %cst_91 = arith.constant 2.000000e+00 : f32
    %263 = arith.mulf %cst_91, %262 : f32
    %264 = arith.addf %261, %263 : f32
    %c35_92 = arith.constant 35 : index
    %265 = memref.load %arg3[%c35_92] : memref<40xf32, #tpu.memory_space<smem>>
    %cst_93 = arith.constant 2.000000e+00 : f32
    %266 = arith.mulf %cst_93, %265 : f32
    %267 = arith.addf %264, %266 : f32
    %268 = vector.extract_strided_slice %2 {offsets = [0, 0, 0], sizes = [1, 32, 128], strides = [1, 1, 1]} : vector<3x32x128xf32> to vector<1x32x128xf32>
    %269 = vector.shape_cast %268 : vector<1x32x128xf32> to vector<32x128xf32>
    %270 = vector.broadcast %228 : f32 to vector<32x128xf32>
    %271 = arith.mulf %270, %269 : vector<32x128xf32>
    %272 = vector.extract_strided_slice %2 {offsets = [1, 0, 0], sizes = [1, 32, 128], strides = [1, 1, 1]} : vector<3x32x128xf32> to vector<1x32x128xf32>
    %273 = vector.shape_cast %272 : vector<1x32x128xf32> to vector<32x128xf32>
    %274 = vector.broadcast %241 : f32 to vector<32x128xf32>
    %275 = arith.mulf %274, %273 : vector<32x128xf32>
    %276 = arith.addf %271, %275 : vector<32x128xf32>
    %277 = vector.extract_strided_slice %2 {offsets = [2, 0, 0], sizes = [1, 32, 128], strides = [1, 1, 1]} : vector<3x32x128xf32> to vector<1x32x128xf32>
    %278 = vector.shape_cast %277 : vector<1x32x128xf32> to vector<32x128xf32>
    %279 = vector.broadcast %254 : f32 to vector<32x128xf32>
    %280 = arith.mulf %279, %278 : vector<32x128xf32>
    %281 = arith.addf %276, %280 : vector<32x128xf32>
    %282 = vector.broadcast %267 : f32 to vector<32x128xf32>
    %283 = arith.addf %281, %282 : vector<32x128xf32>
    %c3_94 = arith.constant 3 : index
    %c0_95 = arith.constant 0 : index
    %c0_96 = arith.constant 0 : index
    %284 = vector.load %arg4[%c3_94, %c0_95, %c0_96] : memref<8x32x128xf32, #tpu.memory_space<vmem>>, vector<1x32x128xf32>
    %285 = vector.shape_cast %284 : vector<1x32x128xf32> to vector<32x128xf32>
    %286 = vector.shape_cast %283 : vector<32x128xf32> to vector<1x32x128xf32>
    tpu.vector_store %arg4[%c3_94, %c0_95, %c0_96], %286 {strides = array<i32>} : memref<8x32x128xf32, #tpu.memory_space<vmem>>, vector<1x32x128xf32>,
    %c12 = arith.constant 12 : index
    %287 = memref.load %arg2[%c12] : memref<120xf32, #tpu.memory_space<smem>>
    %c36 = arith.constant 36 : index
    %288 = memref.load %arg2[%c36] : memref<120xf32, #tpu.memory_space<smem>>
    %cst_97 = arith.constant 2.000000e+00 : f32
    %289 = arith.mulf %cst_97, %288 : f32
    %290 = arith.addf %287, %289 : f32
    %c60 = arith.constant 60 : index
    %291 = memref.load %arg2[%c60] : memref<120xf32, #tpu.memory_space<smem>>
    %cst_98 = arith.constant 2.000000e+00 : f32
    %292 = arith.mulf %cst_98, %291 : f32
    %293 = arith.addf %290, %292 : f32
    %c84 = arith.constant 84 : index
    %294 = memref.load %arg2[%c84] : memref<120xf32, #tpu.memory_space<smem>>
    %cst_99 = arith.constant 2.000000e+00 : f32
    %295 = arith.mulf %cst_99, %294 : f32
    %296 = arith.addf %293, %295 : f32
    %c108 = arith.constant 108 : index
    %297 = memref.load %arg2[%c108] : memref<120xf32, #tpu.memory_space<smem>>
    %cst_100 = arith.constant 2.000000e+00 : f32
    %298 = arith.mulf %cst_100, %297 : f32
    %299 = arith.addf %296, %298 : f32
    %c13 = arith.constant 13 : index
    %300 = memref.load %arg2[%c13] : memref<120xf32, #tpu.memory_space<smem>>
    %c37 = arith.constant 37 : index
    %301 = memref.load %arg2[%c37] : memref<120xf32, #tpu.memory_space<smem>>
    %cst_101 = arith.constant 2.000000e+00 : f32
    %302 = arith.mulf %cst_101, %301 : f32
    %303 = arith.addf %300, %302 : f32
    %c61 = arith.constant 61 : index
    %304 = memref.load %arg2[%c61] : memref<120xf32, #tpu.memory_space<smem>>
    %cst_102 = arith.constant 2.000000e+00 : f32
    %305 = arith.mulf %cst_102, %304 : f32
    %306 = arith.addf %303, %305 : f32
    %c85 = arith.constant 85 : index
    %307 = memref.load %arg2[%c85] : memref<120xf32, #tpu.memory_space<smem>>
    %cst_103 = arith.constant 2.000000e+00 : f32
    %308 = arith.mulf %cst_103, %307 : f32
    %309 = arith.addf %306, %308 : f32
    %c109 = arith.constant 109 : index
    %310 = memref.load %arg2[%c109] : memref<120xf32, #tpu.memory_space<smem>>
    %cst_104 = arith.constant 2.000000e+00 : f32
    %311 = arith.mulf %cst_104, %310 : f32
    %312 = arith.addf %309, %311 : f32
    %c14 = arith.constant 14 : index
    %313 = memref.load %arg2[%c14] : memref<120xf32, #tpu.memory_space<smem>>
    %c38 = arith.constant 38 : index
    %314 = memref.load %arg2[%c38] : memref<120xf32, #tpu.memory_space<smem>>
    %cst_105 = arith.constant 2.000000e+00 : f32
    %315 = arith.mulf %cst_105, %314 : f32
    %316 = arith.addf %313, %315 : f32
    %c62 = arith.constant 62 : index
    %317 = memref.load %arg2[%c62] : memref<120xf32, #tpu.memory_space<smem>>
    %cst_106 = arith.constant 2.000000e+00 : f32
    %318 = arith.mulf %cst_106, %317 : f32
    %319 = arith.addf %316, %318 : f32
    %c86 = arith.constant 86 : index
    %320 = memref.load %arg2[%c86] : memref<120xf32, #tpu.memory_space<smem>>
    %cst_107 = arith.constant 2.000000e+00 : f32
    %321 = arith.mulf %cst_107, %320 : f32
    %322 = arith.addf %319, %321 : f32
    %c110 = arith.constant 110 : index
    %323 = memref.load %arg2[%c110] : memref<120xf32, #tpu.memory_space<smem>>
    %cst_108 = arith.constant 2.000000e+00 : f32
    %324 = arith.mulf %cst_108, %323 : f32
    %325 = arith.addf %322, %324 : f32
    %c4_109 = arith.constant 4 : index
    %326 = memref.load %arg3[%c4_109] : memref<40xf32, #tpu.memory_space<smem>>
    %c12_110 = arith.constant 12 : index
    %327 = memref.load %arg3[%c12_110] : memref<40xf32, #tpu.memory_space<smem>>
    %cst_111 = arith.constant 2.000000e+00 : f32
    %328 = arith.mulf %cst_111, %327 : f32
    %329 = arith.addf %326, %328 : f32
    %c20 = arith.constant 20 : index
    %330 = memref.load %arg3[%c20] : memref<40xf32, #tpu.memory_space<smem>>
    %cst_112 = arith.constant 2.000000e+00 : f32
    %331 = arith.mulf %cst_112, %330 : f32
    %332 = arith.addf %329, %331 : f32
    %c28_113 = arith.constant 28 : index
    %333 = memref.load %arg3[%c28_113] : memref<40xf32, #tpu.memory_space<smem>>
    %cst_114 = arith.constant 2.000000e+00 : f32
    %334 = arith.mulf %cst_114, %333 : f32
    %335 = arith.addf %332, %334 : f32
    %c36_115 = arith.constant 36 : index
    %336 = memref.load %arg3[%c36_115] : memref<40xf32, #tpu.memory_space<smem>>
    %cst_116 = arith.constant 2.000000e+00 : f32
    %337 = arith.mulf %cst_116, %336 : f32
    %338 = arith.addf %335, %337 : f32
    %339 = vector.extract_strided_slice %2 {offsets = [0, 0, 0], sizes = [1, 32, 128], strides = [1, 1, 1]} : vector<3x32x128xf32> to vector<1x32x128xf32>
    %340 = vector.shape_cast %339 : vector<1x32x128xf32> to vector<32x128xf32>
    %341 = vector.broadcast %299 : f32 to vector<32x128xf32>
    %342 = arith.mulf %341, %340 : vector<32x128xf32>
    %343 = vector.extract_strided_slice %2 {offsets = [1, 0, 0], sizes = [1, 32, 128], strides = [1, 1, 1]} : vector<3x32x128xf32> to vector<1x32x128xf32>
    %344 = vector.shape_cast %343 : vector<1x32x128xf32> to vector<32x128xf32>
    %345 = vector.broadcast %312 : f32 to vector<32x128xf32>
    %346 = arith.mulf %345, %344 : vector<32x128xf32>
    %347 = arith.addf %342, %346 : vector<32x128xf32>
    %348 = vector.extract_strided_slice %2 {offsets = [2, 0, 0], sizes = [1, 32, 128], strides = [1, 1, 1]} : vector<3x32x128xf32> to vector<1x32x128xf32>
    %349 = vector.shape_cast %348 : vector<1x32x128xf32> to vector<32x128xf32>
    %350 = vector.broadcast %325 : f32 to vector<32x128xf32>
    %351 = arith.mulf %350, %349 : vector<32x128xf32>
    %352 = arith.addf %347, %351 : vector<32x128xf32>
    %353 = vector.broadcast %338 : f32 to vector<32x128xf32>
    %354 = arith.addf %352, %353 : vector<32x128xf32>
    %c4_117 = arith.constant 4 : index
    %c0_118 = arith.constant 0 : index
    %c0_119 = arith.constant 0 : index
    %355 = vector.load %arg4[%c4_117, %c0_118, %c0_119] : memref<8x32x128xf32, #tpu.memory_space<vmem>>, vector<1x32x128xf32>
    %356 = vector.shape_cast %355 : vector<1x32x128xf32> to vector<32x128xf32>
    %357 = vector.shape_cast %354 : vector<32x128xf32> to vector<1x32x128xf32>
    tpu.vector_store %arg4[%c4_117, %c0_118, %c0_119], %357 {strides = array<i32>} : memref<8x32x128xf32, #tpu.memory_space<vmem>>, vector<1x32x128xf32>,
    %c15 = arith.constant 15 : index
    %358 = memref.load %arg2[%c15] : memref<120xf32, #tpu.memory_space<smem>>
    %c39 = arith.constant 39 : index
    %359 = memref.load %arg2[%c39] : memref<120xf32, #tpu.memory_space<smem>>
    %cst_120 = arith.constant 2.000000e+00 : f32
    %360 = arith.mulf %cst_120, %359 : f32
    %361 = arith.addf %358, %360 : f32
    %c63 = arith.constant 63 : index
    %362 = memref.load %arg2[%c63] : memref<120xf32, #tpu.memory_space<smem>>
    %cst_121 = arith.constant 2.000000e+00 : f32
    %363 = arith.mulf %cst_121, %362 : f32
    %364 = arith.addf %361, %363 : f32
    %c87 = arith.constant 87 : index
    %365 = memref.load %arg2[%c87] : memref<120xf32, #tpu.memory_space<smem>>
    %cst_122 = arith.constant 2.000000e+00 : f32
    %366 = arith.mulf %cst_122, %365 : f32
    %367 = arith.addf %364, %366 : f32
    %c111 = arith.constant 111 : index
    %368 = memref.load %arg2[%c111] : memref<120xf32, #tpu.memory_space<smem>>
    %cst_123 = arith.constant 2.000000e+00 : f32
    %369 = arith.mulf %cst_123, %368 : f32
    %370 = arith.addf %367, %369 : f32
    %c16_124 = arith.constant 16 : index
    %371 = memref.load %arg2[%c16_124] : memref<120xf32, #tpu.memory_space<smem>>
    %c40 = arith.constant 40 : index
    %372 = memref.load %arg2[%c40] : memref<120xf32, #tpu.memory_space<smem>>
    %cst_125 = arith.constant 2.000000e+00 : f32
    %373 = arith.mulf %cst_125, %372 : f32
    %374 = arith.addf %371, %373 : f32
    %c64 = arith.constant 64 : index
    %375 = memref.load %arg2[%c64] : memref<120xf32, #tpu.memory_space<smem>>
    %cst_126 = arith.constant 2.000000e+00 : f32
    %376 = arith.mulf %cst_126, %375 : f32
    %377 = arith.addf %374, %376 : f32
    %c88 = arith.constant 88 : index
    %378 = memref.load %arg2[%c88] : memref<120xf32, #tpu.memory_space<smem>>
    %cst_127 = arith.constant 2.000000e+00 : f32
    %379 = arith.mulf %cst_127, %378 : f32
    %380 = arith.addf %377, %379 : f32
    %c112 = arith.constant 112 : index
    %381 = memref.load %arg2[%c112] : memref<120xf32, #tpu.memory_space<smem>>
    %cst_128 = arith.constant 2.000000e+00 : f32
    %382 = arith.mulf %cst_128, %381 : f32
    %383 = arith.addf %380, %382 : f32
    %c17_129 = arith.constant 17 : index
    %384 = memref.load %arg2[%c17_129] : memref<120xf32, #tpu.memory_space<smem>>
    %c41 = arith.constant 41 : index
    %385 = memref.load %arg2[%c41] : memref<120xf32, #tpu.memory_space<smem>>
    %cst_130 = arith.constant 2.000000e+00 : f32
    %386 = arith.mulf %cst_130, %385 : f32
    %387 = arith.addf %384, %386 : f32
    %c65 = arith.constant 65 : index
    %388 = memref.load %arg2[%c65] : memref<120xf32, #tpu.memory_space<smem>>
    %cst_131 = arith.constant 2.000000e+00 : f32
    %389 = arith.mulf %cst_131, %388 : f32
    %390 = arith.addf %387, %389 : f32
    %c89 = arith.constant 89 : index
    %391 = memref.load %arg2[%c89] : memref<120xf32, #tpu.memory_space<smem>>
    %cst_132 = arith.constant 2.000000e+00 : f32
    %392 = arith.mulf %cst_132, %391 : f32
    %393 = arith.addf %390, %392 : f32
    %c113 = arith.constant 113 : index
    %394 = memref.load %arg2[%c113] : memref<120xf32, #tpu.memory_space<smem>>
    %cst_133 = arith.constant 2.000000e+00 : f32
    %395 = arith.mulf %cst_133, %394 : f32
    %396 = arith.addf %393, %395 : f32
    %c5_134 = arith.constant 5 : index
    %397 = memref.load %arg3[%c5_134] : memref<40xf32, #tpu.memory_space<smem>>
    %c13_135 = arith.constant 13 : index
    %398 = memref.load %arg3[%c13_135] : memref<40xf32, #tpu.memory_space<smem>>
    %cst_136 = arith.constant 2.000000e+00 : f32
    %399 = arith.mulf %cst_136, %398 : f32
    %400 = arith.addf %397, %399 : f32
    %c21 = arith.constant 21 : index
    %401 = memref.load %arg3[%c21] : memref<40xf32, #tpu.memory_space<smem>>
    %cst_137 = arith.constant 2.000000e+00 : f32
    %402 = arith.mulf %cst_137, %401 : f32
    %403 = arith.addf %400, %402 : f32
    %c29_138 = arith.constant 29 : index
    %404 = memref.load %arg3[%c29_138] : memref<40xf32, #tpu.memory_space<smem>>
    %cst_139 = arith.constant 2.000000e+00 : f32
    %405 = arith.mulf %cst_139, %404 : f32
    %406 = arith.addf %403, %405 : f32
    %c37_140 = arith.constant 37 : index
    %407 = memref.load %arg3[%c37_140] : memref<40xf32, #tpu.memory_space<smem>>
    %cst_141 = arith.constant 2.000000e+00 : f32
    %408 = arith.mulf %cst_141, %407 : f32
    %409 = arith.addf %406, %408 : f32
    %410 = vector.extract_strided_slice %2 {offsets = [0, 0, 0], sizes = [1, 32, 128], strides = [1, 1, 1]} : vector<3x32x128xf32> to vector<1x32x128xf32>
    %411 = vector.shape_cast %410 : vector<1x32x128xf32> to vector<32x128xf32>
    %412 = vector.broadcast %370 : f32 to vector<32x128xf32>
    %413 = arith.mulf %412, %411 : vector<32x128xf32>
    %414 = vector.extract_strided_slice %2 {offsets = [1, 0, 0], sizes = [1, 32, 128], strides = [1, 1, 1]} : vector<3x32x128xf32> to vector<1x32x128xf32>
    %415 = vector.shape_cast %414 : vector<1x32x128xf32> to vector<32x128xf32>
    %416 = vector.broadcast %383 : f32 to vector<32x128xf32>
    %417 = arith.mulf %416, %415 : vector<32x128xf32>
    %418 = arith.addf %413, %417 : vector<32x128xf32>
    %419 = vector.extract_strided_slice %2 {offsets = [2, 0, 0], sizes = [1, 32, 128], strides = [1, 1, 1]} : vector<3x32x128xf32> to vector<1x32x128xf32>
    %420 = vector.shape_cast %419 : vector<1x32x128xf32> to vector<32x128xf32>
    %421 = vector.broadcast %396 : f32 to vector<32x128xf32>
    %422 = arith.mulf %421, %420 : vector<32x128xf32>
    %423 = arith.addf %418, %422 : vector<32x128xf32>
    %424 = vector.broadcast %409 : f32 to vector<32x128xf32>
    %425 = arith.addf %423, %424 : vector<32x128xf32>
    %c5_142 = arith.constant 5 : index
    %c0_143 = arith.constant 0 : index
    %c0_144 = arith.constant 0 : index
    %426 = vector.load %arg4[%c5_142, %c0_143, %c0_144] : memref<8x32x128xf32, #tpu.memory_space<vmem>>, vector<1x32x128xf32>
    %427 = vector.shape_cast %426 : vector<1x32x128xf32> to vector<32x128xf32>
    %428 = vector.shape_cast %425 : vector<32x128xf32> to vector<1x32x128xf32>
    tpu.vector_store %arg4[%c5_142, %c0_143, %c0_144], %428 {strides = array<i32>} : memref<8x32x128xf32, #tpu.memory_space<vmem>>, vector<1x32x128xf32>,
    %c18_145 = arith.constant 18 : index
    %429 = memref.load %arg2[%c18_145] : memref<120xf32, #tpu.memory_space<smem>>
    %c42 = arith.constant 42 : index
    %430 = memref.load %arg2[%c42] : memref<120xf32, #tpu.memory_space<smem>>
    %cst_146 = arith.constant 2.000000e+00 : f32
    %431 = arith.mulf %cst_146, %430 : f32
    %432 = arith.addf %429, %431 : f32
    %c66 = arith.constant 66 : index
    %433 = memref.load %arg2[%c66] : memref<120xf32, #tpu.memory_space<smem>>
    %cst_147 = arith.constant 2.000000e+00 : f32
    %434 = arith.mulf %cst_147, %433 : f32
    %435 = arith.addf %432, %434 : f32
    %c90 = arith.constant 90 : index
    %436 = memref.load %arg2[%c90] : memref<120xf32, #tpu.memory_space<smem>>
    %cst_148 = arith.constant 2.000000e+00 : f32
    %437 = arith.mulf %cst_148, %436 : f32
    %438 = arith.addf %435, %437 : f32
    %c114 = arith.constant 114 : index
    %439 = memref.load %arg2[%c114] : memref<120xf32, #tpu.memory_space<smem>>
    %cst_149 = arith.constant 2.000000e+00 : f32
    %440 = arith.mulf %cst_149, %439 : f32
    %441 = arith.addf %438, %440 : f32
    %c19_150 = arith.constant 19 : index
    %442 = memref.load %arg2[%c19_150] : memref<120xf32, #tpu.memory_space<smem>>
    %c43 = arith.constant 43 : index
    %443 = memref.load %arg2[%c43] : memref<120xf32, #tpu.memory_space<smem>>
    %cst_151 = arith.constant 2.000000e+00 : f32
    %444 = arith.mulf %cst_151, %443 : f32
    %445 = arith.addf %442, %444 : f32
    %c67 = arith.constant 67 : index
    %446 = memref.load %arg2[%c67] : memref<120xf32, #tpu.memory_space<smem>>
    %cst_152 = arith.constant 2.000000e+00 : f32
    %447 = arith.mulf %cst_152, %446 : f32
    %448 = arith.addf %445, %447 : f32
    %c91 = arith.constant 91 : index
    %449 = memref.load %arg2[%c91] : memref<120xf32, #tpu.memory_space<smem>>
    %cst_153 = arith.constant 2.000000e+00 : f32
    %450 = arith.mulf %cst_153, %449 : f32
    %451 = arith.addf %448, %450 : f32
    %c115 = arith.constant 115 : index
    %452 = memref.load %arg2[%c115] : memref<120xf32, #tpu.memory_space<smem>>
    %cst_154 = arith.constant 2.000000e+00 : f32
    %453 = arith.mulf %cst_154, %452 : f32
    %454 = arith.addf %451, %453 : f32
    %c20_155 = arith.constant 20 : index
    %455 = memref.load %arg2[%c20_155] : memref<120xf32, #tpu.memory_space<smem>>
    %c44 = arith.constant 44 : index
    %456 = memref.load %arg2[%c44] : memref<120xf32, #tpu.memory_space<smem>>
    %cst_156 = arith.constant 2.000000e+00 : f32
    %457 = arith.mulf %cst_156, %456 : f32
    %458 = arith.addf %455, %457 : f32
    %c68 = arith.constant 68 : index
    %459 = memref.load %arg2[%c68] : memref<120xf32, #tpu.memory_space<smem>>
    %cst_157 = arith.constant 2.000000e+00 : f32
    %460 = arith.mulf %cst_157, %459 : f32
    %461 = arith.addf %458, %460 : f32
    %c92 = arith.constant 92 : index
    %462 = memref.load %arg2[%c92] : memref<120xf32, #tpu.memory_space<smem>>
    %cst_158 = arith.constant 2.000000e+00 : f32
    %463 = arith.mulf %cst_158, %462 : f32
    %464 = arith.addf %461, %463 : f32
    %c116 = arith.constant 116 : index
    %465 = memref.load %arg2[%c116] : memref<120xf32, #tpu.memory_space<smem>>
    %cst_159 = arith.constant 2.000000e+00 : f32
    %466 = arith.mulf %cst_159, %465 : f32
    %467 = arith.addf %464, %466 : f32
    %c6_160 = arith.constant 6 : index
    %468 = memref.load %arg3[%c6_160] : memref<40xf32, #tpu.memory_space<smem>>
    %c14_161 = arith.constant 14 : index
    %469 = memref.load %arg3[%c14_161] : memref<40xf32, #tpu.memory_space<smem>>
    %cst_162 = arith.constant 2.000000e+00 : f32
    %470 = arith.mulf %cst_162, %469 : f32
    %471 = arith.addf %468, %470 : f32
    %c22 = arith.constant 22 : index
    %472 = memref.load %arg3[%c22] : memref<40xf32, #tpu.memory_space<smem>>
    %cst_163 = arith.constant 2.000000e+00 : f32
    %473 = arith.mulf %cst_163, %472 : f32
    %474 = arith.addf %471, %473 : f32
    %c30_164 = arith.constant 30 : index
    %475 = memref.load %arg3[%c30_164] : memref<40xf32, #tpu.memory_space<smem>>
    %cst_165 = arith.constant 2.000000e+00 : f32
    %476 = arith.mulf %cst_165, %475 : f32
    %477 = arith.addf %474, %476 : f32
    %c38_166 = arith.constant 38 : index
    %478 = memref.load %arg3[%c38_166] : memref<40xf32, #tpu.memory_space<smem>>
    %cst_167 = arith.constant 2.000000e+00 : f32
    %479 = arith.mulf %cst_167, %478 : f32
    %480 = arith.addf %477, %479 : f32
    %481 = vector.extract_strided_slice %2 {offsets = [0, 0, 0], sizes = [1, 32, 128], strides = [1, 1, 1]} : vector<3x32x128xf32> to vector<1x32x128xf32>
    %482 = vector.shape_cast %481 : vector<1x32x128xf32> to vector<32x128xf32>
    %483 = vector.broadcast %441 : f32 to vector<32x128xf32>
    %484 = arith.mulf %483, %482 : vector<32x128xf32>
    %485 = vector.extract_strided_slice %2 {offsets = [1, 0, 0], sizes = [1, 32, 128], strides = [1, 1, 1]} : vector<3x32x128xf32> to vector<1x32x128xf32>
    %486 = vector.shape_cast %485 : vector<1x32x128xf32> to vector<32x128xf32>
    %487 = vector.broadcast %454 : f32 to vector<32x128xf32>
    %488 = arith.mulf %487, %486 : vector<32x128xf32>
    %489 = arith.addf %484, %488 : vector<32x128xf32>
    %490 = vector.extract_strided_slice %2 {offsets = [2, 0, 0], sizes = [1, 32, 128], strides = [1, 1, 1]} : vector<3x32x128xf32> to vector<1x32x128xf32>
    %491 = vector.shape_cast %490 : vector<1x32x128xf32> to vector<32x128xf32>
    %492 = vector.broadcast %467 : f32 to vector<32x128xf32>
    %493 = arith.mulf %492, %491 : vector<32x128xf32>
    %494 = arith.addf %489, %493 : vector<32x128xf32>
    %495 = vector.broadcast %480 : f32 to vector<32x128xf32>
    %496 = arith.addf %494, %495 : vector<32x128xf32>
    %c6_168 = arith.constant 6 : index
    %c0_169 = arith.constant 0 : index
    %c0_170 = arith.constant 0 : index
    %497 = vector.load %arg4[%c6_168, %c0_169, %c0_170] : memref<8x32x128xf32, #tpu.memory_space<vmem>>, vector<1x32x128xf32>
    %498 = vector.shape_cast %497 : vector<1x32x128xf32> to vector<32x128xf32>
    %499 = vector.shape_cast %496 : vector<32x128xf32> to vector<1x32x128xf32>
    tpu.vector_store %arg4[%c6_168, %c0_169, %c0_170], %499 {strides = array<i32>} : memref<8x32x128xf32, #tpu.memory_space<vmem>>, vector<1x32x128xf32>,
    %c21_171 = arith.constant 21 : index
    %500 = memref.load %arg2[%c21_171] : memref<120xf32, #tpu.memory_space<smem>>
    %c45 = arith.constant 45 : index
    %501 = memref.load %arg2[%c45] : memref<120xf32, #tpu.memory_space<smem>>
    %cst_172 = arith.constant 2.000000e+00 : f32
    %502 = arith.mulf %cst_172, %501 : f32
    %503 = arith.addf %500, %502 : f32
    %c69 = arith.constant 69 : index
    %504 = memref.load %arg2[%c69] : memref<120xf32, #tpu.memory_space<smem>>
    %cst_173 = arith.constant 2.000000e+00 : f32
    %505 = arith.mulf %cst_173, %504 : f32
    %506 = arith.addf %503, %505 : f32
    %c93 = arith.constant 93 : index
    %507 = memref.load %arg2[%c93] : memref<120xf32, #tpu.memory_space<smem>>
    %cst_174 = arith.constant 2.000000e+00 : f32
    %508 = arith.mulf %cst_174, %507 : f32
    %509 = arith.addf %506, %508 : f32
    %c117 = arith.constant 117 : index
    %510 = memref.load %arg2[%c117] : memref<120xf32, #tpu.memory_space<smem>>
    %cst_175 = arith.constant 2.000000e+00 : f32
    %511 = arith.mulf %cst_175, %510 : f32
    %512 = arith.addf %509, %511 : f32
    %c22_176 = arith.constant 22 : index
    %513 = memref.load %arg2[%c22_176] : memref<120xf32, #tpu.memory_space<smem>>
    %c46 = arith.constant 46 : index
    %514 = memref.load %arg2[%c46] : memref<120xf32, #tpu.memory_space<smem>>
    %cst_177 = arith.constant 2.000000e+00 : f32
    %515 = arith.mulf %cst_177, %514 : f32
    %516 = arith.addf %513, %515 : f32
    %c70 = arith.constant 70 : index
    %517 = memref.load %arg2[%c70] : memref<120xf32, #tpu.memory_space<smem>>
    %cst_178 = arith.constant 2.000000e+00 : f32
    %518 = arith.mulf %cst_178, %517 : f32
    %519 = arith.addf %516, %518 : f32
    %c94 = arith.constant 94 : index
    %520 = memref.load %arg2[%c94] : memref<120xf32, #tpu.memory_space<smem>>
    %cst_179 = arith.constant 2.000000e+00 : f32
    %521 = arith.mulf %cst_179, %520 : f32
    %522 = arith.addf %519, %521 : f32
    %c118 = arith.constant 118 : index
    %523 = memref.load %arg2[%c118] : memref<120xf32, #tpu.memory_space<smem>>
    %cst_180 = arith.constant 2.000000e+00 : f32
    %524 = arith.mulf %cst_180, %523 : f32
    %525 = arith.addf %522, %524 : f32
    %c23 = arith.constant 23 : index
    %526 = memref.load %arg2[%c23] : memref<120xf32, #tpu.memory_space<smem>>
    %c47 = arith.constant 47 : index
    %527 = memref.load %arg2[%c47] : memref<120xf32, #tpu.memory_space<smem>>
    %cst_181 = arith.constant 2.000000e+00 : f32
    %528 = arith.mulf %cst_181, %527 : f32
    %529 = arith.addf %526, %528 : f32
    %c71 = arith.constant 71 : index
    %530 = memref.load %arg2[%c71] : memref<120xf32, #tpu.memory_space<smem>>
    %cst_182 = arith.constant 2.000000e+00 : f32
    %531 = arith.mulf %cst_182, %530 : f32
    %532 = arith.addf %529, %531 : f32
    %c95 = arith.constant 95 : index
    %533 = memref.load %arg2[%c95] : memref<120xf32, #tpu.memory_space<smem>>
    %cst_183 = arith.constant 2.000000e+00 : f32
    %534 = arith.mulf %cst_183, %533 : f32
    %535 = arith.addf %532, %534 : f32
    %c119 = arith.constant 119 : index
    %536 = memref.load %arg2[%c119] : memref<120xf32, #tpu.memory_space<smem>>
    %cst_184 = arith.constant 2.000000e+00 : f32
    %537 = arith.mulf %cst_184, %536 : f32
    %538 = arith.addf %535, %537 : f32
    %c7_185 = arith.constant 7 : index
    %539 = memref.load %arg3[%c7_185] : memref<40xf32, #tpu.memory_space<smem>>
    %c15_186 = arith.constant 15 : index
    %540 = memref.load %arg3[%c15_186] : memref<40xf32, #tpu.memory_space<smem>>
    %cst_187 = arith.constant 2.000000e+00 : f32
    %541 = arith.mulf %cst_187, %540 : f32
    %542 = arith.addf %539, %541 : f32
    %c23_188 = arith.constant 23 : index
    %543 = memref.load %arg3[%c23_188] : memref<40xf32, #tpu.memory_space<smem>>
    %cst_189 = arith.constant 2.000000e+00 : f32
    %544 = arith.mulf %cst_189, %543 : f32
    %545 = arith.addf %542, %544 : f32
    %c31_190 = arith.constant 31 : index
    %546 = memref.load %arg3[%c31_190] : memref<40xf32, #tpu.memory_space<smem>>
    %cst_191 = arith.constant 2.000000e+00 : f32
    %547 = arith.mulf %cst_191, %546 : f32
    %548 = arith.addf %545, %547 : f32
    %c39_192 = arith.constant 39 : index
    %549 = memref.load %arg3[%c39_192] : memref<40xf32, #tpu.memory_space<smem>>
    %cst_193 = arith.constant 2.000000e+00 : f32
    %550 = arith.mulf %cst_193, %549 : f32
    %551 = arith.addf %548, %550 : f32
    %552 = vector.extract_strided_slice %2 {offsets = [0, 0, 0], sizes = [1, 32, 128], strides = [1, 1, 1]} : vector<3x32x128xf32> to vector<1x32x128xf32>
    %553 = vector.shape_cast %552 : vector<1x32x128xf32> to vector<32x128xf32>
    %554 = vector.broadcast %512 : f32 to vector<32x128xf32>
    %555 = arith.mulf %554, %553 : vector<32x128xf32>
    %556 = vector.extract_strided_slice %2 {offsets = [1, 0, 0], sizes = [1, 32, 128], strides = [1, 1, 1]} : vector<3x32x128xf32> to vector<1x32x128xf32>
    %557 = vector.shape_cast %556 : vector<1x32x128xf32> to vector<32x128xf32>
    %558 = vector.broadcast %525 : f32 to vector<32x128xf32>
    %559 = arith.mulf %558, %557 : vector<32x128xf32>
    %560 = arith.addf %555, %559 : vector<32x128xf32>
    %561 = vector.extract_strided_slice %2 {offsets = [2, 0, 0], sizes = [1, 32, 128], strides = [1, 1, 1]} : vector<3x32x128xf32> to vector<1x32x128xf32>
    %562 = vector.shape_cast %561 : vector<1x32x128xf32> to vector<32x128xf32>
    %563 = vector.broadcast %538 : f32 to vector<32x128xf32>
    %564 = arith.mulf %563, %562 : vector<32x128xf32>
    %565 = arith.addf %560, %564 : vector<32x128xf32>
    %566 = vector.broadcast %551 : f32 to vector<32x128xf32>
    %567 = arith.addf %565, %566 : vector<32x128xf32>
    %c7_194 = arith.constant 7 : index
    %c0_195 = arith.constant 0 : index
    %c0_196 = arith.constant 0 : index
    %568 = vector.load %arg4[%c7_194, %c0_195, %c0_196] : memref<8x32x128xf32, #tpu.memory_space<vmem>>, vector<1x32x128xf32>
    %569 = vector.shape_cast %568 : vector<1x32x128xf32> to vector<32x128xf32>
    %570 = vector.shape_cast %567 : vector<32x128xf32> to vector<1x32x128xf32>
    tpu.vector_store %arg4[%c7_194, %c0_195, %c0_196], %570 {strides = array<i32>} : memref<8x32x128xf32, #tpu.memory_space<vmem>>, vector<1x32x128xf32>,
    return
  }
}

</mosaic_0001>

<bundles_post_ra>
// kernel: _forward_fused.1
= control target key start
LH: loop header
LB: loop body
LE: loop exit
PB: predicated region body
PF: predicated region fallthrough
CT: control target
= control target key end

     0   :  { %9 = vsyncpa [#allocation3], 0  ;;  %s3320_s0 = inlined_call_operand.hbm [shape: f32[3,64,64], index: 0, kind: input, shape index: {}]   ;;  %s3321_s1 = inlined_call_operand.hbm [shape: f32[3,64,64], index: 1, kind: input, shape index: {}]   ;;  %s3322_s2 = inlined_call_operand.vmem [shape: f32[120], index: 2, kind: input, shape index: {}]   ;;  %s3323_s3 = inlined_call_operand.vmem [shape: f32[40], index: 3, kind: input, shape index: {}]   ;;  %s3324_s4 = inlined_call_operand.vmem [shape: f32[8,66,66], index: 4, kind: output, shape index: {}]  }
   0x1   :  { %10 = vsyncpa [#allocation6], 0 }
   0x2   :  { %11 = vsyncpa [#allocation4], 0  ;;  %s17_s17 = sshll.u32 %s3320_s0, 4  ;;  %s18_s17 = int_to_ptr.hbm [resolvable:$true] %s17_s17 }
   0x3   :  { %12 = vsyncpa [#allocation9], 0  ;;  %s1752_s18 = smov [#allocation2]   ;;  %s30_s22 = sshll.u32 %s3321_s1, 4  ;;  %s31_s22 = int_to_ptr.hbm [resolvable:$true] %s30_s22 }
   0x4   :  { %s19_s19 = sshll.u32 %s1752_s18, 4  ;;  %s1753_s23 = smov 128   ;;  %s20_s19 = int_to_ptr.vmem [resolvable:$true] %s19_s19 }
   0x5   :  { %s1754_s24 = smov 8   ;;  %s1755_s25 = smov [#allocation5]  }
   0x6   :  { %25 = dma.hbm_to_vmem [thread:$0]  %s18_s17, 3072, %s20_s19, [#allocation3], %s1753_s23, %s1753_s23, %s1754_s24  }
   0x7   :  { %s32_s26 = sshll.u32 %s1755_s25, 4  ;;  %s44_s29 = sshll.u32 %s3322_s2, 4  ;;  %s33_s26 = int_to_ptr.vmem [resolvable:$true] %s32_s26  ;;  %s45_s29 = int_to_ptr.vmem [resolvable:$true] %s44_s29 }
   0x8   :  { %38 = dma.hbm_to_vmem [thread:$0]  %s31_s22, 3072, %s33_s26, [#allocation6], %s1753_s23, %s1753_s23, %s1754_s24  }
   0x9   :  { %s53_s5 = sshll.u32 %s3323_s3, 4  ;;  %s1756_s6 = smov [#allocation7]   ;;  %s54_s5 = int_to_ptr.vmem [resolvable:$true] %s53_s5 }
   0xa   :  { %47 = dma.vmem_to_smem %s45_s29, 16, %s1756_s6, [#allocation4]  }
   0xb   :  { %s1757_s1 = smov [#allocation8]  }
   0xc   :  { %56 = dma.vmem_to_smem %s54_s5, 16, %s1757_s1, [#allocation9]  }
   0xd   :  { %1744 = dma.done.wait [#allocation3], 3072  }
   0xe   :  { %1745 = vsyncadd [#allocation3], 4294964224 }
   0xf   :  { %1746 = dma.done.wait [#allocation6], 3072  }
  0x10   :  { %1747 = vsyncadd [#allocation6], 4294964224 }
  0x11   :  { %1748 = dma.done.wait [#allocation4], 16  }
  0x12   :  { %1749 = vsyncadd [#allocation4], 4294967280 }
  0x13   :  { %1750 = dma.done.wait [#allocation9], 16  }
  0x14   :  { %1751 = vsyncadd [#allocation9], 4294967280 }
  0x15   :  { %73 = sfence }
  0x16   :  { %s146_s2 = sld [smem:[#allocation7]]  ;;  %v74_v0 = vld [vmem:[#allocation2] sm:$0xff]  ;;  %v76_v4 = vld [vmem:[#allocation2 + $0x10] sm:$0xff]  ;;  %v75_v14 = vld [vmem:[#allocation2 + $0x8] sm:$0xff]  ;;  %vm250_vm0 = vcmask 539648   ;;  %vm293_vm1 = vcmask 531464  }
  0x17   :  { %s1388_s7 = sld [smem:[#allocation7 + $0x18]]  ;;  %v82_v1 = vld [vmem:[#allocation2 + $0x40] sm:$0xff]  ;;  %v84_v5 = vld [vmem:[#allocation2 + $0x50] sm:$0xff]  ;;  %v83_v19 = vld [vmem:[#allocation2 + $0x48] sm:$0xff]  ;;  %vm259_vm2 = vcmask 533504  }
  0x18   :  { %s1389_s8 = sld [smem:[#allocation7 + $0x30]]  ;;  %v98_v2 = vld [vmem:[#allocation5] sm:$0xff]  ;;  %v100_v6 = vld [vmem:[#allocation5 + $0x10] sm:$0xff]  ;;  %v99_v20 = vld [vmem:[#allocation5 + $0x8] sm:$0xff] }
  0x19   :  { %s1390_s9 = sld [smem:[#allocation7 + $0x48]]  ;;  %v106_v3 = vld [vmem:[#allocation5 + $0x40] sm:$0xff]  ;;  %v108_v7 = vld [vmem:[#allocation5 + $0x50] sm:$0xff]  ;;  %v1808_v10 = vadd.f32 %v98_v2, %v74_v0  ;;  %v1814_v12 = vadd.f32 %v100_v6, %v76_v4  ;;  %v107_v21 = vld [vmem:[#allocation5 + $0x48] sm:$0xff]  ;;  %v1843_v32 = vadd.f32 %v99_v20, %v75_v14 }
  0x1a   :  { %s1391_s10 = sld [smem:[#allocation7 + $0x60]]  ;;  %v90_v8 = vld [vmem:[#allocation2 + $0x80] sm:$0xff]  ;;  %v1810_v11 = vadd.f32 %v106_v3, %v82_v1  ;;  %v1816_v13 = vadd.f32 %v108_v7, %v84_v5  ;;  %v92_v17 = vld [vmem:[#allocation2 + $0x90] sm:$0xff]  ;;  %v77_v22 = vld [vmem:[#allocation2 + $0x18] sm:$0xff]  ;;  %v1845_v35 = vadd.f32 %v107_v21, %v83_v19 }
  0x1b   :  { %s1392_s3 = sld [smem:[#allocation7 + $0x1]]  ;;  %v114_v9 = vld [vmem:[#allocation5 + $0x80] sm:$0xff]  ;;  %v116_v18 = vld [vmem:[#allocation5 + $0x90] sm:$0xff]  ;;  %v85_v23 = vld [vmem:[#allocation2 + $0x58] sm:$0xff] }
  0x1c   :  { %s1393_s11 = sld [smem:[#allocation7 + $0x19]]  ;;  %v101_v24 = vld [vmem:[#allocation5 + $0x18] sm:$0xff]  ;;  %v1836_v30 = vadd.f32 %v114_v9, %v90_v8  ;;  %v1841_v31 = vadd.f32 %v116_v18, %v92_v17  ;;  %v91_v33 = vld [vmem:[#allocation2 + $0x88] sm:$0xff]  ;;  %v80_v43 = vld [vmem:[#allocation2 + $0x30] sm:$0xff] }
  0x1d   :  { %s148_s12 = smul.f32 2.0, %s1388_s7  ;;  %s1394_s13 = sld [smem:[#allocation7 + $0x31]]  ;;  %v109_v25 = vld [vmem:[#allocation5 + $0x58] sm:$0xff]  ;;  %v115_v34 = vld [vmem:[#allocation5 + $0x88] sm:$0xff]  ;;  %v1847_v36 = vadd.f32 %v101_v24, %v77_v22  ;;  %v88_v44 = vld [vmem:[#allocation2 + $0x70] sm:$0xff] }
  0x1e   :  { %s151_s14 = smul.f32 2.0, %s1389_s8  ;;  %s1395_s15 = sld [smem:[#allocation7 + $0x49]]  ;;  %v1849_v37 = vadd.f32 %v109_v25, %v85_v23  ;;  %v93_v38 = vld [vmem:[#allocation2 + $0x98] sm:$0xff]  ;;  %v1862_v47 = vadd.f32 %v115_v34, %v91_v33  ;;  %v104_v49 = vld [vmem:[#allocation5 + $0x30] sm:$0xff]  ;;  %v110_v33 = vld [vmem:[#allocation5 + $0x60] sm:$0xff] }
  0x1f   :  { %s149_s16 = sadd.f32 %s148_s12, %s146_s2  ;;  %s154_s17 = smul.f32 2.0, %s1390_s9  ;;  %v117_v39 = vld [vmem:[#allocation5 + $0x98] sm:$0xff]  ;;  %v112_v50 = vld [vmem:[#allocation5 + $0x70] sm:$0xff]  ;;  %v1877_v61 = vadd.f32 %v104_v49, %v80_v43  ;;  %v118_v43 = vld [vmem:[#allocation5 + $0xa0] sm:$0xff] }
  0x20   :  { %s1396_s18 = sld [smem:[#allocation7 + $0x61]]  ;;  %s157_s20 = smul.f32 2.0, %s1391_s10  ;;  %v81_v51 = vld [vmem:[#allocation2 + $0x38] sm:$0xff]  ;;  %v1868_v53 = vadd.f32 %v117_v39, %v93_v38  ;;  %v1879_v62 = vadd.f32 %v112_v50, %v88_v44  ;;  %v96_v63 = vld [vmem:[#allocation2 + $0xb0] sm:$0xff] }
  0x21   :  { %s152_s19 = sadd.f32 %s151_s14, %s149_s16  ;;  %v89_v56 = vld [vmem:[#allocation2 + $0x78] sm:$0xff]  ;;  %v120_v6 = vld [vmem:[#allocation5 + $0xb0] sm:$0xff] }
  0x22   :  { %s161_s21 = smul.f32 2.0, %s1393_s11  ;;  %s1796_s22 = sld [smem:[#allocation7 + $0x2]]  ;;  %v105_v57 = vld [vmem:[#allocation5 + $0x38] sm:$0xff]  ;;  %v1906_v20 = vadd.f32 %v120_v6, %v96_v63 }
  0x23   :  { %s155_s23 = sadd.f32 %s154_s17, %s152_s19  ;;  %s164_s24 = smul.f32 2.0, %s1394_s13  ;;  %v113_v58 = vld [vmem:[#allocation5 + $0x78] sm:$0xff]  ;;  %v1883_v0 = vadd.f32 %v105_v57, %v81_v51  ;;  %v79_v57 = vld [vmem:[#allocation2 + $0x28] sm:$0xff] }
  0x24   :  { %s162_s25 = sadd.f32 %s1392_s3, %s161_s21  ;;  %s167_s26 = smul.f32 2.0, %s1395_s15  ;;  %v1885_v1 = vadd.f32 %v113_v58, %v89_v56  ;;  %v97_v7 = vld [vmem:[#allocation2 + $0xb8] sm:$0xff]  ;;  %v87_v58 = vld [vmem:[#allocation2 + $0x68] sm:$0xff] }
  0x25   :  { %s158_s27 = sadd.f32 %s157_s20, %s155_s23  ;;  %v121_v8 = vld [vmem:[#allocation5 + $0xb8] sm:$0xff] }
  0x26   :  { %s165_s28 = sadd.f32 %s164_s24, %s162_s25  ;;  %s170_s29 = smul.f32 2.0, %s1396_s18  ;;  %v1908_v21 = vadd.f32 %v121_v8, %v97_v7 }
  0x27   :  { %s1398_s0 = sld [smem:[#allocation7 + $0x1a]]  ;;  %v1820_v15 = vstv %s158_s27 }
  0x28   :  { %s168_s30 = sadd.f32 %s167_s26, %s165_s28  ;;  %v199_v26 = vmul.f32 %v1820_v15, %v1808_v10  ;;  %v201_v28 = vmul.f32 %v1820_v15, %v1814_v12  ;;  %v200_v48 = vmul.f32 %v1820_v15, %v1843_v32  ;;  %v202_v54 = vmul.f32 %v1820_v15, %v1847_v36 }
  0x29   :  { %s1798_s5 = sld [smem:[#allocation7 + $0x32]]  ;;  %v205_v18 = vmul.f32 %v1820_v15, %v1877_v61  ;;  %v206_v22 = vmul.f32 %v1820_v15, %v1883_v0 }
  0x2a   :  { %s171_s6 = sadd.f32 %s170_s29, %s168_s30 }
  0x2b   :  { %s1800_s1 = sld [smem:[#allocation7 + $0x4a]] }
  0x2c   :  { %s1802_s2 = sld [smem:[#allocation7 + $0x62]]  ;;  %v1822_v16 = vstv %s171_s6 }
  0x2d   :  { %s174_s7 = smul.f32 2.0, %s1398_s0  ;;  %s1804_s8 = sld [smem:[#allocation8]]  ;;  %v208_v27 = vmul.f32 %v1822_v16, %v1810_v11  ;;  %v210_v29 = vmul.f32 %v1822_v16, %v1816_v13  ;;  %v209_v52 = vmul.f32 %v1822_v16, %v1845_v35  ;;  %v211_v55 = vmul.f32 %v1822_v16, %v1849_v37 }
  0x2e   :  { %s1806_s9 = sld [smem:[#allocation8 + $0x8]]  ;;  %v214_v19 = vmul.f32 %v1822_v16, %v1879_v62  ;;  %v215_v23 = vmul.f32 %v1822_v16, %v1885_v1 }
  0x2f   :  { %s175_s10 = sadd.f32 %s1796_s22, %s174_s7  ;;  %s177_s3 = smul.f32 2.0, %s1798_s5  ;;  %v216_v40 = vadd.f32 %v208_v27, %v199_v26  ;;  %v218_v42 = vadd.f32 %v210_v29, %v201_v28  ;;  %v217_v2 = vadd.f32 %v209_v52, %v200_v48  ;;  %v219_v4 = vadd.f32 %v211_v55, %v202_v54  ;;  %v78_v26 = vld [vmem:[#allocation2 + $0x20] sm:$0xff] }
  0x30   :  { %s1818_s11 = sld [smem:[#allocation8 + $0x10]]  ;;  %v86_v27 = vld [vmem:[#allocation2 + $0x60] sm:$0xff]  ;;  %v222_v29 = vadd.f32 %v214_v19, %v205_v18  ;;  %v223_v39 = vadd.f32 %v215_v23, %v206_v22 }
  0x31   :  { %s178_s12 = sadd.f32 %s177_s3, %s175_s10  ;;  %s180_s13 = smul.f32 2.0, %s1800_s1  ;;  %v102_v28 = vld [vmem:[#allocation5 + $0x20] sm:$0xff]  ;;  %v1932_v44 = vadd.f32 %v110_v33, %v86_v27 }
  0x32   :  { %s183_s14 = smul.f32 2.0, %s1802_s2  ;;  %s1826_s15 = sld [smem:[#allocation8 + $0x18]]  ;;  %v1923_v34 = vadd.f32 %v102_v28, %v78_v26 }
  0x33   :  { %s181_s16 = sadd.f32 %s180_s13, %s178_s12  ;;  %s1758_s2 = smov 1   ;;  %v212_v50 = vmul.f32 %v1822_v16, %v1932_v44 }
  0x34   :  { %s187_s17 = smul.f32 2.0, %s1806_s9  ;;  %s1839_s18 = sld [smem:[#allocation8 + $0x20]]  ;;  %v203_v49 = vmul.f32 %v1820_v15, %v1923_v34 }
  0x35   :  { %s184_s19 = sadd.f32 %s183_s14, %s181_s16 }
  0x36   :  { %s188_s20 = sadd.f32 %s187_s17, %s1804_s8  ;;  %s190_s21 = smul.f32 2.0, %s1818_s11  ;;  %v220_v52 = vadd.f32 %v212_v50, %v203_v49 }
  0x37   :  { %v1853_v41 = vstv %s184_s19  ;;  %s1855_s22 = sld [smem:[#allocation7 + $0x3]] }
  0x38   :  { %s191_s23 = sadd.f32 %s190_s21, %s188_s20  ;;  %s193_s24 = smul.f32 2.0, %s1826_s15  ;;  %v225_v45 = vmul.f32 %v1853_v41, %v1836_v30  ;;  %v227_v46 = vmul.f32 %v1853_v41, %v1841_v31  ;;  %v226_v3 = vmul.f32 %v1853_v41, %v1862_v47  ;;  %v228_v5 = vmul.f32 %v1853_v41, %v1868_v53 }
  0x39   :  { %s1874_s25 = sld [smem:[#allocation7 + $0x1b]]  ;;  %v231_v38 = vmul.f32 %v1853_v41, %v1906_v20 }
  0x3a   :  { %s194_s26 = sadd.f32 %s193_s24, %s191_s23  ;;  %s196_s27 = smul.f32 2.0, %s1839_s18  ;;  %v233_v59 = vadd.f32 %v225_v45, %v216_v40  ;;  %v235_v60 = vadd.f32 %v227_v46, %v218_v42  ;;  %v234_v24 = vadd.f32 %v226_v3, %v217_v2  ;;  %v236_v25 = vadd.f32 %v228_v5, %v219_v4  ;;  %v94_v42 = vld [vmem:[#allocation2 + $0xa0] sm:$0xff]  ;;  %v95_v3 = vld [vmem:[#allocation2 + $0xa8] sm:$0xff] }
  0x3b   :  { %s1881_s28 = sld [smem:[#allocation7 + $0x33]]  ;;  %v232_v40 = vmul.f32 %v1853_v41, %v1908_v21  ;;  %v1936_v48 = vadd.f32 %v118_v43, %v94_v42  ;;  %v239_v54 = vadd.f32 %v231_v38, %v222_v29  ;;  %v119_v4 = vld [vmem:[#allocation5 + $0xa8] sm:$0xff] }
  0x3c   :  { %s197_s29 = sadd.f32 %s196_s27, %s194_s26  ;;  %v1964_v8 = vadd.f32 %v119_v4, %v95_v3 }
  0x3d   :  { %s1891_s0 = sld [smem:[#allocation7 + $0x4b]]  ;;  %v229_v51 = vmul.f32 %v1853_v41, %v1936_v48  ;;  %v240_v55 = vadd.f32 %v232_v40, %v223_v39 }
  0x3e   :  { %v1893_v9 = vstv %s197_s29  ;;  %s1895_s30 = sld [smem:[#allocation7 + $0x63]]  ;;  %v230_v18 = vmul.f32 %v1853_v41, %v1964_v8 }
  0x3f   :  { %v242_v14 = vadd.f32 %v1893_v9, %v233_v59  ;;  %v244_v17 = vadd.f32 %v1893_v9, %v235_v60  ;;  %s304_s5 = smul.f32 2.0, %s1874_s25  ;;  %s1904_s6 = sld [smem:[#allocation7 + $0x4]]  ;;  %v243_v45 = vadd.f32 %v1893_v9, %v234_v24  ;;  %v245_v46 = vadd.f32 %v1893_v9, %v236_v25  ;;  %v103_v59 = vld [vmem:[#allocation5 + $0x28] sm:$0xff]  ;;  %251 = vst.msk [vmem:[%s3324_s4] sm:$0xff] %vm250_vm0, %v1893_v9 }
  0x40   :  { %s1914_s1 = sld [smem:[#allocation7 + $0x1c]]  ;;  %v237_v56 = vadd.f32 %v229_v51, %v220_v52  ;;  %v111_v60 = vld [vmem:[#allocation5 + $0x68] sm:$0xff]  ;;  %v1956_v63 = vadd.f32 %v103_v59, %v79_v57  ;;  %v248_v6 = vadd.f32 %v1893_v9, %v239_v54  ;;  %v249_v7 = vadd.f32 %v1893_v9, %v240_v55  ;;  %252 = vst.msk [vmem:[%s3324_s4 + $0x8] sm:$0xff] %vm250_vm0, %v1893_v9 }
  0x41   :  { %269 = vrot.lane.b32.xlu0 %v242_v14, %s1758_s2  ;;  %273 = vrot.lane.b32.xlu1 %v244_v17, %s1758_s2  ;;  %s305_s7 = sadd.f32 %s1855_s22, %s304_s5  ;;  %s307_s8 = smul.f32 2.0, %s1881_s28  ;;  %v1960_v5 = vadd.f32 %v111_v60, %v87_v58  ;;  %253 = vst.msk [vmem:[%s3324_s4 + $0x10] sm:$0xff] %vm250_vm0, %v1893_v9 }
  0x42   :  { %s1920_s9 = sld [smem:[#allocation7 + $0x34]]  ;;  %v246_v2 = vadd.f32 %v1893_v9, %v237_v56  ;;  %v204_v14 = vmul.f32 %v1820_v15, %v1956_v63  ;;  %254 = vst.msk [vmem:[%s3324_s4 + $0x18] sm:$0xff] %vm250_vm0, %v1893_v9 }
  0x43   :  { %s308_s10 = sadd.f32 %s307_s8, %s305_s7  ;;  %s310_s3 = smul.f32 2.0, %s1891_s0  ;;  %v213_v17 = vmul.f32 %v1822_v16, %v1960_v5  ;;  %255 = vst.msk [vmem:[%s3324_s4 + $0x20] sm:$0xff] %vm250_vm0, %v1893_v9 }
  0x44   :  { %s313_s11 = smul.f32 2.0, %s1895_s30  ;;  %s1930_s12 = sld [smem:[#allocation7 + $0x4c]]  ;;  %277 = vrot.lane.b32.xlu2 %v246_v2, %s1758_s2  ;;  %256 = vst.msk [vmem:[%s3324_s4 + $0x28] sm:$0xff] %vm250_vm0, %v1893_v9 }
  0x45   :  { %s311_s13 = sadd.f32 %s310_s3, %s308_s10  ;;  %v221_v19 = vadd.f32 %v213_v17, %v204_v14  ;;  %257 = vst.msk [vmem:[%s3324_s4 + $0x30] sm:$0xff] %vm250_vm0, %v1893_v9 }
  0x46   :  { %s317_s14 = smul.f32 2.0, %s1914_s1  ;;  %s1941_s15 = sld [smem:[#allocation7 + $0x64]]  ;;  %258 = vst.msk [vmem:[%s3324_s4 + $0x38] sm:$0xff] %vm250_vm0, %v1893_v9 }
  0x47   :  { %s1945_s16 = sadd.f32 %s313_s11, %s311_s13  ;;  %v238_v15 = vadd.f32 %v230_v18, %v221_v19  ;;  %260 = vst.msk [vmem:[%s3324_s4 + $0x40] sm:$0x3] %vm259_vm2, %v1893_v9 }
  0x48   :  { %s318_s17 = sadd.f32 %s1904_s6, %s317_s14  ;;  %s320_s18 = smul.f32 2.0, %s1920_s9 }
  0x49   :  { %271 = vrot.lane.b32.xlu0 %v243_v45, %s1758_s2  ;;  %275 = vrot.lane.b32.xlu1 %v245_v46, %s1758_s2  ;;  %s1953_s19 = sld [smem:[#allocation7 + $0x5]]  ;;  %v1977_v22 = vstv %s1945_s16  ;;  %v247_v23 = vadd.f32 %v1893_v9, %v238_v15 }
  0x4a   :  { %s321_s20 = sadd.f32 %s320_s18, %s318_s17  ;;  %s323_s21 = smul.f32 2.0, %s1930_s12  ;;  %v356_v41 = vmul.f32 %v1977_v22, %v1843_v32  ;;  %v357_v25 = vmul.f32 %v1977_v22, %v1814_v12  ;;  %v359_v27 = vmul.f32 %v1977_v22, %v1923_v34  ;;  %v360_v38 = vmul.f32 %v1977_v22, %v1956_v63 }
  0x4b   :  { %s1417_s22 = sld [smem:[#allocation7 + $0x1d]]  ;;  %v355_v54 = vmul.f32 %v1977_v22, %v1808_v10  ;;  %v362_v59 = vmul.f32 %v1977_v22, %v1883_v0 }
  0x4c   :  { %s324_s23 = sadd.f32 %s323_s21, %s321_s20  ;;  %s326_s24 = smul.f32 2.0, %s1941_s15  ;;  %279 = vrot.lane.b32.xlu2 %v247_v23, %s1758_s2  ;;  %v358_v23 = vmul.f32 %v1977_v22, %v1847_v36 }
  0x4d   :  { %s1418_s25 = sld [smem:[#allocation7 + $0x35]] }
  0x4e   :  { %s327_s26 = sadd.f32 %s326_s24, %s324_s23 }
  0x4f   :  { %s1419_s27 = sld [smem:[#allocation7 + $0x4d]] }
  0x50   :  { %s1420_s28 = sld [smem:[#allocation7 + $0x65]]  ;;  %v1979_v16 = vstv %s327_s26 }
  0x51   :  { %281 = vrot.lane.b32.xlu0 %v248_v6, %s1758_s2  ;;  %283 = vrot.lane.b32.xlu1 %v249_v7, %s1758_s2  ;;  %s330_s29 = smul.f32 2.0, %s1417_s22  ;;  %s1421_s0 = sld [smem:[#allocation8 + $0x1]]  ;;  %v365_v24 = vmul.f32 %v1979_v16, %v1845_v35  ;;  %v366_v26 = vmul.f32 %v1979_v16, %v1816_v13  ;;  %v368_v42 = vmul.f32 %v1979_v16, %v1932_v44 }
  0x52   :  { %s1422_s30 = sld [smem:[#allocation8 + $0x9]]  ;;  %v369_v43 = vmul.f32 %v1979_v16, %v1960_v5  ;;  %v364_v55 = vmul.f32 %v1979_v16, %v1810_v11  ;;  %v371_v60 = vmul.f32 %v1979_v16, %v1885_v1 }
  0x53   :  { %s331_s5 = sadd.f32 %s1953_s19, %s330_s29  ;;  %s333_s6 = smul.f32 2.0, %s1418_s25  ;;  %v373_v28 = vadd.f32 %v365_v24, %v356_v41  ;;  %v374_v33 = vadd.f32 %v366_v26, %v357_v25  ;;  %v376_v49 = vadd.f32 %v368_v42, %v359_v27  ;;  %v367_v41 = vmul.f32 %v1979_v16, %v1849_v37 }
  0x54   :  { %s1423_s1 = sld [smem:[#allocation8 + $0x11]]  ;;  %v377_v50 = vadd.f32 %v369_v43, %v360_v38  ;;  %v372_v2 = vadd.f32 %v364_v55, %v355_v54  ;;  %v379_v14 = vadd.f32 %v371_v60, %v362_v59  ;;  %v361_v38 = vmul.f32 %v1977_v22, %v1877_v61 }
  0x55   :  { %s334_s7 = sadd.f32 %s333_s6, %s331_s5  ;;  %s336_s8 = smul.f32 2.0, %s1419_s27  ;;  %v375_v24 = vadd.f32 %v367_v41, %v358_v23 }
  0x56   :  { %s339_s9 = smul.f32 2.0, %s1420_s28  ;;  %s1424_s10 = sld [smem:[#allocation8 + $0x19]] }
  0x57   :  { %s337_s3 = sadd.f32 %s336_s8, %s334_s7 }
  0x58   :  { %s343_s11 = smul.f32 2.0, %s1422_s30  ;;  %s1425_s12 = sld [smem:[#allocation8 + $0x21]] }
  0x59   :  { %s340_s13 = sadd.f32 %s339_s9, %s337_s3 }
  0x5a   :  { %s344_s14 = sadd.f32 %s1421_s0, %s343_s11  ;;  %s346_s15 = smul.f32 2.0, %s1423_s1 }
  0x5b   :  { %v1993_v29 = vstv %s340_s13  ;;  %s1997_s16 = sld [smem:[#allocation7 + $0x6]] }
  0x5c   :  { %s347_s17 = sadd.f32 %s346_s15, %s344_s14  ;;  %s349_s18 = smul.f32 2.0, %s1424_s10  ;;  %v382_v39 = vmul.f32 %v1993_v29, %v1862_v47  ;;  %v383_v40 = vmul.f32 %v1993_v29, %v1841_v31  ;;  %v385_v51 = vmul.f32 %v1993_v29, %v1936_v48  ;;  %v386_v52 = vmul.f32 %v1993_v29, %v1964_v8 }
  0x5d   :  { %s2007_s19 = sld [smem:[#allocation7 + $0x1e]]  ;;  %v381_v3 = vmul.f32 %v1993_v29, %v1836_v30  ;;  %v388_v17 = vmul.f32 %v1993_v29, %v1908_v21  ;;  %v384_v25 = vmul.f32 %v1993_v29, %v1868_v53  ;;  %v387_v42 = vmul.f32 %v1993_v29, %v1906_v20 }
  0x5e   :  { %s350_s20 = sadd.f32 %s349_s18, %s347_s17  ;;  %s352_s21 = smul.f32 2.0, %s1425_s12  ;;  %v390_v45 = vadd.f32 %v382_v39, %v373_v28  ;;  %v391_v46 = vadd.f32 %v383_v40, %v374_v33  ;;  %v393_v4 = vadd.f32 %v385_v51, %v376_v49  ;;  %v394_v6 = vadd.f32 %v386_v52, %v377_v50 }
  0x5f   :  { %s2009_s22 = sld [smem:[#allocation7 + $0x36]]  ;;  %v389_v7 = vadd.f32 %v381_v3, %v372_v2  ;;  %v396_v26 = vadd.f32 %v388_v17, %v379_v14  ;;  %v392_v27 = vadd.f32 %v384_v25, %v375_v24  ;;  %v370_v39 = vmul.f32 %v1979_v16, %v1879_v62 }
  0x60   :  { %s353_s23 = sadd.f32 %s352_s21, %s350_s20 }
  0x61   :  { %s2015_s24 = sld [smem:[#allocation7 + $0x4e]]  ;;  %v378_v40 = vadd.f32 %v370_v39, %v361_v38 }
  0x62   :  { %v2021_v56 = vstv %s353_s23  ;;  %s2023_s25 = sld [smem:[#allocation7 + $0x66]] }
  0x63   :  { %v399_v57 = vadd.f32 %v2021_v56, %v390_v45  ;;  %v400_v58 = vadd.f32 %v2021_v56, %v391_v46  ;;  %s458_s26 = smul.f32 2.0, %s2007_s19  ;;  %s2028_s27 = sld [smem:[#allocation7 + $0x7]]  ;;  %v398_v18 = vadd.f32 %v2021_v56, %v389_v7  ;;  %v402_v19 = vadd.f32 %v2021_v56, %v393_v4  ;;  %1426 = vst.msk [vmem:[%s3324_s4 + $0x48] sm:$0xff] %vm250_vm0, %v2021_v56 }
  0x64   :  { %s2034_s28 = sld [smem:[#allocation7 + $0x1f]]  ;;  %v403_v15 = vadd.f32 %v2021_v56, %v394_v6  ;;  %v401_v28 = vadd.f32 %v2021_v56, %v392_v27  ;;  %v405_v33 = vadd.f32 %v2021_v56, %v396_v26  ;;  %v395_v43 = vadd.f32 %v387_v42, %v378_v40  ;;  %1427 = vst.msk [vmem:[%s3324_s4 + $0x50] sm:$0xff] %vm250_vm0, %v2021_v56 }
  0x65   :  { %426 = vrot.lane.b32.xlu0 %v399_v57, %s1758_s2  ;;  %428 = vrot.lane.b32.xlu1 %v400_v58, %s1758_s2  ;;  %s459_s29 = sadd.f32 %s1997_s16, %s458_s26  ;;  %s461_s0 = smul.f32 2.0, %s2009_s22  ;;  %1428 = vst.msk [vmem:[%s3324_s4 + $0x58] sm:$0xff] %vm250_vm0, %v2021_v56 }
  0x66   :  { %s1450_s30 = sld [smem:[#allocation7 + $0x37]]  ;;  %424 = vrot.lane.b32.xlu2 %v398_v18, %s1758_s2  ;;  %v404_v45 = vadd.f32 %v2021_v56, %v395_v43  ;;  %1429 = vst.msk [vmem:[%s3324_s4 + $0x60] sm:$0xff] %vm250_vm0, %v2021_v56 }
  0x67   :  { %s462_s5 = sadd.f32 %s461_s0, %s459_s29  ;;  %s464_s6 = smul.f32 2.0, %s2015_s24  ;;  %1430 = vst.msk [vmem:[%s3324_s4 + $0x68] sm:$0xff] %vm250_vm0, %v2021_v56 }
  0x68   :  { %s467_s1 = smul.f32 2.0, %s2023_s25  ;;  %s1451_s7 = sld [smem:[#allocation7 + $0x4f]]  ;;  %1431 = vst.msk [vmem:[%s3324_s4 + $0x70] sm:$0xff] %vm250_vm0, %v2021_v56 }
  0x69   :  { %s465_s8 = sadd.f32 %s464_s6, %s462_s5  ;;  %1432 = vst.msk [vmem:[%s3324_s4 + $0x78] sm:$0xff] %vm250_vm0, %v2021_v56 }
  0x6a   :  { %s471_s9 = smul.f32 2.0, %s2034_s28  ;;  %s1452_s10 = sld [smem:[#allocation7 + $0x67]]  ;;  %1433 = vst.msk [vmem:[%s3324_s4 + $0x80] sm:$0xff] %vm250_vm0, %v2021_v56 }
  0x6b   :  { %s2055_s3 = sadd.f32 %s467_s1, %s465_s8  ;;  %1434 = vst.msk [vmem:[%s3324_s4 + $0x88] sm:$0x3] %vm259_vm2, %v2021_v56 }
  0x6c   :  { %s472_s11 = sadd.f32 %s2028_s27, %s471_s9  ;;  %s474_s12 = smul.f32 2.0, %s1450_s30 }
  0x6d   :  { %432 = vrot.lane.b32.xlu0 %v402_v19, %s1758_s2  ;;  %434 = vrot.lane.b32.xlu1 %v403_v15, %s1758_s2  ;;  %s1453_s13 = sld [smem:[#allocation7 + $0x8]]  ;;  %v2073_v22 = vstv %s2055_s3 }
  0x6e   :  { %s475_s14 = sadd.f32 %s474_s12, %s472_s11  ;;  %s477_s15 = smul.f32 2.0, %s1451_s7  ;;  %430 = vrot.lane.b32.xlu2 %v401_v28, %s1758_s2  ;;  %v509_v29 = vmul.f32 %v2073_v22, %v1808_v10  ;;  %v511_v49 = vmul.f32 %v2073_v22, %v1814_v12  ;;  %v512_v58 = vmul.f32 %v2073_v22, %v1847_v36  ;;  %v514_v60 = vmul.f32 %v2073_v22, %v1956_v63 }
  0x6f   :  { %s1454_s16 = sld [smem:[#allocation7 + $0x20]]  ;;  %v515_v41 = vmul.f32 %v2073_v22, %v1877_v61  ;;  %v510_v38 = vmul.f32 %v2073_v22, %v1843_v32 }
  0x70   :  { %s478_s17 = sadd.f32 %s477_s15, %s475_s14  ;;  %s480_s18 = smul.f32 2.0, %s1452_s10 }
  0x71   :  { %s1455_s19 = sld [smem:[#allocation7 + $0x38]] }
  0x72   :  { %s481_s20 = sadd.f32 %s480_s18, %s478_s17 }
  0x73   :  { %s1456_s21 = sld [smem:[#allocation7 + $0x50]] }
  0x74   :  { %s1457_s22 = sld [smem:[#allocation7 + $0x68]]  ;;  %v2075_v16 = vstv %s481_s20 }
  0x75   :  { %438 = vrot.lane.b32.xlu0 %v405_v33, %s1758_s2  ;;  %s484_s23 = smul.f32 2.0, %s1454_s16  ;;  %s1458_s24 = sld [smem:[#allocation8 + $0x2]]  ;;  %v518_v46 = vmul.f32 %v2075_v16, %v1810_v11  ;;  %v520_v50 = vmul.f32 %v2075_v16, %v1816_v13  ;;  %v521_v59 = vmul.f32 %v2075_v16, %v1849_v37  ;;  %v523_v2 = vmul.f32 %v2075_v16, %v1960_v5 }
  0x76   :  { %s1459_s25 = sld [smem:[#allocation8 + $0xa]]  ;;  %436 = vrot.lane.b32.xlu2 %v404_v45, %s1758_s2  ;;  %v524_v24 = vmul.f32 %v2075_v16, %v1879_v62  ;;  %v519_v39 = vmul.f32 %v2075_v16, %v1845_v35 }
  0x77   :  { %s485_s26 = sadd.f32 %s1453_s13, %s484_s23  ;;  %s487_s27 = smul.f32 2.0, %s1455_s19  ;;  %v526_v51 = vadd.f32 %v518_v46, %v509_v29  ;;  %v528_v54 = vadd.f32 %v520_v50, %v511_v49  ;;  %v529_v6 = vadd.f32 %v521_v59, %v512_v58  ;;  %v531_v14 = vadd.f32 %v523_v2, %v514_v60 }
  0x78   :  { %s1460_s28 = sld [smem:[#allocation8 + $0x12]]  ;;  %v532_v27 = vadd.f32 %v524_v24, %v515_v41  ;;  %v527_v42 = vadd.f32 %v519_v39, %v510_v38  ;;  %v513_v49 = vmul.f32 %v2073_v22, %v1923_v34  ;;  %v522_v50 = vmul.f32 %v2075_v16, %v1932_v44 }
  0x79   :  { %s488_s29 = sadd.f32 %s487_s27, %s485_s26  ;;  %s490_s0 = smul.f32 2.0, %s1456_s21  ;;  %v516_v60 = vmul.f32 %v2073_v22, %v1883_v0  ;;  %v525_v2 = vmul.f32 %v2075_v16, %v1885_v1 }
  0x7a   :  { %s493_s30 = smul.f32 2.0, %s1457_s22  ;;  %s1461_s5 = sld [smem:[#allocation8 + $0x1a]] }
  0x7b   :  { %s491_s6 = sadd.f32 %s490_s0, %s488_s29 }
  0x7c   :  { %s497_s1 = smul.f32 2.0, %s1459_s25  ;;  %s1462_s7 = sld [smem:[#allocation8 + $0x22]] }
  0x7d   :  { %s494_s8 = sadd.f32 %s493_s30, %s491_s6 }
  0x7e   :  { %s498_s9 = sadd.f32 %s1458_s24, %s497_s1  ;;  %s500_s10 = smul.f32 2.0, %s1460_s28 }
  0x7f   :  { %v2087_v52 = vstv %s494_s8  ;;  %s2089_s3 = sld [smem:[#allocation7 + $0x9]] }
  0x80   :  { %s501_s11 = sadd.f32 %s500_s10, %s498_s9  ;;  %s503_s12 = smul.f32 2.0, %s1461_s5  ;;  %v535_v55 = vmul.f32 %v2087_v52, %v1836_v30  ;;  %v537_v57 = vmul.f32 %v2087_v52, %v1841_v31  ;;  %v538_v7 = vmul.f32 %v2087_v52, %v1868_v53  ;;  %v540_v17 = vmul.f32 %v2087_v52, %v1964_v8 }
  0x81   :  { %s1481_s13 = sld [smem:[#allocation7 + $0x21]]  ;;  %v541_v28 = vmul.f32 %v2087_v52, %v1906_v20  ;;  %v536_v40 = vmul.f32 %v2087_v52, %v1862_v47 }
  0x82   :  { %s504_s14 = sadd.f32 %s503_s12, %s501_s11  ;;  %s506_s15 = smul.f32 2.0, %s1462_s7  ;;  %v543_v3 = vadd.f32 %v535_v55, %v526_v51  ;;  %v545_v4 = vadd.f32 %v537_v57, %v528_v54  ;;  %v546_v23 = vadd.f32 %v538_v7, %v529_v6  ;;  %v548_v25 = vadd.f32 %v540_v17, %v531_v14 }
  0x83   :  { %s1482_s16 = sld [smem:[#allocation7 + $0x39]]  ;;  %v549_v43 = vadd.f32 %v541_v28, %v532_v27  ;;  %v544_v45 = vadd.f32 %v536_v40, %v527_v42  ;;  %v539_v51 = vmul.f32 %v2087_v52, %v1936_v48  ;;  %v530_v54 = vadd.f32 %v522_v50, %v513_v49 }
  0x84   :  { %s507_s17 = sadd.f32 %s506_s15, %s504_s14  ;;  %v533_v7 = vadd.f32 %v525_v2, %v516_v60 }
  0x85   :  { %s1483_s18 = sld [smem:[#allocation7 + $0x51]]  ;;  %v547_v55 = vadd.f32 %v539_v51, %v530_v54 }
  0x86   :  { %v2107_v18 = vstv %s507_s17  ;;  %s2109_s19 = sld [smem:[#allocation7 + $0x69]] }
  0x87   :  { %v552_v19 = vadd.f32 %v2107_v18, %v543_v3  ;;  %v554_v15 = vadd.f32 %v2107_v18, %v545_v4  ;;  %s612_s20 = smul.f32 2.0, %s1481_s13  ;;  %s1485_s21 = sld [smem:[#allocation7 + $0xa]]  ;;  %v555_v26 = vadd.f32 %v2107_v18, %v546_v23  ;;  %v557_v33 = vadd.f32 %v2107_v18, %v548_v25  ;;  %1463 = vst.msk [vmem:[%s3324_s4 + $0x90] sm:$0xff] %vm250_vm0, %v2107_v18 }
  0x88   :  { %s1486_s22 = sld [smem:[#allocation7 + $0x22]]  ;;  %v553_v29 = vadd.f32 %v2107_v18, %v544_v45  ;;  %v558_v46 = vadd.f32 %v2107_v18, %v549_v43  ;;  %v556_v59 = vadd.f32 %v2107_v18, %v547_v55  ;;  %v542_v4 = vmul.f32 %v2087_v52, %v1908_v21  ;;  %1464 = vst.msk [vmem:[%s3324_s4 + $0x98] sm:$0xff] %vm250_vm0, %v2107_v18 }
  0x89   :  { %578 = vrot.lane.b32.xlu1 %v552_v19, %s1758_s2  ;;  %582 = vrot.lane.b32.xlu0 %v554_v15, %s1758_s2  ;;  %s613_s23 = sadd.f32 %s2089_s3, %s612_s20  ;;  %s615_s24 = smul.f32 2.0, %s1482_s16  ;;  %1465 = vst.msk [vmem:[%s3324_s4 + $0xa0] sm:$0xff] %vm250_vm0, %v2107_v18 }
  0x8a   :  { %s1487_s25 = sld [smem:[#allocation7 + $0x3a]]  ;;  %580 = vrot.lane.b32.xlu2 %v553_v29, %s1758_s2  ;;  %v550_v14 = vadd.f32 %v542_v4, %v533_v7  ;;  %1466 = vst.msk [vmem:[%s3324_s4 + $0xa8] sm:$0xff] %vm250_vm0, %v2107_v18 }
  0x8b   :  { %s616_s26 = sadd.f32 %s615_s24, %s613_s23  ;;  %s618_s27 = smul.f32 2.0, %s1483_s18  ;;  %1467 = vst.msk [vmem:[%s3324_s4 + $0xb0] sm:$0xff] %vm250_vm0, %v2107_v18 }
  0x8c   :  { %s621_s28 = smul.f32 2.0, %s2109_s19  ;;  %s1488_s29 = sld [smem:[#allocation7 + $0x52]]  ;;  %v559_v15 = vadd.f32 %v2107_v18, %v550_v14  ;;  %1468 = vst.msk [vmem:[%s3324_s4 + $0xb8] sm:$0xff] %vm250_vm0, %v2107_v18 }
  0x8d   :  { %s619_s0 = sadd.f32 %s618_s27, %s616_s26  ;;  %1469 = vst.msk [vmem:[%s3324_s4 + $0xc0] sm:$0xff] %vm250_vm0, %v2107_v18 }
  0x8e   :  { %s625_s30 = smul.f32 2.0, %s1486_s22  ;;  %s1489_s5 = sld [smem:[#allocation7 + $0x6a]]  ;;  %1470 = vst.msk [vmem:[%s3324_s4 + $0xc8] sm:$0xff] %vm250_vm0, %v2107_v18 }
  0x8f   :  { %s2131_s6 = sadd.f32 %s621_s28, %s619_s0  ;;  %1471 = vst.msk [vmem:[%s3324_s4 + $0xd0] sm:$0x3] %vm259_vm2, %v2107_v18 }
  0x90   :  { %s626_s1 = sadd.f32 %s1485_s21, %s625_s30  ;;  %s628_s7 = smul.f32 2.0, %s1487_s25 }
  0x91   :  { %584 = vrot.lane.b32.xlu1 %v555_v26, %s1758_s2  ;;  %588 = vrot.lane.b32.xlu0 %v557_v33, %s1758_s2  ;;  %s1490_s8 = sld [smem:[#allocation7 + $0xb]]  ;;  %v2148_v57 = vstv %s2131_s6 }
  0x92   :  { %s629_s9 = sadd.f32 %s628_s7, %s626_s1  ;;  %s631_s10 = smul.f32 2.0, %s1488_s29  ;;  %v663_v3 = vmul.f32 %v2148_v57, %v1808_v10  ;;  %586 = vrot.lane.b32.xlu2 %v556_v59, %s1758_s2  ;;  %v664_v22 = vmul.f32 %v2148_v57, %v1843_v32  ;;  %v666_v24 = vmul.f32 %v2148_v57, %v1847_v36  ;;  %v667_v26 = vmul.f32 %v2148_v57, %v1923_v34 }
  0x93   :  { %s1491_s3 = sld [smem:[#allocation7 + $0x23]]  ;;  %v670_v51 = vmul.f32 %v2148_v57, %v1883_v0 }
  0x94   :  { %s632_s11 = sadd.f32 %s631_s10, %s629_s9  ;;  %s634_s12 = smul.f32 2.0, %s1489_s5 }
  0x95   :  { %s1492_s13 = sld [smem:[#allocation7 + $0x3b]] }
  0x96   :  { %s635_s14 = sadd.f32 %s634_s12, %s632_s11 }
  0x97   :  { %s1493_s15 = sld [smem:[#allocation7 + $0x53]] }
  0x98   :  { %s2144_s16 = sld [smem:[#allocation7 + $0x6b]]  ;;  %v2152_v58 = vstv %s635_s14 }
  0x99   :  { %590 = vrot.lane.b32.xlu1 %v558_v46, %s1758_s2  ;;  %s638_s17 = smul.f32 2.0, %s1491_s3  ;;  %s1495_s18 = sld [smem:[#allocation8 + $0x3]]  ;;  %v672_v6 = vmul.f32 %v2152_v58, %v1810_v11  ;;  %v673_v16 = vmul.f32 %v2152_v58, %v1845_v35  ;;  %v675_v25 = vmul.f32 %v2152_v58, %v1849_v37  ;;  %v676_v27 = vmul.f32 %v2152_v58, %v1932_v44 }
  0x9a   :  { %s1496_s19 = sld [smem:[#allocation8 + $0xb]]  ;;  %592 = vrot.lane.b32.xlu2 %v559_v15, %s1758_s2  ;;  %v669_v46 = vmul.f32 %v2148_v57, %v1877_v61  ;;  %v678_v49 = vmul.f32 %v2152_v58, %v1879_v62  ;;  %v679_v54 = vmul.f32 %v2152_v58, %v1885_v1 }
  0x9b   :  { %s639_s20 = sadd.f32 %s1490_s8, %s638_s17  ;;  %s641_s21 = smul.f32 2.0, %s1492_s13  ;;  %v680_v17 = vadd.f32 %v672_v6, %v663_v3  ;;  %v681_v19 = vadd.f32 %v673_v16, %v664_v22  ;;  %v683_v38 = vadd.f32 %v675_v25, %v666_v24  ;;  %v684_v40 = vadd.f32 %v676_v27, %v667_v26 }
  0x9c   :  { %s2150_s22 = sld [smem:[#allocation8 + $0x13]]  ;;  %v686_v59 = vadd.f32 %v678_v49, %v669_v46  ;;  %v687_v3 = vadd.f32 %v679_v54, %v670_v51  ;;  %v665_v22 = vmul.f32 %v2148_v57, %v1814_v12  ;;  %v674_v16 = vmul.f32 %v2152_v58, %v1816_v13 }
  0x9d   :  { %s642_s23 = sadd.f32 %s641_s21, %s639_s20  ;;  %s644_s24 = smul.f32 2.0, %s1493_s15  ;;  %v668_v25 = vmul.f32 %v2148_v57, %v1956_v63  ;;  %v677_v26 = vmul.f32 %v2152_v58, %v1960_v5 }
  0x9e   :  { %s647_s25 = smul.f32 2.0, %s2144_s16  ;;  %s2160_s26 = sld [smem:[#allocation8 + $0x1b]]  ;;  %v682_v14 = vadd.f32 %v674_v16, %v665_v22 }
  0x9f   :  { %s645_s27 = sadd.f32 %s644_s24, %s642_s23 }
  0xa0   :  { %s651_s28 = smul.f32 2.0, %s1496_s19  ;;  %s1499_s29 = sld [smem:[#allocation8 + $0x23]] }
  0xa1   :  { %s648_s0 = sadd.f32 %s647_s25, %s645_s27 }
  0xa2   :  { %s652_s30 = sadd.f32 %s1495_s18, %s651_s28  ;;  %s654_s5 = smul.f32 2.0, %s2150_s22 }
  0xa3   :  { %v2174_v52 = vstv %s648_s0  ;;  %s2177_s6 = sld [smem:[#allocation7 + $0xc]] }
  0xa4   :  { %s655_s1 = sadd.f32 %s654_s5, %s652_s30  ;;  %s657_s7 = smul.f32 2.0, %s2160_s26  ;;  %v689_v23 = vmul.f32 %v2174_v52, %v1836_v30  ;;  %v690_v41 = vmul.f32 %v2174_v52, %v1862_v47  ;;  %v692_v39 = vmul.f32 %v2174_v52, %v1868_v53  ;;  %v693_v42 = vmul.f32 %v2174_v52, %v1936_v48 }
  0xa5   :  { %s2192_s8 = sld [smem:[#allocation7 + $0x24]]  ;;  %v695_v2 = vmul.f32 %v2174_v52, %v1906_v20  ;;  %v696_v4 = vmul.f32 %v2174_v52, %v1908_v21  ;;  %v691_v7 = vmul.f32 %v2174_v52, %v1841_v31  ;;  %v694_v27 = vmul.f32 %v2174_v52, %v1964_v8 }
  0xa6   :  { %s658_s9 = sadd.f32 %s657_s7, %s655_s1  ;;  %s660_s10 = smul.f32 2.0, %s1499_s29  ;;  %v697_v28 = vadd.f32 %v689_v23, %v680_v17  ;;  %v698_v33 = vadd.f32 %v690_v41, %v681_v19  ;;  %v700_v50 = vadd.f32 %v692_v39, %v683_v38  ;;  %v701_v55 = vadd.f32 %v693_v42, %v684_v40 }
  0xa7   :  { %s1519_s3 = sld [smem:[#allocation7 + $0x3c]]  ;;  %v703_v17 = vadd.f32 %v695_v2, %v686_v59  ;;  %v704_v19 = vadd.f32 %v696_v4, %v687_v3  ;;  %v699_v15 = vadd.f32 %v691_v7, %v682_v14 }
  0xa8   :  { %s661_s11 = sadd.f32 %s660_s10, %s658_s9 }
  0xa9   :  { %s2199_s12 = sld [smem:[#allocation7 + $0x54]] }
  0xaa   :  { %v2201_v43 = vstv %s661_s11  ;;  %s2203_s13 = sld [smem:[#allocation7 + $0x6c]] }
  0xab   :  { %v706_v45 = vadd.f32 %v2201_v43, %v697_v28  ;;  %v707_v29 = vadd.f32 %v2201_v43, %v698_v33  ;;  %s766_s14 = smul.f32 2.0, %s2192_s8  ;;  %s2212_s15 = sld [smem:[#allocation7 + $0xd]]  ;;  %v709_v60 = vadd.f32 %v2201_v43, %v700_v50  ;;  %v710_v6 = vadd.f32 %v2201_v43, %v701_v55  ;;  %1500 = vst.msk [vmem:[%s3324_s4 + $0xd8] sm:$0xff] %vm250_vm0, %v2201_v43 }
  0xac   :  { %s1523_s16 = sld [smem:[#allocation7 + $0x25]]  ;;  %v708_v23 = vadd.f32 %v2201_v43, %v699_v15  ;;  %v712_v41 = vadd.f32 %v2201_v43, %v703_v17  ;;  %v713_v24 = vadd.f32 %v2201_v43, %v704_v19  ;;  %v685_v28 = vadd.f32 %v677_v26, %v668_v25  ;;  %1501 = vst.msk [vmem:[%s3324_s4 + $0xe0] sm:$0xff] %vm250_vm0, %v2201_v43 }
  0xad   :  { %732 = vrot.lane.b32.xlu0 %v706_v45, %s1758_s2  ;;  %734 = vrot.lane.b32.xlu1 %v707_v29, %s1758_s2  ;;  %s767_s17 = sadd.f32 %s2177_s6, %s766_s14  ;;  %s769_s18 = smul.f32 2.0, %s1519_s3  ;;  %1502 = vst.msk [vmem:[%s3324_s4 + $0xe8] sm:$0xff] %vm250_vm0, %v2201_v43 }
  0xae   :  { %s1524_s19 = sld [smem:[#allocation7 + $0x3d]]  ;;  %736 = vrot.lane.b32.xlu2 %v708_v23, %s1758_s2  ;;  %v702_v33 = vadd.f32 %v694_v27, %v685_v28  ;;  %1503 = vst.msk [vmem:[%s3324_s4 + $0xf0] sm:$0xff] %vm250_vm0, %v2201_v43 }
  0xaf   :  { %s770_s20 = sadd.f32 %s769_s18, %s767_s17  ;;  %s772_s21 = smul.f32 2.0, %s2199_s12  ;;  %1504 = vst.msk [vmem:[%s3324_s4 + $0xf8] sm:$0xff] %vm250_vm0, %v2201_v43 }
  0xb0   :  { %s775_s22 = smul.f32 2.0, %s2203_s13  ;;  %s1525_s23 = sld [smem:[#allocation7 + $0x55]]  ;;  %v711_v52 = vadd.f32 %v2201_v43, %v702_v33  ;;  %1505 = vst.msk [vmem:[%s3324_s4 + $0x100] sm:$0xff] %vm250_vm0, %v2201_v43 }
  0xb1   :  { %s773_s24 = sadd.f32 %s772_s21, %s770_s20  ;;  %1506 = vst.msk [vmem:[%s3324_s4 + $0x108] sm:$0xff] %vm250_vm0, %v2201_v43 }
  0xb2   :  { %s779_s25 = smul.f32 2.0, %s1523_s16  ;;  %s1526_s26 = sld [smem:[#allocation7 + $0x6d]]  ;;  %1507 = vst.msk [vmem:[%s3324_s4 + $0x110] sm:$0xff] %vm250_vm0, %v2201_v43 }
  0xb3   :  { %s2235_s27 = sadd.f32 %s775_s22, %s773_s24  ;;  %1508 = vst.msk [vmem:[%s3324_s4 + $0x118] sm:$0x3] %vm259_vm2, %v2201_v43 }
  0xb4   :  { %s780_s28 = sadd.f32 %s2212_s15, %s779_s25  ;;  %s782_s29 = smul.f32 2.0, %s1524_s19 }
  0xb5   :  { %738 = vrot.lane.b32.xlu0 %v709_v60, %s1758_s2  ;;  %740 = vrot.lane.b32.xlu1 %v710_v6, %s1758_s2  ;;  %s1527_s0 = sld [smem:[#allocation7 + $0xe]]  ;;  %v2253_v57 = vstv %s2235_s27 }
  0xb6   :  { %s783_s30 = sadd.f32 %s782_s29, %s780_s28  ;;  %s785_s5 = smul.f32 2.0, %s1525_s23  ;;  %742 = vrot.lane.b32.xlu2 %v711_v52, %s1758_s2  ;;  %v818_v38 = vmul.f32 %v2253_v57, %v1843_v32  ;;  %v819_v40 = vmul.f32 %v2253_v57, %v1814_v12  ;;  %v821_v45 = vmul.f32 %v2253_v57, %v1923_v34  ;;  %v822_v50 = vmul.f32 %v2253_v57, %v1956_v63 }
  0xb7   :  { %s1528_s6 = sld [smem:[#allocation7 + $0x26]]  ;;  %v817_v16 = vmul.f32 %v2253_v57, %v1808_v10  ;;  %v824_v15 = vmul.f32 %v2253_v57, %v1883_v0 }
  0xb8   :  { %s786_s1 = sadd.f32 %s785_s5, %s783_s30  ;;  %s788_s7 = smul.f32 2.0, %s1526_s26 }
  0xb9   :  { %s1529_s8 = sld [smem:[#allocation7 + $0x3e]] }
  0xba   :  { %s789_s9 = sadd.f32 %s788_s7, %s786_s1 }
  0xbb   :  { %s1530_s10 = sld [smem:[#allocation7 + $0x56]] }
  0xbc   :  { %s1531_s3 = sld [smem:[#allocation7 + $0x6e]]  ;;  %v2255_v58 = vstv %s789_s9 }
  0xbd   :  { %744 = vrot.lane.b32.xlu0 %v712_v41, %s1758_s2  ;;  %746 = vrot.lane.b32.xlu1 %v713_v24, %s1758_s2  ;;  %s792_s11 = smul.f32 2.0, %s1528_s6  ;;  %s1532_s12 = sld [smem:[#allocation8 + $0x4]]  ;;  %v827_v39 = vmul.f32 %v2255_v58, %v1845_v35  ;;  %v828_v42 = vmul.f32 %v2255_v58, %v1816_v13  ;;  %v830_v55 = vmul.f32 %v2255_v58, %v1932_v44 }
  0xbe   :  { %s1533_s13 = sld [smem:[#allocation8 + $0xc]]  ;;  %v831_v59 = vmul.f32 %v2255_v58, %v1960_v5  ;;  %v826_v7 = vmul.f32 %v2255_v58, %v1810_v11  ;;  %v833_v23 = vmul.f32 %v2255_v58, %v1885_v1 }
  0xbf   :  { %s793_s14 = sadd.f32 %s1527_s0, %s792_s11  ;;  %s795_s15 = smul.f32 2.0, %s1529_s8  ;;  %v835_v29 = vadd.f32 %v827_v39, %v818_v38  ;;  %v836_v49 = vadd.f32 %v828_v42, %v819_v40  ;;  %v838_v3 = vadd.f32 %v830_v55, %v821_v45  ;;  %v270_v40 = vpop.permute.xlu0 %269  ;;  %v820_v42 = vmul.f32 %v2253_v57, %v1847_v36 }
  0xc0   :  { %s1534_s16 = sld [smem:[#allocation8 + $0x14]]  ;;  %v839_v6 = vadd.f32 %v831_v59, %v822_v50  ;;  %v834_v25 = vadd.f32 %v826_v7, %v817_v16  ;;  %v841_v28 = vadd.f32 %v833_v23, %v824_v15  ;;  %v829_v45 = vmul.f32 %v2255_v58, %v1849_v37  ;;  %294 = vst.msk [vmem:[%s3324_s4 + $0x1] sm:$0xff] %vm293_vm1, %v270_v40 }
  0xc1   :  { %s796_s17 = sadd.f32 %s795_s15, %s793_s14  ;;  %s798_s18 = smul.f32 2.0, %s1530_s10 }
  0xc2   :  { %s801_s19 = smul.f32 2.0, %s1531_s3  ;;  %s1535_s20 = sld [smem:[#allocation8 + $0x1c]] }
  0xc3   :  { %s799_s21 = sadd.f32 %s798_s18, %s796_s17 }
  0xc4   :  { %s805_s22 = smul.f32 2.0, %s1533_s13  ;;  %s1536_s23 = sld [smem:[#allocation8 + $0x24]] }
  0xc5   :  { %s802_s24 = sadd.f32 %s801_s19, %s799_s21 }
  0xc6   :  { %s806_s25 = sadd.f32 %s1532_s12, %s805_s22  ;;  %s808_s26 = smul.f32 2.0, %s1534_s16 }
  0xc7   :  { %v2269_v46 = vstv %s802_s24  ;;  %s2273_s27 = sld [smem:[#allocation7 + $0xf]] }
  0xc8   :  { %s809_s28 = sadd.f32 %s808_s26, %s806_s25  ;;  %s811_s29 = smul.f32 2.0, %s1535_s20  ;;  %v844_v51 = vmul.f32 %v2269_v46, %v1862_v47  ;;  %v845_v54 = vmul.f32 %v2269_v46, %v1841_v31  ;;  %v847_v4 = vmul.f32 %v2269_v46, %v1936_v48  ;;  %v848_v22 = vmul.f32 %v2269_v46, %v1964_v8 }
  0xc9   :  { %s2283_s0 = sld [smem:[#allocation7 + $0x27]]  ;;  %v843_v26 = vmul.f32 %v2269_v46, %v1836_v30  ;;  %v850_v38 = vmul.f32 %v2269_v46, %v1908_v21 }
  0xca   :  { %s812_s30 = sadd.f32 %s811_s29, %s809_s28  ;;  %s814_s5 = smul.f32 2.0, %s1536_s23  ;;  %v852_v60 = vadd.f32 %v844_v51, %v835_v29  ;;  %v853_v2 = vadd.f32 %v845_v54, %v836_v49  ;;  %v855_v41 = vadd.f32 %v847_v4, %v838_v3  ;;  %v856_v24 = vadd.f32 %v848_v22, %v839_v6 }
  0xcb   :  { %s2285_s6 = sld [smem:[#allocation7 + $0x3f]]  ;;  %v851_v27 = vadd.f32 %v843_v26, %v834_v25  ;;  %v837_v29 = vadd.f32 %v829_v45, %v820_v42  ;;  %v846_v49 = vmul.f32 %v2269_v46, %v1868_v53  ;;  %v858_v50 = vadd.f32 %v850_v38, %v841_v28 }
  0xcc   :  { %s815_s1 = sadd.f32 %s814_s5, %s812_s30  ;;  %v832_v3 = vmul.f32 %v2255_v58, %v1879_v62  ;;  %v849_v58 = vmul.f32 %v2269_v46, %v1906_v20 }
  0xcd   :  { %s2291_s7 = sld [smem:[#allocation7 + $0x57]]  ;;  %v854_v51 = vadd.f32 %v846_v49, %v837_v29 }
  0xce   :  { %v2297_v14 = vstv %s815_s1  ;;  %s2299_s8 = sld [smem:[#allocation7 + $0x6f]] }
  0xcf   :  { %v861_v17 = vadd.f32 %v2297_v14, %v852_v60  ;;  %v862_v19 = vadd.f32 %v2297_v14, %v853_v2  ;;  %s920_s9 = smul.f32 2.0, %s2283_s0  ;;  %s2308_s10 = sld [smem:[#allocation7 + $0x10]]  ;;  %v864_v33 = vadd.f32 %v2297_v14, %v855_v41  ;;  %v865_v52 = vadd.f32 %v2297_v14, %v856_v24  ;;  %1537 = vst.msk [vmem:[%s3324_s4 + $0x120] sm:$0xff] %vm250_vm0, %v2297_v14 }
  0xd0   :  { %s2310_s3 = sld [smem:[#allocation7 + $0x28]]  ;;  %v860_v39 = vadd.f32 %v2297_v14, %v851_v27  ;;  %v863_v54 = vadd.f32 %v2297_v14, %v854_v51  ;;  %v867_v55 = vadd.f32 %v2297_v14, %v858_v50  ;;  %v823_v2 = vmul.f32 %v2253_v57, %v1877_v61  ;;  %1538 = vst.msk [vmem:[%s3324_s4 + $0x128] sm:$0xff] %vm250_vm0, %v2297_v14 }
  0xd1   :  { %888 = vrot.lane.b32.xlu0 %v861_v17, %s1758_s2  ;;  %890 = vrot.lane.b32.xlu1 %v862_v19, %s1758_s2  ;;  %s921_s11 = sadd.f32 %s2273_s27, %s920_s9  ;;  %s923_s12 = smul.f32 2.0, %s2285_s6  ;;  %1539 = vst.msk [vmem:[%s3324_s4 + $0x130] sm:$0xff] %vm250_vm0, %v2297_v14 }
  0xd2   :  { %s2318_s13 = sld [smem:[#allocation7 + $0x40]]  ;;  %886 = vrot.lane.b32.xlu2 %v860_v39, %s1758_s2  ;;  %v840_v57 = vadd.f32 %v832_v3, %v823_v2  ;;  %v2608_v2 = vpop.permute.xlu2 %277  ;;  %v2616_v3 = vpop.permute.xlu0 %271  ;;  %1540 = vst.msk [vmem:[%s3324_s4 + $0x138] sm:$0xff] %vm250_vm0, %v2297_v14 }
  0xd3   :  { %s924_s14 = sadd.f32 %s923_s12, %s921_s11  ;;  %s926_s15 = smul.f32 2.0, %s2291_s7  ;;  %1541 = vst.msk [vmem:[%s3324_s4 + $0x140] sm:$0xff] %vm250_vm0, %v2297_v14 }
  0xd4   :  { %s929_s16 = smul.f32 2.0, %s2299_s8  ;;  %s2326_s17 = sld [smem:[#allocation7 + $0x58]]  ;;  %v857_v7 = vadd.f32 %v849_v58, %v840_v57  ;;  %1542 = vst.msk [vmem:[%s3324_s4 + $0x148] sm:$0xff] %vm250_vm0, %v2297_v14 }
  0xd5   :  { %s927_s18 = sadd.f32 %s926_s15, %s924_s14  ;;  %1543 = vst.msk [vmem:[%s3324_s4 + $0x150] sm:$0xff] %vm250_vm0, %v2297_v14 }
  0xd6   :  { %s933_s19 = smul.f32 2.0, %s2310_s3  ;;  %s2334_s20 = sld [smem:[#allocation7 + $0x70]]  ;;  %v866_v27 = vadd.f32 %v2297_v14, %v857_v7  ;;  %1544 = vst.msk [vmem:[%s3324_s4 + $0x158] sm:$0xff] %vm250_vm0, %v2297_v14 }
  0xd7   :  { %s2342_s23 = sadd.f32 %s929_s16, %s927_s18  ;;  %298 = vst.msk [vmem:[%s3324_s4 + $0x21] sm:$0xff] %vm293_vm1, %v2608_v2 }
  0xd8   :  { %s934_s26 = sadd.f32 %s2308_s10, %s933_s19  ;;  %s936_s27 = smul.f32 2.0, %s2318_s13  ;;  %295 = vst.msk [vmem:[%s3324_s4 + $0x9] sm:$0xff] %vm293_vm1, %v2616_v3 }
  0xd9   :  { %894 = vrot.lane.b32.xlu0 %v864_v33, %s1758_s2  ;;  %896 = vrot.lane.b32.xlu1 %v865_v52, %s1758_s2  ;;  %s1564_s0 = sld [smem:[#allocation7 + $0x11]]  ;;  %v2429_v59 = vstv %s2342_s23  ;;  %1545 = vst.msk [vmem:[%s3324_s4 + $0x160] sm:$0x3] %vm259_vm2, %v2297_v14 }
  0xda   :  { %s937_s6 = sadd.f32 %s936_s27, %s934_s26  ;;  %s939_s1 = smul.f32 2.0, %s2326_s17  ;;  %892 = vrot.lane.b32.xlu2 %v863_v54, %s1758_s2  ;;  %v971_v4 = vmul.f32 %v2429_v59, %v1808_v10  ;;  %v973_v22 = vmul.f32 %v2429_v59, %v1814_v12  ;;  %v974_v41 = vmul.f32 %v2429_v59, %v1847_v36  ;;  %v976_v25 = vmul.f32 %v2429_v59, %v1956_v63 }
  0xdb   :  { %s1565_s9 = sld [smem:[#allocation7 + $0x29]]  ;;  %v977_v49 = vmul.f32 %v2429_v59, %v1877_v61  ;;  %v972_v57 = vmul.f32 %v2429_v59, %v1843_v32 }
  0xdc   :  { %s940_s11 = sadd.f32 %s939_s1, %s937_s6  ;;  %s942_s12 = smul.f32 2.0, %s2334_s20 }
  0xdd   :  { %s1566_s15 = sld [smem:[#allocation7 + $0x41]] }
  0xde   :  { %s943_s18 = sadd.f32 %s942_s12, %s940_s11 }
  0xdf   :  { %s1567_s21 = sld [smem:[#allocation7 + $0x59]] }
  0xe0   :  { %s2399_s25 = sld [smem:[#allocation7 + $0x71]]  ;;  %v2431_v60 = vstv %s943_s18 }
  0xe1   :  { %900 = vrot.lane.b32.xlu0 %v867_v55, %s1758_s2  ;;  %s946_s28 = smul.f32 2.0, %s1565_s9  ;;  %s2407_s29 = sld [smem:[#allocation8 + $0x5]]  ;;  %v980_v6 = vmul.f32 %v2431_v60, %v1810_v11  ;;  %v982_v16 = vmul.f32 %v2431_v60, %v1816_v13  ;;  %v983_v24 = vmul.f32 %v2431_v60, %v1849_v37  ;;  %v985_v26 = vmul.f32 %v2431_v60, %v1960_v5  ;;  %v2592_v55 = vpop.permute.xlu1 %273 }
  0xe2   :  { %s2414_s6 = sld [smem:[#allocation8 + $0xd]]  ;;  %898 = vrot.lane.b32.xlu2 %v866_v27, %s1758_s2  ;;  %v986_v50 = vmul.f32 %v2431_v60, %v1879_v62  ;;  %v981_v58 = vmul.f32 %v2431_v60, %v1845_v35  ;;  %v984_v27 = vmul.f32 %v2431_v60, %v1932_v44  ;;  %296 = vst.msk [vmem:[%s3324_s4 + $0x11] sm:$0xff] %vm293_vm1, %v2592_v55 }
  0xe3   :  { %s947_s8 = sadd.f32 %s1564_s0, %s946_s28  ;;  %s949_s10 = smul.f32 2.0, %s1566_s15  ;;  %v988_v17 = vadd.f32 %v980_v6, %v971_v4  ;;  %v990_v46 = vadd.f32 %v982_v16, %v973_v22  ;;  %v991_v52 = vadd.f32 %v983_v24, %v974_v41  ;;  %v993_v39 = vadd.f32 %v985_v26, %v976_v25  ;;  %v280_v25 = vpop.permute.xlu2 %279 }
  0xe4   :  { %s2426_s11 = sld [smem:[#allocation8 + $0x15]]  ;;  %v994_v4 = vadd.f32 %v986_v50, %v977_v49  ;;  %v989_v7 = vadd.f32 %v981_v58, %v972_v57  ;;  %v975_v26 = vmul.f32 %v2429_v59, %v1923_v34  ;;  %v978_v49 = vmul.f32 %v2429_v59, %v1883_v0  ;;  %299 = vst.msk [vmem:[%s3324_s4 + $0x29] sm:$0xff] %vm293_vm1, %v280_v25 }
  0xe5   :  { %s950_s0 = sadd.f32 %s949_s10, %s947_s8  ;;  %s952_s14 = smul.f32 2.0, %s1567_s21  ;;  %v987_v50 = vmul.f32 %v2431_v60, %v1885_v1 }
  0xe6   :  { %s955_s17 = smul.f32 2.0, %s2399_s25  ;;  %s2444_s23 = sld [smem:[#allocation8 + $0x1d]] }
  0xe7   :  { %s953_s20 = sadd.f32 %s952_s14, %s950_s0  ;;  %v995_v3 = vadd.f32 %v987_v50, %v978_v49 }
  0xe8   :  { %s959_s24 = smul.f32 2.0, %s2414_s6  ;;  %s2469_s25 = sld [smem:[#allocation8 + $0x25]] }
  0xe9   :  { %s956_s28 = sadd.f32 %s955_s17, %s953_s20 }
  0xea   :  { %s960_s6 = sadd.f32 %s2407_s29, %s959_s24  ;;  %s962_s1 = smul.f32 2.0, %s2426_s11 }
  0xeb   :  { %v2490_v19 = vstv %s956_s28  ;;  %s2497_s29 = sld [smem:[#allocation7 + $0x12]]  ;;  %v425_v2 = vpop.permute.xlu2 %424 }
  0xec   :  { %s963_s3 = sadd.f32 %s962_s1, %s960_s6  ;;  %s965_s11 = smul.f32 2.0, %s2444_s23  ;;  %v997_v15 = vmul.f32 %v2490_v19, %v1836_v30  ;;  %v999_v23 = vmul.f32 %v2490_v19, %v1841_v31  ;;  %v1000_v38 = vmul.f32 %v2490_v19, %v1868_v53  ;;  %v1002_v40 = vmul.f32 %v2490_v19, %v1964_v8  ;;  %1435 = vst.msk [vmem:[%s3324_s4 + $0x49] sm:$0xff] %vm293_vm1, %v425_v2 }
  0xed   :  { %s2523_s15 = sld [smem:[#allocation7 + $0x2a]]  ;;  %v1003_v6 = vmul.f32 %v2490_v19, %v1906_v20  ;;  %v1004_v59 = vmul.f32 %v2490_v19, %v1908_v21 }
  0xee   :  { %s966_s16 = sadd.f32 %s965_s11, %s963_s3  ;;  %s968_s17 = smul.f32 2.0, %s2469_s25  ;;  %v1005_v28 = vadd.f32 %v997_v15, %v988_v17  ;;  %v1007_v33 = vadd.f32 %v999_v23, %v990_v46  ;;  %v1008_v51 = vadd.f32 %v1000_v38, %v991_v52  ;;  %v1010_v54 = vadd.f32 %v1002_v40, %v993_v39  ;;  %v276_v23 = vpop.permute.xlu1 %275 }
  0xef   :  { %s2537_s21 = sld [smem:[#allocation7 + $0x42]]  ;;  %v998_v17 = vmul.f32 %v2490_v19, %v1862_v47  ;;  %v1011_v46 = vadd.f32 %v1003_v6, %v994_v4  ;;  %v992_v52 = vadd.f32 %v984_v27, %v975_v26  ;;  %297 = vst.msk [vmem:[%s3324_s4 + $0x19] sm:$0xff] %vm293_vm1, %v276_v23  ;;  %v1012_v4 = vadd.f32 %v1004_v59, %v995_v3 }
  0xf0   :  { %s969_s22 = sadd.f32 %s968_s17, %s966_s16 }
  0xf1   :  { %s2553_s28 = sld [smem:[#allocation7 + $0x5a]]  ;;  %v1006_v15 = vadd.f32 %v998_v17, %v989_v7 }
  0xf2   :  { %v2555_v42 = vstv %s969_s22  ;;  %s2562_s6 = sld [smem:[#allocation7 + $0x72]] }
  0xf3   :  { %v1014_v45 = vadd.f32 %v2555_v42, %v1005_v28  ;;  %v1016_v29 = vadd.f32 %v2555_v42, %v1007_v33  ;;  %s1074_s8 = smul.f32 2.0, %s2523_s15  ;;  %s2572_s10 = sld [smem:[#allocation7 + $0x13]]  ;;  %v1017_v22 = vadd.f32 %v2555_v42, %v1008_v51  ;;  %v1019_v16 = vadd.f32 %v2555_v42, %v1010_v54  ;;  %1574 = vst.msk [vmem:[%s3324_s4 + $0x168] sm:$0xff] %vm250_vm0, %v2555_v42  ;;  %v282_v28 = vpop.permute.xlu0 %281 }
  0xf4   :  { %s2583_s11 = sld [smem:[#allocation7 + $0x2b]]  ;;  %v1015_v41 = vadd.f32 %v2555_v42, %v1006_v15  ;;  %1575 = vst.msk [vmem:[%s3324_s4 + $0x170] sm:$0xff] %vm250_vm0, %v2555_v42  ;;  %v1020_v24 = vadd.f32 %v2555_v42, %v1011_v46  ;;  %v1001_v33 = vmul.f32 %v2490_v19, %v1936_v48  ;;  %v1021_v9 = vadd.f32 %v2555_v42, %v1012_v4 }
  0xf5   :  { %1040 = vrot.lane.b32.xlu1 %v1014_v45, %s1758_s2  ;;  %1044 = vrot.lane.b32.xlu0 %v1016_v29, %s1758_s2  ;;  %s1075_s0 = sadd.f32 %s2497_s29, %s1074_s8  ;;  %s1077_s14 = smul.f32 2.0, %s2537_s21  ;;  %1576 = vst.msk [vmem:[%s3324_s4 + $0x178] sm:$0xff] %vm250_vm0, %v2555_v42 }
  0xf6   :  { %s2601_s17 = sld [smem:[#allocation7 + $0x43]]  ;;  %1042 = vrot.lane.b32.xlu2 %v1015_v41, %s1758_s2  ;;  %1577 = vst.msk [vmem:[%s3324_s4 + $0x180] sm:$0xff] %vm250_vm0, %v2555_v42  ;;  %v1009_v38 = vadd.f32 %v1001_v33, %v992_v52  ;;  %v284_v29 = vpop.permute.xlu1 %283 }
  0xf7   :  { %s1078_s19 = sadd.f32 %s1077_s14, %s1075_s0  ;;  %s1080_s29 = smul.f32 2.0, %s2553_s28  ;;  %1578 = vst.msk [vmem:[%s3324_s4 + $0x188] sm:$0xff] %vm250_vm0, %v2555_v42 }
  0xf8   :  { %s1083_s22 = smul.f32 2.0, %s2562_s6  ;;  %s2621_s24 = sld [smem:[#allocation7 + $0x5b]]  ;;  %1579 = vst.msk [vmem:[%s3324_s4 + $0x190] sm:$0xff] %vm250_vm0, %v2555_v42  ;;  %v1018_v45 = vadd.f32 %v2555_v42, %v1009_v38 }
  0xf9   :  { %s1081_s27 = sadd.f32 %s1080_s29, %s1078_s19  ;;  %1580 = vst.msk [vmem:[%s3324_s4 + $0x198] sm:$0xff] %vm250_vm0, %v2555_v42 }
  0xfa   :  { %s1087_s5 = smul.f32 2.0, %s2583_s11  ;;  %s2640_s6 = sld [smem:[#allocation7 + $0x73]]  ;;  %1581 = vst.msk [vmem:[%s3324_s4 + $0x1a0] sm:$0xff] %vm250_vm0, %v2555_v42 }
  0xfb   :  { %s2647_s8 = sadd.f32 %s1083_s22, %s1081_s27  ;;  %300 = vst.msk [vmem:[%s3324_s4 + $0x31] sm:$0xff] %vm293_vm1, %v282_v28  ;;  %v427_v19 = vpop.permute.xlu0 %426 }
  0xfc   :  { %s1088_s11 = sadd.f32 %s2572_s10, %s1087_s5  ;;  %s1090_s12 = smul.f32 2.0, %s2601_s17  ;;  %301 = vst.msk [vmem:[%s3324_s4 + $0x39] sm:$0xff] %vm293_vm1, %v284_v29 }
  0xfd   :  { %1046 = vrot.lane.b32.xlu1 %v1017_v22, %s1758_s2  ;;  %1050 = vrot.lane.b32.xlu0 %v1019_v16, %s1758_s2  ;;  %s2665_s14 = sld [smem:[#allocation7 + $0x14]]  ;;  %v2745_v39 = vstv %s2647_s8  ;;  %1582 = vst.msk [vmem:[%s3324_s4 + $0x1a8] sm:$0x3] %vm259_vm2, %v2555_v42 }
  0xfe   :  { %s1091_s16 = sadd.f32 %s1090_s12, %s1088_s11  ;;  %s1093_s17 = smul.f32 2.0, %s2621_s24  ;;  %v1125_v51 = vmul.f32 %v2745_v39, %v1808_v10  ;;  %1048 = vrot.lane.b32.xlu2 %v1018_v45, %s1758_s2  ;;  %v1126_v54 = vmul.f32 %v2745_v39, %v1843_v32  ;;  %v1128_v56 = vmul.f32 %v2745_v39, %v1847_v36  ;;  %v1129_v17 = vmul.f32 %v2745_v39, %v1923_v34  ;;  %v429_v43 = vpop.permute.xlu1 %428 }
  0xff   :  { %s2678_s19 = sld [smem:[#allocation7 + $0x2c]]  ;;  %1436 = vst.msk [vmem:[%s3324_s4 + $0x51] sm:$0xff] %vm293_vm1, %v427_v19  ;;  %v1131_v33 = vmul.f32 %v2745_v39, %v1877_v61  ;;  %v1132_v38 = vmul.f32 %v2745_v39, %v1883_v0  ;;  %v1127_v2 = vmul.f32 %v2745_v39, %v1814_v12 }
 0x100   :  { %s1094_s21 = sadd.f32 %s1093_s17, %s1091_s16  ;;  %s1096_s22 = smul.f32 2.0, %s2640_s6  ;;  %1437 = vst.msk [vmem:[%s3324_s4 + $0x59] sm:$0xff] %vm293_vm1, %v429_v43 }
 0x101   :  { %s2693_s26 = sld [smem:[#allocation7 + $0x44]] }
 0x102   :  { %s1097_s30 = sadd.f32 %s1096_s22, %s1094_s21 }
 0x103   :  { %s2712_s1 = sld [smem:[#allocation7 + $0x5c]]  ;;  %v433_v26 = vpop.permute.xlu0 %432 }
 0x104   :  { %s2719_s3 = sld [smem:[#allocation7 + $0x74]]  ;;  %v2754_v40 = vstv %s1097_s30  ;;  %1439 = vst.msk [vmem:[%s3324_s4 + $0x69] sm:$0xff] %vm293_vm1, %v433_v26 }
 0x105   :  { %1052 = vrot.lane.b32.xlu1 %v1020_v24, %s1758_s2  ;;  %s1100_s13 = smul.f32 2.0, %s2678_s19  ;;  %s2728_s0 = sld [smem:[#allocation8 + $0x6]]  ;;  %v1134_v60 = vmul.f32 %v2754_v40, %v1810_v11  ;;  %v1135_v55 = vmul.f32 %v2754_v40, %v1845_v35  ;;  %v1137_v7 = vmul.f32 %v2754_v40, %v1849_v37  ;;  %v1138_v46 = vmul.f32 %v2754_v40, %v1932_v44  ;;  %v431_v24 = vpop.permute.xlu2 %430 }
 0x106   :  { %s2735_s16 = sld [smem:[#allocation8 + $0xe]]  ;;  %1054 = vrot.lane.b32.xlu2 %v1021_v9, %s1758_s2  ;;  %v1140_v52 = vmul.f32 %v2754_v40, %v1879_v62  ;;  %v1141_v45 = vmul.f32 %v2754_v40, %v1885_v1  ;;  %v1136_v3 = vmul.f32 %v2754_v40, %v1816_v13  ;;  %v435_v19 = vpop.permute.xlu1 %434  ;;  %1438 = vst.msk [vmem:[%s3324_s4 + $0x61] sm:$0xff] %vm293_vm1, %v431_v24 }
 0x107   :  { %s1101_s18 = sadd.f32 %s2665_s14, %s1100_s13  ;;  %s1103_s19 = smul.f32 2.0, %s2693_s26  ;;  %v1142_v6 = vadd.f32 %v1134_v60, %v1125_v51  ;;  %v1143_v16 = vadd.f32 %v1135_v55, %v1126_v54  ;;  %v1145_v14 = vadd.f32 %v1137_v7, %v1128_v56  ;;  %v1146_v42 = vadd.f32 %v1138_v46, %v1129_v17  ;;  %1440 = vst.msk [vmem:[%s3324_s4 + $0x71] sm:$0xff] %vm293_vm1, %v435_v19 }
 0x108   :  { %s2752_s21 = sld [smem:[#allocation8 + $0x16]]  ;;  %v1148_v50 = vadd.f32 %v1140_v52, %v1131_v33  ;;  %v1149_v59 = vadd.f32 %v1141_v45, %v1132_v38 }
 0x109   :  { %s1104_s8 = sadd.f32 %s1103_s19, %s1101_s18  ;;  %s1106_s14 = smul.f32 2.0, %s2712_s1 }
 0x10a   :  { %s1109_s25 = smul.f32 2.0, %s2719_s3  ;;  %s2768_s26 = sld [smem:[#allocation8 + $0x1e]] }
 0x10b   :  { %s1107_s30 = sadd.f32 %s1106_s14, %s1104_s8  ;;  %v439_v9 = vpop.permute.xlu0 %438 }
 0x10c   :  { %s1113_s1 = smul.f32 2.0, %s2735_s16  ;;  %s2790_s7 = sld [smem:[#allocation8 + $0x26]]  ;;  %1442 = vst.msk [vmem:[%s3324_s4 + $0x81] sm:$0xff] %vm293_vm1, %v439_v9 }
 0x10d   :  { %s1110_s11 = sadd.f32 %s1109_s25, %s1107_s30  ;;  %v437_v4 = vpop.permute.xlu2 %436 }
 0x10e   :  { %s1114_s15 = sadd.f32 %s2728_s0, %s1113_s1  ;;  %s1116_s10 = smul.f32 2.0, %s2752_s21  ;;  %1441 = vst.msk [vmem:[%s3324_s4 + $0x79] sm:$0xff] %vm293_vm1, %v437_v4 }
 0x10f   :  { %v2807_v22 = vstv %s1110_s11  ;;  %s2815_s0 = sld [smem:[#allocation7 + $0x15]] }
 0x110   :  { %s1117_s19 = sadd.f32 %s1116_s10, %s1114_s15  ;;  %s1119_s29 = smul.f32 2.0, %s2768_s26  ;;  %v1151_v57 = vmul.f32 %v2807_v22, %v1836_v30  ;;  %v1152_v58 = vmul.f32 %v2807_v22, %v1862_v47  ;;  %v1154_v23 = vmul.f32 %v2807_v22, %v1868_v53  ;;  %v1155_v41 = vmul.f32 %v2807_v22, %v1936_v48 }
 0x111   :  { %s2840_s8 = sld [smem:[#allocation7 + $0x2d]]  ;;  %v1157_v51 = vmul.f32 %v2807_v22, %v1906_v20  ;;  %v1158_v60 = vmul.f32 %v2807_v22, %v1908_v21  ;;  %v1156_v43 = vmul.f32 %v2807_v22, %v1964_v8 }
 0x112   :  { %s1120_s14 = sadd.f32 %s1119_s29, %s1117_s19  ;;  %s1122_s25 = smul.f32 2.0, %s2790_s7  ;;  %v1159_v18 = vadd.f32 %v1151_v57, %v1142_v6  ;;  %v1160_v15 = vadd.f32 %v1152_v58, %v1143_v16  ;;  %v1162_v29 = vadd.f32 %v1154_v23, %v1145_v14  ;;  %v1163_v49 = vadd.f32 %v1155_v41, %v1146_v42  ;;  %v579_v14 = vpop.permute.xlu1 %578 }
 0x113   :  { %s2854_s5 = sld [smem:[#allocation7 + $0x45]]  ;;  %v1144_v6 = vadd.f32 %v1136_v3, %v1127_v2  ;;  %v1153_v16 = vmul.f32 %v2807_v22, %v1841_v31  ;;  %v1165_v57 = vadd.f32 %v1157_v51, %v1148_v50  ;;  %v1166_v58 = vadd.f32 %v1158_v60, %v1149_v59  ;;  %1472 = vst.msk [vmem:[%s3324_s4 + $0x91] sm:$0xff] %vm293_vm1, %v579_v14 }
 0x114   :  { %s1123_s6 = sadd.f32 %s1122_s25, %s1120_s14 }
 0x115   :  { %s2868_s11 = sld [smem:[#allocation7 + $0x5d]]  ;;  %v1161_v56 = vadd.f32 %v1153_v16, %v1144_v6  ;;  %v581_v23 = vpop.permute.xlu2 %580 }
 0x116   :  { %v2870_v25 = vstv %s1123_s6  ;;  %s2876_s15 = sld [smem:[#allocation7 + $0x75]]  ;;  %1473 = vst.msk [vmem:[%s3324_s4 + $0x99] sm:$0xff] %vm293_vm1, %v581_v23 }
 0x117   :  { %v1168_v27 = vadd.f32 %v2870_v25, %v1159_v18  ;;  %1611 = vst.msk [vmem:[%s3324_s4 + $0x1b0] sm:$0xff] %vm250_vm0, %v2870_v25  ;;  %v1169_v28 = vadd.f32 %v2870_v25, %v1160_v15  ;;  %s1228_s17 = smul.f32 2.0, %s2840_s8  ;;  %s2886_s23 = sld [smem:[#allocation7 + $0x16]]  ;;  %v1171_v54 = vadd.f32 %v2870_v25, %v1162_v29  ;;  %v1172_v55 = vadd.f32 %v2870_v25, %v1163_v49 }
 0x118   :  { %1612 = vst.msk [vmem:[%s3324_s4 + $0x1b8] sm:$0xff] %vm250_vm0, %v2870_v25  ;;  %s2901_s29 = sld [smem:[#allocation7 + $0x2e]]  ;;  %v1170_v7 = vadd.f32 %v2870_v25, %v1161_v56  ;;  %v1174_v17 = vadd.f32 %v2870_v25, %v1165_v57  ;;  %v1175_v46 = vadd.f32 %v2870_v25, %v1166_v58  ;;  %v1130_v18 = vmul.f32 %v2745_v39, %v1956_v63  ;;  %v583_v39 = vpop.permute.xlu0 %582 }
 0x119   :  { %1194 = vrot.lane.b32.xlu0 %v1168_v27, %s1758_s2  ;;  %1613 = vst.msk [vmem:[%s3324_s4 + $0x1c0] sm:$0xff] %vm250_vm0, %v2870_v25  ;;  %1196 = vrot.lane.b32.xlu1 %v1169_v28, %s1758_s2  ;;  %s1229_s22 = sadd.f32 %s2815_s0, %s1228_s17  ;;  %s1231_s24 = smul.f32 2.0, %s2854_s5  ;;  %v1139_v15 = vmul.f32 %v2754_v40, %v1960_v5 }
 0x11a   :  { %1614 = vst.msk [vmem:[%s3324_s4 + $0x1c8] sm:$0xff] %vm250_vm0, %v2870_v25  ;;  %s2917_s25 = sld [smem:[#allocation7 + $0x46]]  ;;  %1198 = vrot.lane.b32.xlu2 %v1170_v7, %s1758_s2  ;;  %v585_v33 = vpop.permute.xlu1 %584 }
 0x11b   :  { %1615 = vst.msk [vmem:[%s3324_s4 + $0x1d0] sm:$0xff] %vm250_vm0, %v2870_v25  ;;  %s1232_s28 = sadd.f32 %s1231_s24, %s1229_s22  ;;  %s1234_s30 = smul.f32 2.0, %s2868_s11  ;;  %v1147_v42 = vadd.f32 %v1139_v15, %v1130_v18 }
 0x11c   :  { %1616 = vst.msk [vmem:[%s3324_s4 + $0x1d8] sm:$0xff] %vm250_vm0, %v2870_v25  ;;  %s1237_s6 = smul.f32 2.0, %s2876_s15  ;;  %s2935_s1 = sld [smem:[#allocation7 + $0x5e]] }
 0x11d   :  { %1617 = vst.msk [vmem:[%s3324_s4 + $0x1e0] sm:$0xff] %vm250_vm0, %v2870_v25  ;;  %s1235_s3 = sadd.f32 %s1234_s30, %s1232_s28  ;;  %v1164_v40 = vadd.f32 %v1156_v43, %v1147_v42  ;;  %v587_v52 = vpop.permute.xlu2 %586 }
 0x11e   :  { %1618 = vst.msk [vmem:[%s3324_s4 + $0x1e8] sm:$0xff] %vm250_vm0, %v2870_v25  ;;  %s1241_s13 = smul.f32 2.0, %s2901_s29  ;;  %s2954_s15 = sld [smem:[#allocation7 + $0x76]] }
 0x11f   :  { %1619 = vst.msk [vmem:[%s3324_s4 + $0x1f0] sm:$0x3] %vm259_vm2, %v2870_v25  ;;  %s2961_s17 = sadd.f32 %s1237_s6, %s1235_s3  ;;  %v1173_v24 = vadd.f32 %v2870_v25, %v1164_v40 }
 0x120   :  { %s1242_s29 = sadd.f32 %s2886_s23, %s1241_s13  ;;  %s1244_s20 = smul.f32 2.0, %s2917_s25  ;;  %1474 = vst.msk [vmem:[%s3324_s4 + $0xa1] sm:$0xff] %vm293_vm1, %v583_v39 }
 0x121   :  { %1200 = vrot.lane.b32.xlu0 %v1171_v54, %s1758_s2  ;;  %1202 = vrot.lane.b32.xlu1 %v1172_v55, %s1758_s2  ;;  %s2977_s24 = sld [smem:[#allocation7 + $0x17]]  ;;  %v3030_v22 = vstv %s2961_s17  ;;  %1475 = vst.msk [vmem:[%s3324_s4 + $0xa9] sm:$0xff] %vm293_vm1, %v585_v33 }
 0x122   :  { %s1245_s8 = sadd.f32 %s1244_s20, %s1242_s29  ;;  %s1247_s14 = smul.f32 2.0, %s2935_s1  ;;  %1204 = vrot.lane.b32.xlu2 %v1173_v24, %s1758_s2  ;;  %v1280_v26 = vmul.f32 %v3030_v22, %v1843_v32  ;;  %v1281_v28 = vmul.f32 %v3030_v22, %v1814_v12  ;;  %v589_v32 = vpop.permute.xlu0 %588  ;;  %1476 = vst.msk [vmem:[%s3324_s4 + $0xb1] sm:$0xff] %vm293_vm1, %v587_v52  ;;  %v1283_v29 = vmul.f32 %v3030_v22, %v1923_v34 }
 0x123   :  { %s2984_s26 = sld [smem:[#allocation7 + $0x2f]]  ;;  %1477 = vst.msk [vmem:[%s3324_s4 + $0xb9] sm:$0xff] %vm293_vm1, %v589_v32  ;;  %v1284_v51 = vmul.f32 %v3030_v22, %v1956_v63  ;;  %v1286_v6 = vmul.f32 %v3030_v22, %v1883_v0  ;;  %v1285_v58 = vmul.f32 %v3030_v22, %v1877_v61 }
 0x124   :  { %s1248_s30 = sadd.f32 %s1247_s14, %s1245_s8  ;;  %s1250_s0 = smul.f32 2.0, %s2954_s15 }
 0x125   :  { %s1640_s1 = sld [smem:[#allocation7 + $0x47]]  ;;  %v593_v55 = vpop.permute.xlu2 %592 }
 0x126   :  { %s1251_s7 = sadd.f32 %s1250_s0, %s1248_s30  ;;  %1479 = vst.msk [vmem:[%s3324_s4 + $0xc9] sm:$0xff] %vm293_vm1, %v593_v55 }
 0x127   :  { %s1641_s9 = sld [smem:[#allocation7 + $0x5f]] }
 0x128   :  { %s3005_s3 = sld [smem:[#allocation7 + $0x77]]  ;;  %v3032_v41 = vstv %s1251_s7 }
 0x129   :  { %1206 = vrot.lane.b32.xlu0 %v1174_v17, %s1758_s2  ;;  %1208 = vrot.lane.b32.xlu1 %v1175_v46, %s1758_s2  ;;  %s1254_s13 = smul.f32 2.0, %s2984_s26  ;;  %s3014_s15 = sld [smem:[#allocation8 + $0x7]]  ;;  %v1289_v27 = vmul.f32 %v3032_v41, %v1845_v35  ;;  %v1290_v25 = vmul.f32 %v3032_v41, %v1816_v13  ;;  %v1279_v35 = vmul.f32 %v3030_v22, %v1808_v10 }
 0x12a   :  { %s3020_s18 = sld [smem:[#allocation8 + $0xf]]  ;;  %v1288_v12 = vmul.f32 %v3032_v41, %v1810_v11  ;;  %v1292_v50 = vmul.f32 %v3032_v41, %v1932_v44  ;;  %v1293_v59 = vmul.f32 %v3032_v41, %v1960_v5  ;;  %v591_v44 = vpop.permute.xlu1 %590  ;;  %v1295_v57 = vmul.f32 %v3032_v41, %v1885_v1 }
 0x12b   :  { %s1255_s20 = sadd.f32 %s2977_s24, %s1254_s13  ;;  %s1257_s21 = smul.f32 2.0, %s1640_s1  ;;  %v1297_v13 = vadd.f32 %v1289_v27, %v1280_v26  ;;  %v1298_v10 = vadd.f32 %v1290_v25, %v1281_v28  ;;  %1478 = vst.msk [vmem:[%s3324_s4 + $0xc1] sm:$0xff] %vm293_vm1, %v591_v44  ;;  %v1294_v56 = vmul.f32 %v3032_v41, %v1879_v62 }
 0x12c   :  { %s3027_s22 = sld [smem:[#allocation8 + $0x17]]  ;;  %v1296_v49 = vadd.f32 %v1288_v12, %v1279_v35  ;;  %v1300_v5 = vadd.f32 %v1292_v50, %v1283_v29  ;;  %v1303_v46 = vadd.f32 %v1295_v57, %v1286_v6 }
 0x12d   :  { %s1258_s8 = sadd.f32 %s1257_s21, %s1255_s20  ;;  %s1260_s14 = smul.f32 2.0, %s1641_s9  ;;  %v737_v7 = vpop.permute.xlu2 %736  ;;  %v1302_v43 = vadd.f32 %v1294_v56, %v1285_v58 }
 0x12e   :  { %s1263_s23 = smul.f32 2.0, %s3005_s3  ;;  %s3036_s25 = sld [smem:[#allocation8 + $0x1f]]  ;;  %1511 = vst.msk [vmem:[%s3324_s4 + $0xe9] sm:$0xff] %vm293_vm1, %v737_v7 }
 0x12f   :  { %s1261_s26 = sadd.f32 %s1260_s14, %s1258_s8 }
 0x130   :  { %s1267_s17 = smul.f32 2.0, %s3020_s18  ;;  %s3048_s24 = sld [smem:[#allocation8 + $0x27]] }
 0x131   :  { %s1264_s30 = sadd.f32 %s1263_s23, %s1261_s26 }
 0x132   :  { %s1268_s6 = sadd.f32 %s3014_s15, %s1267_s17  ;;  %s1270_s1 = smul.f32 2.0, %s3027_s22  ;;  %v735_v1 = vpop.permute.xlu1 %734 }
 0x133   :  { %v3068_v38 = vstv %s1264_s30  ;;  %1510 = vst.msk [vmem:[%s3324_s4 + $0xe1] sm:$0xff] %vm293_vm1, %v735_v1 }
 0x134   :  { %s1271_s3 = sadd.f32 %s1270_s1, %s1268_s6  ;;  %s1273_s11 = smul.f32 2.0, %s3036_s25  ;;  %v1306_v11 = vmul.f32 %v3068_v38, %v1862_v47  ;;  %v1307_v45 = vmul.f32 %v3068_v38, %v1841_v31  ;;  %v1305_v60 = vmul.f32 %v3068_v38, %v1836_v30  ;;  %v1282_v31 = vmul.f32 %v3030_v22, %v1847_v36  ;;  %v733_v30 = vpop.permute.xlu0 %732 }
 0x135   :  { %v1291_v47 = vmul.f32 %v3032_v41, %v1849_v37  ;;  %v1309_v2 = vmul.f32 %v3068_v38, %v1936_v48  ;;  %v1301_v36 = vadd.f32 %v1293_v59, %v1284_v51  ;;  %v1310_v37 = vmul.f32 %v3068_v38, %v1964_v8  ;;  %1509 = vst.msk [vmem:[%s3324_s4 + $0xd9] sm:$0xff] %vm293_vm1, %v733_v30  ;;  %v743_v42 = vpop.permute.xlu2 %742 }
 0x136   :  { %s1274_s12 = sadd.f32 %s1273_s11, %s1271_s3  ;;  %s1276_s13 = smul.f32 2.0, %s3048_s24  ;;  %v1314_v34 = vadd.f32 %v1306_v11, %v1297_v13  ;;  %v1315_v54 = vadd.f32 %v1307_v45, %v1298_v10  ;;  %v1313_v63 = vadd.f32 %v1305_v60, %v1296_v49  ;;  %v1308_v4 = vmul.f32 %v3068_v38, %v1868_v53  ;;  %1514 = vst.msk [vmem:[%s3324_s4 + $0x101] sm:$0xff] %vm293_vm1, %v743_v42 }
 0x137   :  { %v1299_v19 = vadd.f32 %v1291_v47, %v1282_v31  ;;  %v1317_v53 = vadd.f32 %v1309_v2, %v1300_v5  ;;  %v1318_v9 = vadd.f32 %v1310_v37, %v1301_v36  ;;  %v1312_v18 = vmul.f32 %v3068_v38, %v1908_v21 }
 0x138   :  { %s1277_s15 = sadd.f32 %s1276_s13, %s1274_s12  ;;  %v1311_v14 = vmul.f32 %v3068_v38, %v1906_v20 }
 0x139   :  { %v1316_v0 = vadd.f32 %v1308_v4, %v1299_v19  ;;  %v1320_v21 = vadd.f32 %v1312_v18, %v1303_v46 }
 0x13a   :  { %v1321_v3 = vstv %s1277_s15  ;;  %v1319_v20 = vadd.f32 %v1311_v14, %v1302_v43  ;;  %v741_v23 = vpop.permute.xlu1 %740 }
 0x13b   :  { %v1323_v48 = vadd.f32 %v1321_v3, %v1314_v34  ;;  %1648 = vst.msk [vmem:[%s3324_s4 + $0x1f8] sm:$0xff] %vm250_vm0, %v1321_v3  ;;  %v1324_v8 = vadd.f32 %v1321_v3, %v1315_v54  ;;  %v1322_v16 = vadd.f32 %v1321_v3, %v1313_v63  ;;  %v1326_v61 = vadd.f32 %v1321_v3, %v1317_v53 }
 0x13c   :  { %1649 = vst.msk [vmem:[%s3324_s4 + $0x200] sm:$0xff] %vm250_vm0, %v1321_v3  ;;  %v739_v17 = vpop.permute.xlu0 %738  ;;  %v1327_v62 = vadd.f32 %v1321_v3, %v1318_v9  ;;  %v1325_v15 = vadd.f32 %v1321_v3, %v1316_v0  ;;  %v1329_v40 = vadd.f32 %v1321_v3, %v1320_v21  ;;  %v1328_v22 = vadd.f32 %v1321_v3, %v1319_v20 }
 0x13d   :  { %1350 = vrot.lane.b32.xlu0 %v1323_v48, %s1758_s2  ;;  %1650 = vst.msk [vmem:[%s3324_s4 + $0x208] sm:$0xff] %vm250_vm0, %v1321_v3  ;;  %1352 = vrot.lane.b32.xlu1 %v1324_v8, %s1758_s2  ;;  %v887_v24 = vpop.permute.xlu2 %886 }
 0x13e   :  { %1651 = vst.msk [vmem:[%s3324_s4 + $0x210] sm:$0xff] %vm250_vm0, %v1321_v3  ;;  %1348 = vrot.lane.b32.xlu2 %v1322_v16, %s1758_s2 }
 0x13f   :  { %1652 = vst.msk [vmem:[%s3324_s4 + $0x218] sm:$0xff] %vm250_vm0, %v1321_v3 }
 0x140   :  { %1653 = vst.msk [vmem:[%s3324_s4 + $0x220] sm:$0xff] %vm250_vm0, %v1321_v3 }
 0x141   :  { %1654 = vst.msk [vmem:[%s3324_s4 + $0x228] sm:$0xff] %vm250_vm0, %v1321_v3 }
 0x142   :  { %1655 = vst.msk [vmem:[%s3324_s4 + $0x230] sm:$0xff] %vm250_vm0, %v1321_v3  ;;  %v747_v41 = vpop.permute.xlu1 %746 }
 0x143   :  { %1656 = vst.msk [vmem:[%s3324_s4 + $0x238] sm:$0x3] %vm259_vm2, %v1321_v3 }
 0x144   :  { %1512 = vst.msk [vmem:[%s3324_s4 + $0xf1] sm:$0xff] %vm293_vm1, %v739_v17  ;;  %v745_v39 = vpop.permute.xlu0 %744 }
 0x145   :  { %1356 = vrot.lane.b32.xlu0 %v1326_v61, %s1758_s2  ;;  %1358 = vrot.lane.b32.xlu1 %v1327_v62, %s1758_s2  ;;  %1513 = vst.msk [vmem:[%s3324_s4 + $0xf9] sm:$0xff] %vm293_vm1, %v741_v23  ;;  %v893_v28 = vpop.permute.xlu2 %892 }
 0x146   :  { %1354 = vrot.lane.b32.xlu2 %v1325_v15, %s1758_s2  ;;  %1515 = vst.msk [vmem:[%s3324_s4 + $0x109] sm:$0xff] %vm293_vm1, %v745_v39 }
 0x147   :  { %1516 = vst.msk [vmem:[%s3324_s4 + $0x111] sm:$0xff] %vm293_vm1, %v747_v41 }
 0x148   :  { %1546 = vst.msk [vmem:[%s3324_s4 + $0x121] sm:$0xff] %vm293_vm1, %v887_v24 }
 0x149   :  { %1549 = vst.msk [vmem:[%s3324_s4 + $0x139] sm:$0xff] %vm293_vm1, %v893_v28 }
 0x14a   :  { %v891_v27 = vpop.permute.xlu1 %890 }
 0x14b   :  { %1548 = vst.msk [vmem:[%s3324_s4 + $0x131] sm:$0xff] %vm293_vm1, %v891_v27 }
 0x14c   :  { %v889_v26 = vpop.permute.xlu0 %888 }
 0x14d   :  { %1362 = vrot.lane.b32.xlu0 %v1329_v40, %s1758_s2  ;;  %1547 = vst.msk [vmem:[%s3324_s4 + $0x129] sm:$0xff] %vm293_vm1, %v889_v26  ;;  %v899_v52 = vpop.permute.xlu2 %898 }
 0x14e   :  { %1360 = vrot.lane.b32.xlu2 %v1328_v22, %s1758_s2  ;;  %1552 = vst.msk [vmem:[%s3324_s4 + $0x151] sm:$0xff] %vm293_vm1, %v899_v52 }
 0x152   :  { %v897_v33 = vpop.permute.xlu1 %896 }
 0x153   :  { %1551 = vst.msk [vmem:[%s3324_s4 + $0x149] sm:$0xff] %vm293_vm1, %v897_v33 }
 0x154   :  { %v895_v25 = vpop.permute.xlu0 %894 }
 0x155   :  { %1550 = vst.msk [vmem:[%s3324_s4 + $0x141] sm:$0xff] %vm293_vm1, %v895_v25  ;;  %v1043_v12 = vpop.permute.xlu2 %1042 }
 0x156   :  { %1584 = vst.msk [vmem:[%s3324_s4 + $0x171] sm:$0xff] %vm293_vm1, %v1043_v12 }
 0x15c   :  { %v901_v32 = vpop.permute.xlu0 %900 }
 0x15d   :  { %1553 = vst.msk [vmem:[%s3324_s4 + $0x159] sm:$0xff] %vm293_vm1, %v901_v32  ;;  %v1049_v10 = vpop.permute.xlu2 %1048 }
 0x15e   :  { %1587 = vst.msk [vmem:[%s3324_s4 + $0x189] sm:$0xff] %vm293_vm1, %v1049_v10 }
 0x165   :  { %v1055_v29 = vpop.permute.xlu2 %1054 }
 0x166   :  { %1590 = vst.msk [vmem:[%s3324_s4 + $0x1a1] sm:$0xff] %vm293_vm1, %v1055_v29 }
 0x167   :  { %v1041_v35 = vpop.permute.xlu1 %1040  ;;  %v1045_v13 = vpop.permute.xlu0 %1044 }
 0x168   :  { %1583 = vst.msk [vmem:[%s3324_s4 + $0x169] sm:$0xff] %vm293_vm1, %v1041_v35 }
 0x169   :  { %1585 = vst.msk [vmem:[%s3324_s4 + $0x179] sm:$0xff] %vm293_vm1, %v1045_v13 }
 0x16f   :  { %v1047_v38 = vpop.permute.xlu1 %1046  ;;  %v1051_v11 = vpop.permute.xlu0 %1050 }
 0x170   :  { %1586 = vst.msk [vmem:[%s3324_s4 + $0x181] sm:$0xff] %vm293_vm1, %v1047_v38 }
 0x171   :  { %1588 = vst.msk [vmem:[%s3324_s4 + $0x191] sm:$0xff] %vm293_vm1, %v1051_v11 }
 0x174   :  { %v1199_v49 = vpop.permute.xlu2 %1198 }
 0x175   :  { %1622 = vst.msk [vmem:[%s3324_s4 + $0x1c1] sm:$0xff] %vm293_vm1, %v1199_v49 }
 0x177   :  { %v1053_v45 = vpop.permute.xlu1 %1052 }
 0x178   :  { %1589 = vst.msk [vmem:[%s3324_s4 + $0x199] sm:$0xff] %vm293_vm1, %v1053_v45 }
 0x17c   :  { %v1205_v50 = vpop.permute.xlu2 %1204 }
 0x17d   :  { %1625 = vst.msk [vmem:[%s3324_s4 + $0x1d9] sm:$0xff] %vm293_vm1, %v1205_v50 }
 0x18b   :  { %v1195_v51 = vpop.permute.xlu0 %1194  ;;  %v1197_v59 = vpop.permute.xlu1 %1196 }
 0x18c   :  { %1620 = vst.msk [vmem:[%s3324_s4 + $0x1b1] sm:$0xff] %vm293_vm1, %v1195_v51 }
 0x18d   :  { %1621 = vst.msk [vmem:[%s3324_s4 + $0x1b9] sm:$0xff] %vm293_vm1, %v1197_v59 }
 0x193   :  { %v1201_v60 = vpop.permute.xlu0 %1200  ;;  %v1203_v31 = vpop.permute.xlu1 %1202 }
 0x194   :  { %1623 = vst.msk [vmem:[%s3324_s4 + $0x1c9] sm:$0xff] %vm293_vm1, %v1201_v60 }
 0x195   :  { %1624 = vst.msk [vmem:[%s3324_s4 + $0x1d1] sm:$0xff] %vm293_vm1, %v1203_v31 }
 0x198   :  { %v1349_v47 = vpop.permute.xlu2 %1348 }
 0x199   :  { %1657 = vst.msk [vmem:[%s3324_s4 + $0x1f9] sm:$0xff] %vm293_vm1, %v1349_v47 }
 0x19b   :  { %v1207_v34 = vpop.permute.xlu0 %1206  ;;  %v1209_v54 = vpop.permute.xlu1 %1208 }
 0x19c   :  { %1626 = vst.msk [vmem:[%s3324_s4 + $0x1e1] sm:$0xff] %vm293_vm1, %v1207_v34 }
 0x19d   :  { %1627 = vst.msk [vmem:[%s3324_s4 + $0x1e9] sm:$0xff] %vm293_vm1, %v1209_v54 }
 0x1a0   :  { %v1355_v44 = vpop.permute.xlu2 %1354 }
 0x1a1   :  { %1660 = vst.msk [vmem:[%s3324_s4 + $0x211] sm:$0xff] %vm293_vm1, %v1355_v44 }
 0x1a8   :  { %v1361_v55 = vpop.permute.xlu2 %1360 }
 0x1a9   :  { %1663 = vst.msk [vmem:[%s3324_s4 + $0x229] sm:$0xff] %vm293_vm1, %v1361_v55 }
 0x1af   :  { %v1351_v63 = vpop.permute.xlu0 %1350  ;;  %v1353_v30 = vpop.permute.xlu1 %1352 }
 0x1b0   :  { %1658 = vst.msk [vmem:[%s3324_s4 + $0x201] sm:$0xff] %vm293_vm1, %v1351_v63 }
 0x1b1   :  { %1659 = vst.msk [vmem:[%s3324_s4 + $0x209] sm:$0xff] %vm293_vm1, %v1353_v30 }
 0x1b7   :  { %v1357_v5 = vpop.permute.xlu0 %1356  ;;  %v1359_v2 = vpop.permute.xlu1 %1358 }
 0x1b8   :  { %1661 = vst.msk [vmem:[%s3324_s4 + $0x219] sm:$0xff] %vm293_vm1, %v1357_v5 }
 0x1b9   :  { %1662 = vst.msk [vmem:[%s3324_s4 + $0x221] sm:$0xff] %vm293_vm1, %v1359_v2 }
 0x1bf   :  { %v1363_v36 = vpop.permute.xlu0 %1362 }
 0x1c0   :  { %1664 = vst.msk [vmem:[%s3324_s4 + $0x231] sm:$0xff] %vm293_vm1, %v1363_v36 }
 0x1c1   :  { %1384 = vsyncpa [#allocation3], 1 }
 0x1c2   :  { %1385 = vsyncpa [#allocation6], 1 }
 0x1c3   :  { %1386 = vsyncpa [#allocation4], 1 }
 0x1c4   :  { %1387 = vsyncpa [#allocation9], 1 }

// kernel: _forward_split.1
= control target key start
LH: loop header
LB: loop body
LE: loop exit
PB: predicated region body
PF: predicated region fallthrough
CT: control target
= control target key end

     0   :  { %9 = vsyncpa [#allocation3], 0  ;;  %s1348_s0 = inlined_call_operand.vmem [shape: f32[3,32,128], index: 0, kind: input, shape index: {}]   ;;  %s1349_s1 = inlined_call_operand.vmem [shape: f32[3,32,128], index: 1, kind: input, shape index: {}]   ;;  %s1350_s2 = inlined_call_operand.vmem [shape: f32[120], index: 2, kind: input, shape index: {}]   ;;  %s1351_s3 = inlined_call_operand.vmem [shape: f32[40], index: 3, kind: input, shape index: {}]   ;;  %s1352_s4 = inlined_call_operand.vmem [shape: f32[8,32,128], index: 4, kind: output, shape index: {}]  }
   0x1   :  { %s20_s17 = sshll.u32 %s1350_s2, 4  ;;  %s21_s17 = int_to_ptr.vmem [resolvable:$true] %s20_s17 }
   0x2   :  { %10 = vsyncpa [#allocation5], 0  ;;  %s29_s20 = sshll.u32 %s1351_s3, 4  ;;  %s979_s21 = smov [#allocation2]   ;;  %s30_s20 = int_to_ptr.vmem [resolvable:$true] %s29_s20 }
   0x3   :  { %23 = dma.vmem_to_smem %s21_s17, 16, %s979_s21, [#allocation3]  }
   0x4   :  { %s980_s22 = smov [#allocation4]  }
   0x5   :  { %32 = dma.vmem_to_smem %s30_s20, 16, %s980_s22, [#allocation5]  }
   0x6   :  { %975 = dma.done.wait [#allocation3], 16  }
   0x7   :  { %976 = vsyncadd [#allocation3], 4294967280 }
   0x8   :  { %977 = dma.done.wait [#allocation5], 16  }
   0x9   :  { %978 = vsyncadd [#allocation5], 4294967280 }
   0xa   :  { %41 = sfence }
   0xb   :  { %s78_s23 = sld [smem:[#allocation2]]  ;;  %v42_v0 = vld [vmem:[%s1348_s0] sm:$0xff]  ;;  %v43_v4 = vld [vmem:[%s1348_s0 + $0x8] sm:$0xff]  ;;  %v44_v8 = vld [vmem:[%s1348_s0 + $0x10] sm:$0xff] }
   0xc   :  { %s763_s24 = sld [smem:[#allocation2 + $0x18]]  ;;  %v46_v1 = vld [vmem:[%s1348_s0 + $0x20] sm:$0xff]  ;;  %v47_v5 = vld [vmem:[%s1348_s0 + $0x28] sm:$0xff]  ;;  %v48_v9 = vld [vmem:[%s1348_s0 + $0x30] sm:$0xff] }
   0xd   :  { %s764_s25 = sld [smem:[#allocation2 + $0x30]]  ;;  %v54_v2 = vld [vmem:[%s1349_s1] sm:$0xff]  ;;  %v55_v6 = vld [vmem:[%s1349_s1 + $0x8] sm:$0xff]  ;;  %v56_v10 = vld [vmem:[%s1349_s1 + $0x10] sm:$0xff] }
   0xe   :  { %s765_s2 = sld [smem:[#allocation2 + $0x48]]  ;;  %v58_v3 = vld [vmem:[%s1349_s1 + $0x20] sm:$0xff]  ;;  %v59_v7 = vld [vmem:[%s1349_s1 + $0x28] sm:$0xff]  ;;  %v60_v11 = vld [vmem:[%s1349_s1 + $0x30] sm:$0xff]  ;;  %v1072_v16 = vadd.f32 %v54_v2, %v42_v0  ;;  %v1081_v18 = vadd.f32 %v55_v6, %v43_v4  ;;  %v1085_v20 = vadd.f32 %v56_v10, %v44_v8 }
   0xf   :  { %s766_s26 = sld [smem:[#allocation2 + $0x60]]  ;;  %v45_v12 = vld [vmem:[%s1348_s0 + $0x18] sm:$0xff]  ;;  %v1074_v17 = vadd.f32 %v58_v3, %v46_v1  ;;  %v1083_v19 = vadd.f32 %v59_v7, %v47_v5  ;;  %v1087_v21 = vadd.f32 %v60_v11, %v48_v9  ;;  %v50_v22 = vld [vmem:[%s1348_s0 + $0x40] sm:$0xff]  ;;  %v51_v28 = vld [vmem:[%s1348_s0 + $0x48] sm:$0xff] }
  0x10   :  { %s767_s27 = sld [smem:[#allocation2 + $0x1]]  ;;  %v49_v13 = vld [vmem:[%s1348_s0 + $0x38] sm:$0xff]  ;;  %v62_v23 = vld [vmem:[%s1349_s1 + $0x40] sm:$0xff]  ;;  %v63_v29 = vld [vmem:[%s1349_s1 + $0x48] sm:$0xff] }
  0x11   :  { %s768_s28 = sld [smem:[#allocation2 + $0x19]]  ;;  %v57_v14 = vld [vmem:[%s1349_s1 + $0x18] sm:$0xff]  ;;  %v52_v30 = vld [vmem:[%s1348_s0 + $0x50] sm:$0xff]  ;;  %v1134_v42 = vadd.f32 %v62_v23, %v50_v22  ;;  %v1137_v43 = vadd.f32 %v63_v29, %v51_v28 }
  0x12   :  { %s80_s29 = smul.f32 2.0, %s763_s24  ;;  %s769_s30 = sld [smem:[#allocation2 + $0x31]]  ;;  %v61_v15 = vld [vmem:[%s1349_s1 + $0x38] sm:$0xff]  ;;  %v1098_v26 = vadd.f32 %v57_v14, %v45_v12  ;;  %v64_v31 = vld [vmem:[%s1349_s1 + $0x50] sm:$0xff] }
  0x13   :  { %s83_s3 = smul.f32 2.0, %s764_s25  ;;  %s770_s5 = sld [smem:[#allocation2 + $0x49]]  ;;  %v1100_v27 = vadd.f32 %v61_v15, %v49_v13  ;;  %v53_v32 = vld [vmem:[%s1348_s0 + $0x58] sm:$0xff]  ;;  %v1139_v44 = vadd.f32 %v64_v31, %v52_v30 }
  0x14   :  { %s81_s6 = sadd.f32 %s80_s29, %s78_s23  ;;  %s86_s7 = smul.f32 2.0, %s765_s2  ;;  %v65_v33 = vld [vmem:[%s1349_s1 + $0x58] sm:$0xff] }
  0x15   :  { %s771_s8 = sld [smem:[#allocation2 + $0x61]]  ;;  %s89_s10 = smul.f32 2.0, %s766_s26  ;;  %v1141_v45 = vadd.f32 %v65_v33, %v53_v32 }
  0x16   :  { %s84_s9 = sadd.f32 %s83_s3, %s81_s6 }
  0x17   :  { %s93_s11 = smul.f32 2.0, %s768_s28  ;;  %s1012_s12 = sld [smem:[#allocation2 + $0x2]] }
  0x18   :  { %s87_s13 = sadd.f32 %s86_s7, %s84_s9  ;;  %s96_s14 = smul.f32 2.0, %s769_s30 }
  0x19   :  { %s94_s15 = sadd.f32 %s767_s27, %s93_s11  ;;  %s99_s16 = smul.f32 2.0, %s770_s5 }
  0x1a   :  { %s1014_s17 = sadd.f32 %s89_s10, %s87_s13 }
  0x1b   :  { %s97_s18 = sadd.f32 %s96_s14, %s94_s15  ;;  %s102_s19 = smul.f32 2.0, %s771_s8 }
  0x1c   :  { %s1016_s20 = sld [smem:[#allocation2 + $0x1a]]  ;;  %v130_v24 = vstv %s1014_s17 }
  0x1d   :  { %s100_s28 = sadd.f32 %s99_s16, %s97_s18  ;;  %v131_v34 = vmul.f32 %v130_v24, %v1072_v16  ;;  %v132_v36 = vmul.f32 %v130_v24, %v1081_v18  ;;  %v133_v37 = vmul.f32 %v130_v24, %v1085_v20  ;;  %v134_v40 = vmul.f32 %v130_v24, %v1098_v26 }
  0x1e   :  { %s1030_s29 = sld [smem:[#allocation2 + $0x32]] }
  0x1f   :  { %s103_s9 = sadd.f32 %s102_s19, %s100_s28 }
  0x20   :  { %s1050_s18 = sld [smem:[#allocation2 + $0x4a]] }
  0x21   :  { %s1061_s2 = sld [smem:[#allocation2 + $0x62]]  ;;  %v135_v25 = vstv %s103_s9 }
  0x22   :  { %s106_s6 = smul.f32 2.0, %s1016_s20  ;;  %s1077_s7 = sld [smem:[#allocation4]]  ;;  %v136_v35 = vmul.f32 %v135_v25, %v1074_v17  ;;  %v137_v38 = vmul.f32 %v135_v25, %v1083_v19  ;;  %v138_v39 = vmul.f32 %v135_v25, %v1087_v21  ;;  %v139_v41 = vmul.f32 %v135_v25, %v1100_v27 }
  0x23   :  { %s1079_s8 = sld [smem:[#allocation4 + $0x8]] }
  0x24   :  { %s107_s20 = sadd.f32 %s1012_s12, %s106_s6  ;;  %s109_s15 = smul.f32 2.0, %s1030_s29  ;;  %v140_v46 = vadd.f32 %v136_v35, %v131_v34  ;;  %v141_v48 = vadd.f32 %v137_v38, %v132_v36  ;;  %v142_v49 = vadd.f32 %v138_v39, %v133_v37  ;;  %v143_v50 = vadd.f32 %v139_v41, %v134_v40 }
  0x25   :  { %s1102_s16 = sld [smem:[#allocation4 + $0x10]] }
  0x26   :  { %s110_s12 = sadd.f32 %s109_s15, %s107_s20  ;;  %s112_s17 = smul.f32 2.0, %s1050_s18 }
  0x27   :  { %s115_s3 = smul.f32 2.0, %s1061_s2  ;;  %s1124_s5 = sld [smem:[#allocation4 + $0x18]] }
  0x28   :  { %s113_s18 = sadd.f32 %s112_s17, %s110_s12 }
  0x29   :  { %s119_s0 = smul.f32 2.0, %s1079_s8  ;;  %s780_s1 = sld [smem:[#allocation4 + $0x20]] }
  0x2a   :  { %s116_s2 = sadd.f32 %s115_s3, %s113_s18 }
  0x2b   :  { %s120_s6 = sadd.f32 %s119_s0, %s1077_s7  ;;  %s122_s10 = smul.f32 2.0, %s1102_s16 }
  0x2c   :  { %v144_v47 = vstv %s116_s2  ;;  %s781_s11 = sld [smem:[#allocation2 + $0x3]] }
  0x2d   :  { %s123_s13 = sadd.f32 %s122_s10, %s120_s6  ;;  %s125_s14 = smul.f32 2.0, %s1124_s5  ;;  %v145_v51 = vmul.f32 %v144_v47, %v1134_v42  ;;  %v146_v52 = vmul.f32 %v144_v47, %v1137_v43  ;;  %v147_v53 = vmul.f32 %v144_v47, %v1139_v44  ;;  %v148_v54 = vmul.f32 %v144_v47, %v1141_v45 }
  0x2e   :  { %s782_s8 = sld [smem:[#allocation2 + $0x1b]] }
  0x2f   :  { %s126_s20 = sadd.f32 %s125_s14, %s123_s13  ;;  %s128_s7 = smul.f32 2.0, %s780_s1  ;;  %v149_v55 = vadd.f32 %v145_v51, %v140_v46  ;;  %v150_v56 = vadd.f32 %v146_v52, %v141_v48  ;;  %v151_v57 = vadd.f32 %v147_v53, %v142_v49  ;;  %v152_v58 = vadd.f32 %v148_v54, %v143_v50 }
  0x30   :  { %s783_s15 = sld [smem:[#allocation2 + $0x33]] }
  0x31   :  { %s129_s16 = sadd.f32 %s128_s7, %s126_s20 }
  0x32   :  { %s784_s21 = sld [smem:[#allocation2 + $0x4b]] }
  0x33   :  { %v153_v59 = vstv %s129_s16  ;;  %s785_s22 = sld [smem:[#allocation2 + $0x63]] }
  0x34   :  { %v154_v60 = vadd.f32 %v153_v59, %v149_v55  ;;  %v155_v61 = vadd.f32 %v153_v59, %v150_v56  ;;  %v156_v62 = vadd.f32 %v153_v59, %v151_v57  ;;  %s164_s23 = smul.f32 2.0, %s782_s8  ;;  %s786_s19 = sld [smem:[#allocation2 + $0x4]]  ;;  %v157_v63 = vadd.f32 %v153_v59, %v152_v58 }
  0x35   :  { %s787_s24 = sld [smem:[#allocation2 + $0x1c]] }
  0x36   :  { %158 = vst [vmem:[%s1352_s4] sm:$0xff] %v154_v60  ;;  %s165_s17 = sadd.f32 %s781_s11, %s164_s23  ;;  %s167_s29 = smul.f32 2.0, %s783_s15 }
  0x37   :  { %159 = vst [vmem:[%s1352_s4 + $0x8] sm:$0xff] %v155_v61  ;;  %s788_s27 = sld [smem:[#allocation2 + $0x34]] }
  0x38   :  { %160 = vst [vmem:[%s1352_s4 + $0x10] sm:$0xff] %v156_v62  ;;  %s168_s3 = sadd.f32 %s167_s29, %s165_s17  ;;  %s170_s5 = smul.f32 2.0, %s784_s21 }
  0x39   :  { %161 = vst [vmem:[%s1352_s4 + $0x18] sm:$0xff] %v157_v63  ;;  %s173_s1 = smul.f32 2.0, %s785_s22  ;;  %s789_s2 = sld [smem:[#allocation2 + $0x4c]] }
  0x3a   :  { %s171_s6 = sadd.f32 %s170_s5, %s168_s3 }
  0x3b   :  { %s177_s10 = smul.f32 2.0, %s787_s24  ;;  %s790_s11 = sld [smem:[#allocation2 + $0x64]] }
  0x3c   :  { %s174_s13 = sadd.f32 %s173_s1, %s171_s6 }
  0x3d   :  { %s178_s14 = sadd.f32 %s786_s19, %s177_s10  ;;  %s180_s8 = smul.f32 2.0, %s788_s27 }
  0x3e   :  { %s791_s20 = sld [smem:[#allocation2 + $0x5]]  ;;  %v214_v0 = vstv %s174_s13 }
  0x3f   :  { %s181_s7 = sadd.f32 %s180_s8, %s178_s14  ;;  %s183_s15 = smul.f32 2.0, %s789_s2  ;;  %v215_v2 = vmul.f32 %v214_v0, %v1072_v16  ;;  %v216_v4 = vmul.f32 %v214_v0, %v1081_v18  ;;  %v217_v5 = vmul.f32 %v214_v0, %v1085_v20  ;;  %v218_v8 = vmul.f32 %v214_v0, %v1098_v26 }
  0x40   :  { %s792_s16 = sld [smem:[#allocation2 + $0x1d]] }
  0x41   :  { %s184_s23 = sadd.f32 %s183_s15, %s181_s7  ;;  %s186_s25 = smul.f32 2.0, %s790_s11 }
  0x42   :  { %s793_s12 = sld [smem:[#allocation2 + $0x35]] }
  0x43   :  { %s187_s21 = sadd.f32 %s186_s25, %s184_s23 }
  0x44   :  { %s794_s17 = sld [smem:[#allocation2 + $0x4d]] }
  0x45   :  { %s795_s29 = sld [smem:[#allocation2 + $0x65]]  ;;  %v219_v1 = vstv %s187_s21 }
  0x46   :  { %s190_s9 = smul.f32 2.0, %s792_s16  ;;  %s796_s26 = sld [smem:[#allocation4 + $0x1]]  ;;  %v220_v3 = vmul.f32 %v219_v1, %v1074_v17  ;;  %v221_v6 = vmul.f32 %v219_v1, %v1083_v19  ;;  %v222_v7 = vmul.f32 %v219_v1, %v1087_v21  ;;  %v223_v9 = vmul.f32 %v219_v1, %v1100_v27 }
  0x47   :  { %s797_s22 = sld [smem:[#allocation4 + $0x9]] }
  0x48   :  { %s191_s28 = sadd.f32 %s791_s20, %s190_s9  ;;  %s193_s30 = smul.f32 2.0, %s793_s12  ;;  %v224_v10 = vadd.f32 %v220_v3, %v215_v2  ;;  %v225_v12 = vadd.f32 %v221_v6, %v216_v4  ;;  %v226_v13 = vadd.f32 %v222_v7, %v217_v5  ;;  %v227_v14 = vadd.f32 %v223_v9, %v218_v8 }
  0x49   :  { %s798_s24 = sld [smem:[#allocation4 + $0x11]] }
  0x4a   :  { %s194_s19 = sadd.f32 %s193_s30, %s191_s28  ;;  %s196_s27 = smul.f32 2.0, %s794_s17 }
  0x4b   :  { %s199_s3 = smul.f32 2.0, %s795_s29  ;;  %s1162_s5 = sld [smem:[#allocation4 + $0x19]] }
  0x4c   :  { %s197_s18 = sadd.f32 %s196_s27, %s194_s19 }
  0x4d   :  { %s203_s0 = smul.f32 2.0, %s797_s22  ;;  %s800_s1 = sld [smem:[#allocation4 + $0x21]] }
  0x4e   :  { %s200_s2 = sadd.f32 %s199_s3, %s197_s18 }
  0x4f   :  { %s204_s6 = sadd.f32 %s796_s26, %s203_s0  ;;  %s206_s10 = smul.f32 2.0, %s798_s24 }
  0x50   :  { %v228_v11 = vstv %s200_s2  ;;  %s805_s11 = sld [smem:[#allocation2 + $0x6]] }
  0x51   :  { %s207_s13 = sadd.f32 %s206_s10, %s204_s6  ;;  %s209_s14 = smul.f32 2.0, %s1162_s5  ;;  %v229_v15 = vmul.f32 %v228_v11, %v1134_v42  ;;  %v230_v22 = vmul.f32 %v228_v11, %v1137_v43  ;;  %v231_v23 = vmul.f32 %v228_v11, %v1139_v44  ;;  %v232_v24 = vmul.f32 %v228_v11, %v1141_v45 }
  0x52   :  { %s806_s8 = sld [smem:[#allocation2 + $0x1e]] }
  0x53   :  { %s210_s20 = sadd.f32 %s209_s14, %s207_s13  ;;  %s212_s7 = smul.f32 2.0, %s800_s1  ;;  %v233_v25 = vadd.f32 %v229_v15, %v224_v10  ;;  %v234_v28 = vadd.f32 %v230_v22, %v225_v12  ;;  %v235_v29 = vadd.f32 %v231_v23, %v226_v13  ;;  %v236_v30 = vadd.f32 %v232_v24, %v227_v14 }
  0x54   :  { %s807_s15 = sld [smem:[#allocation2 + $0x36]] }
  0x55   :  { %s213_s16 = sadd.f32 %s212_s7, %s210_s20 }
  0x56   :  { %s808_s23 = sld [smem:[#allocation2 + $0x4e]] }
  0x57   :  { %v237_v31 = vstv %s213_s16  ;;  %s809_s25 = sld [smem:[#allocation2 + $0x66]] }
  0x58   :  { %v238_v32 = vadd.f32 %v237_v31, %v233_v25  ;;  %v239_v33 = vadd.f32 %v237_v31, %v234_v28  ;;  %v240_v34 = vadd.f32 %v237_v31, %v235_v29  ;;  %s249_s12 = smul.f32 2.0, %s806_s8  ;;  %s810_s21 = sld [smem:[#allocation2 + $0x7]]  ;;  %v241_v35 = vadd.f32 %v237_v31, %v236_v30 }
  0x59   :  { %s811_s17 = sld [smem:[#allocation2 + $0x1f]] }
  0x5a   :  { %801 = vst [vmem:[%s1352_s4 + $0x20] sm:$0xff] %v238_v32  ;;  %s250_s26 = sadd.f32 %s805_s11, %s249_s12  ;;  %s252_s22 = smul.f32 2.0, %s807_s15 }
  0x5b   :  { %802 = vst [vmem:[%s1352_s4 + $0x28] sm:$0xff] %v239_v33  ;;  %s812_s24 = sld [smem:[#allocation2 + $0x37]] }
  0x5c   :  { %803 = vst [vmem:[%s1352_s4 + $0x30] sm:$0xff] %v240_v34  ;;  %s253_s3 = sadd.f32 %s252_s22, %s250_s26  ;;  %s255_s5 = smul.f32 2.0, %s808_s23 }
  0x5d   :  { %804 = vst [vmem:[%s1352_s4 + $0x38] sm:$0xff] %v241_v35  ;;  %s258_s1 = smul.f32 2.0, %s809_s25  ;;  %s813_s2 = sld [smem:[#allocation2 + $0x4f]] }
  0x5e   :  { %s256_s6 = sadd.f32 %s255_s5, %s253_s3 }
  0x5f   :  { %s262_s10 = smul.f32 2.0, %s811_s17  ;;  %s814_s11 = sld [smem:[#allocation2 + $0x67]] }
  0x60   :  { %s259_s13 = sadd.f32 %s258_s1, %s256_s6 }
  0x61   :  { %s263_s14 = sadd.f32 %s810_s21, %s262_s10  ;;  %s265_s8 = smul.f32 2.0, %s812_s24 }
  0x62   :  { %s815_s20 = sld [smem:[#allocation2 + $0x8]]  ;;  %v299_v36 = vstv %s259_s13 }
  0x63   :  { %s266_s7 = sadd.f32 %s265_s8, %s263_s14  ;;  %s268_s15 = smul.f32 2.0, %s813_s2  ;;  %v300_v38 = vmul.f32 %v299_v36, %v1072_v16  ;;  %v301_v40 = vmul.f32 %v299_v36, %v1081_v18  ;;  %v302_v41 = vmul.f32 %v299_v36, %v1085_v20  ;;  %v303_v48 = vmul.f32 %v299_v36, %v1098_v26 }
  0x64   :  { %s816_s16 = sld [smem:[#allocation2 + $0x20]] }
  0x65   :  { %s269_s12 = sadd.f32 %s268_s15, %s266_s7  ;;  %s271_s29 = smul.f32 2.0, %s814_s11 }
  0x66   :  { %s817_s9 = sld [smem:[#allocation2 + $0x38]] }
  0x67   :  { %s272_s23 = sadd.f32 %s271_s29, %s269_s12 }
  0x68   :  { %s818_s26 = sld [smem:[#allocation2 + $0x50]] }
  0x69   :  { %s819_s22 = sld [smem:[#allocation2 + $0x68]]  ;;  %v304_v37 = vstv %s272_s23 }
  0x6a   :  { %s275_s28 = smul.f32 2.0, %s816_s16  ;;  %s820_s30 = sld [smem:[#allocation4 + $0x2]]  ;;  %v305_v39 = vmul.f32 %v304_v37, %v1074_v17  ;;  %v306_v46 = vmul.f32 %v304_v37, %v1083_v19  ;;  %v307_v47 = vmul.f32 %v304_v37, %v1087_v21  ;;  %v308_v49 = vmul.f32 %v304_v37, %v1100_v27 }
  0x6b   :  { %s821_s25 = sld [smem:[#allocation4 + $0xa]] }
  0x6c   :  { %s276_s19 = sadd.f32 %s815_s20, %s275_s28  ;;  %s278_s27 = smul.f32 2.0, %s817_s9  ;;  %v309_v50 = vadd.f32 %v305_v39, %v300_v38  ;;  %v310_v52 = vadd.f32 %v306_v46, %v301_v40  ;;  %v311_v53 = vadd.f32 %v307_v47, %v302_v41  ;;  %v312_v54 = vadd.f32 %v308_v49, %v303_v48 }
  0x6d   :  { %s822_s17 = sld [smem:[#allocation4 + $0x12]] }
  0x6e   :  { %s279_s21 = sadd.f32 %s278_s27, %s276_s19  ;;  %s281_s24 = smul.f32 2.0, %s818_s26 }
  0x6f   :  { %s284_s3 = smul.f32 2.0, %s819_s22  ;;  %s1189_s5 = sld [smem:[#allocation4 + $0x1a]] }
  0x70   :  { %s282_s18 = sadd.f32 %s281_s24, %s279_s21 }
  0x71   :  { %s288_s0 = smul.f32 2.0, %s821_s25  ;;  %s824_s1 = sld [smem:[#allocation4 + $0x22]] }
  0x72   :  { %s285_s2 = sadd.f32 %s284_s3, %s282_s18 }
  0x73   :  { %s289_s6 = sadd.f32 %s820_s30, %s288_s0  ;;  %s291_s10 = smul.f32 2.0, %s822_s17 }
  0x74   :  { %v313_v51 = vstv %s285_s2  ;;  %s829_s11 = sld [smem:[#allocation2 + $0x9]] }
  0x75   :  { %s292_s13 = sadd.f32 %s291_s10, %s289_s6  ;;  %s294_s14 = smul.f32 2.0, %s1189_s5  ;;  %v314_v55 = vmul.f32 %v313_v51, %v1134_v42  ;;  %v315_v56 = vmul.f32 %v313_v51, %v1137_v43  ;;  %v316_v57 = vmul.f32 %v313_v51, %v1139_v44  ;;  %v317_v58 = vmul.f32 %v313_v51, %v1141_v45 }
  0x76   :  { %s830_s8 = sld [smem:[#allocation2 + $0x21]] }
  0x77   :  { %s295_s20 = sadd.f32 %s294_s14, %s292_s13  ;;  %s297_s7 = smul.f32 2.0, %s824_s1  ;;  %v318_v59 = vadd.f32 %v314_v55, %v309_v50  ;;  %v319_v60 = vadd.f32 %v315_v56, %v310_v52  ;;  %v320_v61 = vadd.f32 %v316_v57, %v311_v53  ;;  %v321_v62 = vadd.f32 %v317_v58, %v312_v54 }
  0x78   :  { %s831_s15 = sld [smem:[#allocation2 + $0x39]] }
  0x79   :  { %s298_s16 = sadd.f32 %s297_s7, %s295_s20 }
  0x7a   :  { %s832_s12 = sld [smem:[#allocation2 + $0x51]] }
  0x7b   :  { %v322_v63 = vstv %s298_s16  ;;  %s833_s29 = sld [smem:[#allocation2 + $0x69]] }
  0x7c   :  { %v323_v0 = vadd.f32 %v322_v63, %v318_v59  ;;  %v324_v1 = vadd.f32 %v322_v63, %v319_v60  ;;  %v325_v2 = vadd.f32 %v322_v63, %v320_v61  ;;  %s334_s9 = smul.f32 2.0, %s830_s8  ;;  %s834_s23 = sld [smem:[#allocation2 + $0xa]]  ;;  %v326_v3 = vadd.f32 %v322_v63, %v321_v62 }
  0x7d   :  { %s835_s26 = sld [smem:[#allocation2 + $0x22]] }
  0x7e   :  { %825 = vst [vmem:[%s1352_s4 + $0x40] sm:$0xff] %v323_v0  ;;  %s335_s30 = sadd.f32 %s829_s11, %s334_s9  ;;  %s337_s25 = smul.f32 2.0, %s831_s15 }
  0x7f   :  { %826 = vst [vmem:[%s1352_s4 + $0x48] sm:$0xff] %v324_v1  ;;  %s836_s17 = sld [smem:[#allocation2 + $0x3a]] }
  0x80   :  { %827 = vst [vmem:[%s1352_s4 + $0x50] sm:$0xff] %v325_v2  ;;  %s338_s3 = sadd.f32 %s337_s25, %s335_s30  ;;  %s340_s5 = smul.f32 2.0, %s832_s12 }
  0x81   :  { %828 = vst [vmem:[%s1352_s4 + $0x58] sm:$0xff] %v326_v3  ;;  %s343_s1 = smul.f32 2.0, %s833_s29  ;;  %s837_s2 = sld [smem:[#allocation2 + $0x52]] }
  0x82   :  { %s341_s6 = sadd.f32 %s340_s5, %s338_s3 }
  0x83   :  { %s347_s10 = smul.f32 2.0, %s835_s26  ;;  %s838_s11 = sld [smem:[#allocation2 + $0x6a]] }
  0x84   :  { %s344_s13 = sadd.f32 %s343_s1, %s341_s6 }
  0x85   :  { %s348_s14 = sadd.f32 %s834_s23, %s347_s10  ;;  %s350_s8 = smul.f32 2.0, %s836_s17 }
  0x86   :  { %s839_s20 = sld [smem:[#allocation2 + $0xb]]  ;;  %v384_v4 = vstv %s344_s13 }
  0x87   :  { %s351_s7 = sadd.f32 %s350_s8, %s348_s14  ;;  %s353_s15 = smul.f32 2.0, %s837_s2  ;;  %v385_v6 = vmul.f32 %v384_v4, %v1072_v16  ;;  %v386_v8 = vmul.f32 %v384_v4, %v1081_v18  ;;  %v387_v9 = vmul.f32 %v384_v4, %v1085_v20  ;;  %v388_v12 = vmul.f32 %v384_v4, %v1098_v26 }
  0x88   :  { %s840_s16 = sld [smem:[#allocation2 + $0x23]] }
  0x89   :  { %s354_s9 = sadd.f32 %s353_s15, %s351_s7  ;;  %s356_s22 = smul.f32 2.0, %s838_s11 }
  0x8a   :  { %s841_s28 = sld [smem:[#allocation2 + $0x3b]] }
  0x8b   :  { %s357_s12 = sadd.f32 %s356_s22, %s354_s9 }
  0x8c   :  { %s842_s30 = sld [smem:[#allocation2 + $0x53]] }
  0x8d   :  { %s843_s25 = sld [smem:[#allocation2 + $0x6b]]  ;;  %v389_v5 = vstv %s357_s12 }
  0x8e   :  { %s360_s19 = smul.f32 2.0, %s840_s16  ;;  %s844_s27 = sld [smem:[#allocation4 + $0x3]]  ;;  %v390_v7 = vmul.f32 %v389_v5, %v1074_v17  ;;  %v391_v10 = vmul.f32 %v389_v5, %v1083_v19  ;;  %v392_v11 = vmul.f32 %v389_v5, %v1087_v21  ;;  %v393_v13 = vmul.f32 %v389_v5, %v1100_v27 }
  0x8f   :  { %s845_s29 = sld [smem:[#allocation4 + $0xb]] }
  0x90   :  { %s361_s21 = sadd.f32 %s839_s20, %s360_s19  ;;  %s363_s24 = smul.f32 2.0, %s841_s28  ;;  %v394_v14 = vadd.f32 %v390_v7, %v385_v6  ;;  %v395_v22 = vadd.f32 %v391_v10, %v386_v8  ;;  %v396_v23 = vadd.f32 %v392_v11, %v387_v9  ;;  %v397_v24 = vadd.f32 %v393_v13, %v388_v12 }
  0x91   :  { %s846_s26 = sld [smem:[#allocation4 + $0x13]] }
  0x92   :  { %s364_s23 = sadd.f32 %s363_s24, %s361_s21  ;;  %s366_s17 = smul.f32 2.0, %s842_s30 }
  0x93   :  { %s369_s3 = smul.f32 2.0, %s843_s25  ;;  %s1216_s5 = sld [smem:[#allocation4 + $0x1b]] }
  0x94   :  { %s367_s18 = sadd.f32 %s366_s17, %s364_s23 }
  0x95   :  { %s373_s0 = smul.f32 2.0, %s845_s29  ;;  %s848_s1 = sld [smem:[#allocation4 + $0x23]] }
  0x96   :  { %s370_s2 = sadd.f32 %s369_s3, %s367_s18 }
  0x97   :  { %s374_s6 = sadd.f32 %s844_s27, %s373_s0  ;;  %s376_s10 = smul.f32 2.0, %s846_s26 }
  0x98   :  { %v398_v15 = vstv %s370_s2  ;;  %s853_s11 = sld [smem:[#allocation2 + $0xc]] }
  0x99   :  { %s377_s13 = sadd.f32 %s376_s10, %s374_s6  ;;  %s379_s14 = smul.f32 2.0, %s1216_s5  ;;  %v399_v25 = vmul.f32 %v398_v15, %v1134_v42  ;;  %v400_v28 = vmul.f32 %v398_v15, %v1137_v43  ;;  %v401_v29 = vmul.f32 %v398_v15, %v1139_v44  ;;  %v402_v30 = vmul.f32 %v398_v15, %v1141_v45 }
  0x9a   :  { %s854_s8 = sld [smem:[#allocation2 + $0x24]] }
  0x9b   :  { %s380_s20 = sadd.f32 %s379_s14, %s377_s13  ;;  %s382_s7 = smul.f32 2.0, %s848_s1  ;;  %v403_v31 = vadd.f32 %v399_v25, %v394_v14  ;;  %v404_v32 = vadd.f32 %v400_v28, %v395_v22  ;;  %v405_v33 = vadd.f32 %v401_v29, %v396_v23  ;;  %v406_v34 = vadd.f32 %v402_v30, %v397_v24 }
  0x9c   :  { %s855_s15 = sld [smem:[#allocation2 + $0x3c]] }
  0x9d   :  { %s383_s16 = sadd.f32 %s382_s7, %s380_s20 }
  0x9e   :  { %s856_s9 = sld [smem:[#allocation2 + $0x54]] }
  0x9f   :  { %v407_v35 = vstv %s383_s16  ;;  %s857_s22 = sld [smem:[#allocation2 + $0x6c]] }
  0xa0   :  { %v408_v36 = vadd.f32 %v407_v35, %v403_v31  ;;  %v409_v37 = vadd.f32 %v407_v35, %v404_v32  ;;  %v410_v38 = vadd.f32 %v407_v35, %v405_v33  ;;  %s419_s28 = smul.f32 2.0, %s854_s8  ;;  %s858_s12 = sld [smem:[#allocation2 + $0xd]]  ;;  %v411_v39 = vadd.f32 %v407_v35, %v406_v34 }
  0xa1   :  { %s859_s30 = sld [smem:[#allocation2 + $0x25]] }
  0xa2   :  { %849 = vst [vmem:[%s1352_s4 + $0x60] sm:$0xff] %v408_v36  ;;  %s420_s27 = sadd.f32 %s853_s11, %s419_s28  ;;  %s422_s29 = smul.f32 2.0, %s855_s15 }
  0xa3   :  { %850 = vst [vmem:[%s1352_s4 + $0x68] sm:$0xff] %v409_v37  ;;  %s860_s26 = sld [smem:[#allocation2 + $0x3d]] }
  0xa4   :  { %851 = vst [vmem:[%s1352_s4 + $0x70] sm:$0xff] %v410_v38  ;;  %s423_s3 = sadd.f32 %s422_s29, %s420_s27  ;;  %s425_s5 = smul.f32 2.0, %s856_s9 }
  0xa5   :  { %852 = vst [vmem:[%s1352_s4 + $0x78] sm:$0xff] %v411_v39  ;;  %s428_s1 = smul.f32 2.0, %s857_s22  ;;  %s861_s2 = sld [smem:[#allocation2 + $0x55]] }
  0xa6   :  { %s426_s6 = sadd.f32 %s425_s5, %s423_s3 }
  0xa7   :  { %s432_s10 = smul.f32 2.0, %s859_s30  ;;  %s862_s11 = sld [smem:[#allocation2 + $0x6d]] }
  0xa8   :  { %s429_s13 = sadd.f32 %s428_s1, %s426_s6 }
  0xa9   :  { %s433_s14 = sadd.f32 %s858_s12, %s432_s10  ;;  %s435_s8 = smul.f32 2.0, %s860_s26 }
  0xaa   :  { %s863_s20 = sld [smem:[#allocation2 + $0xe]]  ;;  %v469_v40 = vstv %s429_s13 }
  0xab   :  { %s436_s7 = sadd.f32 %s435_s8, %s433_s14  ;;  %s438_s15 = smul.f32 2.0, %s861_s2  ;;  %v470_v46 = vmul.f32 %v469_v40, %v1072_v16  ;;  %v471_v48 = vmul.f32 %v469_v40, %v1081_v18  ;;  %v472_v49 = vmul.f32 %v469_v40, %v1085_v20  ;;  %v473_v52 = vmul.f32 %v469_v40, %v1098_v26 }
  0xac   :  { %s864_s16 = sld [smem:[#allocation2 + $0x26]] }
  0xad   :  { %s439_s28 = sadd.f32 %s438_s15, %s436_s7  ;;  %s441_s25 = smul.f32 2.0, %s862_s11 }
  0xae   :  { %s865_s19 = sld [smem:[#allocation2 + $0x3e]] }
  0xaf   :  { %s442_s9 = sadd.f32 %s441_s25, %s439_s28 }
  0xb0   :  { %s866_s27 = sld [smem:[#allocation2 + $0x56]] }
  0xb1   :  { %s867_s29 = sld [smem:[#allocation2 + $0x6e]]  ;;  %v474_v41 = vstv %s442_s9 }
  0xb2   :  { %s445_s21 = smul.f32 2.0, %s864_s16  ;;  %s868_s24 = sld [smem:[#allocation4 + $0x4]]  ;;  %v475_v47 = vmul.f32 %v474_v41, %v1074_v17  ;;  %v476_v50 = vmul.f32 %v474_v41, %v1083_v19  ;;  %v477_v51 = vmul.f32 %v474_v41, %v1087_v21  ;;  %v478_v53 = vmul.f32 %v474_v41, %v1100_v27 }
  0xb3   :  { %s869_s22 = sld [smem:[#allocation4 + $0xc]] }
  0xb4   :  { %s446_s23 = sadd.f32 %s863_s20, %s445_s21  ;;  %s448_s17 = smul.f32 2.0, %s865_s19  ;;  %v479_v54 = vadd.f32 %v475_v47, %v470_v46  ;;  %v480_v56 = vadd.f32 %v476_v50, %v471_v48  ;;  %v481_v57 = vadd.f32 %v477_v51, %v472_v49  ;;  %v482_v58 = vadd.f32 %v478_v53, %v473_v52 }
  0xb5   :  { %s870_s30 = sld [smem:[#allocation4 + $0x14]] }
  0xb6   :  { %s449_s12 = sadd.f32 %s448_s17, %s446_s23  ;;  %s451_s26 = smul.f32 2.0, %s866_s27 }
  0xb7   :  { %s454_s3 = smul.f32 2.0, %s867_s29  ;;  %s1243_s5 = sld [smem:[#allocation4 + $0x1c]] }
  0xb8   :  { %s452_s18 = sadd.f32 %s451_s26, %s449_s12 }
  0xb9   :  { %s458_s0 = smul.f32 2.0, %s869_s22  ;;  %s872_s1 = sld [smem:[#allocation4 + $0x24]] }
  0xba   :  { %s455_s2 = sadd.f32 %s454_s3, %s452_s18 }
  0xbb   :  { %s459_s6 = sadd.f32 %s868_s24, %s458_s0  ;;  %s461_s10 = smul.f32 2.0, %s870_s30 }
  0xbc   :  { %v483_v55 = vstv %s455_s2  ;;  %s877_s11 = sld [smem:[#allocation2 + $0xf]] }
  0xbd   :  { %s462_s13 = sadd.f32 %s461_s10, %s459_s6  ;;  %s464_s14 = smul.f32 2.0, %s1243_s5  ;;  %v484_v59 = vmul.f32 %v483_v55, %v1134_v42  ;;  %v485_v60 = vmul.f32 %v483_v55, %v1137_v43  ;;  %v486_v61 = vmul.f32 %v483_v55, %v1139_v44  ;;  %v487_v62 = vmul.f32 %v483_v55, %v1141_v45 }
  0xbe   :  { %s878_s8 = sld [smem:[#allocation2 + $0x27]] }
  0xbf   :  { %s465_s20 = sadd.f32 %s464_s14, %s462_s13  ;;  %s467_s7 = smul.f32 2.0, %s872_s1  ;;  %v488_v63 = vadd.f32 %v484_v59, %v479_v54  ;;  %v489_v0 = vadd.f32 %v485_v60, %v480_v56  ;;  %v490_v1 = vadd.f32 %v486_v61, %v481_v57  ;;  %v491_v2 = vadd.f32 %v487_v62, %v482_v58 }
  0xc0   :  { %s879_s15 = sld [smem:[#allocation2 + $0x3f]] }
  0xc1   :  { %s468_s16 = sadd.f32 %s467_s7, %s465_s20 }
  0xc2   :  { %s880_s28 = sld [smem:[#allocation2 + $0x57]] }
  0xc3   :  { %v492_v3 = vstv %s468_s16  ;;  %s881_s25 = sld [smem:[#allocation2 + $0x6f]] }
  0xc4   :  { %v493_v4 = vadd.f32 %v492_v3, %v488_v63  ;;  %v494_v5 = vadd.f32 %v492_v3, %v489_v0  ;;  %v495_v6 = vadd.f32 %v492_v3, %v490_v1  ;;  %s504_s19 = smul.f32 2.0, %s878_s8  ;;  %s882_s9 = sld [smem:[#allocation2 + $0x10]]  ;;  %v496_v7 = vadd.f32 %v492_v3, %v491_v2 }
  0xc5   :  { %s883_s27 = sld [smem:[#allocation2 + $0x28]] }
  0xc6   :  { %873 = vst [vmem:[%s1352_s4 + $0x80] sm:$0xff] %v493_v4  ;;  %s505_s24 = sadd.f32 %s877_s11, %s504_s19  ;;  %s507_s22 = smul.f32 2.0, %s879_s15 }
  0xc7   :  { %874 = vst [vmem:[%s1352_s4 + $0x88] sm:$0xff] %v494_v5  ;;  %s884_s30 = sld [smem:[#allocation2 + $0x40]] }
  0xc8   :  { %875 = vst [vmem:[%s1352_s4 + $0x90] sm:$0xff] %v495_v6  ;;  %s508_s3 = sadd.f32 %s507_s22, %s505_s24  ;;  %s510_s5 = smul.f32 2.0, %s880_s28 }
  0xc9   :  { %876 = vst [vmem:[%s1352_s4 + $0x98] sm:$0xff] %v496_v7  ;;  %s513_s1 = smul.f32 2.0, %s881_s25  ;;  %s885_s2 = sld [smem:[#allocation2 + $0x58]] }
  0xca   :  { %s511_s6 = sadd.f32 %s510_s5, %s508_s3 }
  0xcb   :  { %s517_s10 = smul.f32 2.0, %s883_s27  ;;  %s886_s11 = sld [smem:[#allocation2 + $0x70]] }
  0xcc   :  { %s514_s13 = sadd.f32 %s513_s1, %s511_s6 }
  0xcd   :  { %s518_s14 = sadd.f32 %s882_s9, %s517_s10  ;;  %s520_s8 = smul.f32 2.0, %s884_s30 }
  0xce   :  { %s887_s20 = sld [smem:[#allocation2 + $0x11]]  ;;  %v554_v8 = vstv %s514_s13 }
  0xcf   :  { %s521_s7 = sadd.f32 %s520_s8, %s518_s14  ;;  %s523_s15 = smul.f32 2.0, %s885_s2  ;;  %v555_v10 = vmul.f32 %v554_v8, %v1072_v16  ;;  %v556_v12 = vmul.f32 %v554_v8, %v1081_v18  ;;  %v557_v13 = vmul.f32 %v554_v8, %v1085_v20  ;;  %v558_v22 = vmul.f32 %v554_v8, %v1098_v26 }
  0xd0   :  { %s888_s16 = sld [smem:[#allocation2 + $0x29]] }
  0xd1   :  { %s524_s19 = sadd.f32 %s523_s15, %s521_s7  ;;  %s526_s29 = smul.f32 2.0, %s886_s11 }
  0xd2   :  { %s889_s21 = sld [smem:[#allocation2 + $0x41]] }
  0xd3   :  { %s527_s28 = sadd.f32 %s526_s29, %s524_s19 }
  0xd4   :  { %s890_s24 = sld [smem:[#allocation2 + $0x59]] }
  0xd5   :  { %s891_s22 = sld [smem:[#allocation2 + $0x71]]  ;;  %v559_v9 = vstv %s527_s28 }
  0xd6   :  { %s530_s23 = smul.f32 2.0, %s888_s16  ;;  %s892_s17 = sld [smem:[#allocation4 + $0x5]]  ;;  %v560_v11 = vmul.f32 %v559_v9, %v1074_v17  ;;  %v561_v14 = vmul.f32 %v559_v9, %v1083_v19  ;;  %v562_v15 = vmul.f32 %v559_v9, %v1087_v21  ;;  %v563_v23 = vmul.f32 %v559_v9, %v1100_v27 }
  0xd7   :  { %s893_s25 = sld [smem:[#allocation4 + $0xd]] }
  0xd8   :  { %s531_s12 = sadd.f32 %s887_s20, %s530_s23  ;;  %s533_s26 = smul.f32 2.0, %s889_s21  ;;  %v564_v24 = vadd.f32 %v560_v11, %v555_v10  ;;  %v565_v28 = vadd.f32 %v561_v14, %v556_v12  ;;  %v566_v29 = vadd.f32 %v562_v15, %v557_v13  ;;  %v567_v30 = vadd.f32 %v563_v23, %v558_v22 }
  0xd9   :  { %s894_s27 = sld [smem:[#allocation4 + $0x15]] }
  0xda   :  { %s534_s9 = sadd.f32 %s533_s26, %s531_s12  ;;  %s536_s30 = smul.f32 2.0, %s890_s24 }
  0xdb   :  { %s539_s3 = smul.f32 2.0, %s891_s22  ;;  %s1270_s5 = sld [smem:[#allocation4 + $0x1d]] }
  0xdc   :  { %s537_s18 = sadd.f32 %s536_s30, %s534_s9 }
  0xdd   :  { %s543_s0 = smul.f32 2.0, %s893_s25  ;;  %s896_s1 = sld [smem:[#allocation4 + $0x25]] }
  0xde   :  { %s540_s2 = sadd.f32 %s539_s3, %s537_s18 }
  0xdf   :  { %s544_s6 = sadd.f32 %s892_s17, %s543_s0  ;;  %s546_s10 = smul.f32 2.0, %s894_s27 }
  0xe0   :  { %v568_v25 = vstv %s540_s2  ;;  %s901_s11 = sld [smem:[#allocation2 + $0x12]] }
  0xe1   :  { %s547_s13 = sadd.f32 %s546_s10, %s544_s6  ;;  %s549_s14 = smul.f32 2.0, %s1270_s5  ;;  %v569_v31 = vmul.f32 %v568_v25, %v1134_v42  ;;  %v570_v32 = vmul.f32 %v568_v25, %v1137_v43  ;;  %v571_v33 = vmul.f32 %v568_v25, %v1139_v44  ;;  %v572_v34 = vmul.f32 %v568_v25, %v1141_v45 }
  0xe2   :  { %s902_s8 = sld [smem:[#allocation2 + $0x2a]] }
  0xe3   :  { %s550_s20 = sadd.f32 %s549_s14, %s547_s13  ;;  %s552_s7 = smul.f32 2.0, %s896_s1  ;;  %v573_v35 = vadd.f32 %v569_v31, %v564_v24  ;;  %v574_v36 = vadd.f32 %v570_v32, %v565_v28  ;;  %v575_v37 = vadd.f32 %v571_v33, %v566_v29  ;;  %v576_v38 = vadd.f32 %v572_v34, %v567_v30 }
  0xe4   :  { %s903_s15 = sld [smem:[#allocation2 + $0x42]] }
  0xe5   :  { %s553_s16 = sadd.f32 %s552_s7, %s550_s20 }
  0xe6   :  { %s904_s19 = sld [smem:[#allocation2 + $0x5a]] }
  0xe7   :  { %v577_v39 = vstv %s553_s16  ;;  %s905_s29 = sld [smem:[#allocation2 + $0x72]] }
  0xe8   :  { %v578_v40 = vadd.f32 %v577_v39, %v573_v35  ;;  %v579_v41 = vadd.f32 %v577_v39, %v574_v36  ;;  %v580_v46 = vadd.f32 %v577_v39, %v575_v37  ;;  %s589_s21 = smul.f32 2.0, %s902_s8  ;;  %s906_s28 = sld [smem:[#allocation2 + $0x13]]  ;;  %v581_v47 = vadd.f32 %v577_v39, %v576_v38 }
  0xe9   :  { %s907_s24 = sld [smem:[#allocation2 + $0x2b]] }
  0xea   :  { %897 = vst [vmem:[%s1352_s4 + $0xa0] sm:$0xff] %v578_v40  ;;  %s590_s17 = sadd.f32 %s901_s11, %s589_s21  ;;  %s592_s25 = smul.f32 2.0, %s903_s15 }
  0xeb   :  { %898 = vst [vmem:[%s1352_s4 + $0xa8] sm:$0xff] %v579_v41  ;;  %s908_s27 = sld [smem:[#allocation2 + $0x43]] }
  0xec   :  { %899 = vst [vmem:[%s1352_s4 + $0xb0] sm:$0xff] %v580_v46  ;;  %s593_s3 = sadd.f32 %s592_s25, %s590_s17  ;;  %s595_s5 = smul.f32 2.0, %s904_s19 }
  0xed   :  { %900 = vst [vmem:[%s1352_s4 + $0xb8] sm:$0xff] %v581_v47  ;;  %s598_s1 = smul.f32 2.0, %s905_s29  ;;  %s909_s2 = sld [smem:[#allocation2 + $0x5b]] }
  0xee   :  { %s596_s6 = sadd.f32 %s595_s5, %s593_s3 }
  0xef   :  { %s602_s10 = smul.f32 2.0, %s907_s24  ;;  %s910_s11 = sld [smem:[#allocation2 + $0x73]] }
  0xf0   :  { %s599_s13 = sadd.f32 %s598_s1, %s596_s6 }
  0xf1   :  { %s603_s14 = sadd.f32 %s906_s28, %s602_s10  ;;  %s605_s8 = smul.f32 2.0, %s908_s27 }
  0xf2   :  { %s911_s20 = sld [smem:[#allocation2 + $0x14]]  ;;  %v639_v48 = vstv %s599_s13 }
  0xf3   :  { %s606_s7 = sadd.f32 %s605_s8, %s603_s14  ;;  %s608_s15 = smul.f32 2.0, %s909_s2  ;;  %v640_v50 = vmul.f32 %v639_v48, %v1072_v16  ;;  %v641_v52 = vmul.f32 %v639_v48, %v1081_v18  ;;  %v642_v53 = vmul.f32 %v639_v48, %v1085_v20  ;;  %v643_v56 = vmul.f32 %v639_v48, %v1098_v26 }
  0xf4   :  { %s912_s16 = sld [smem:[#allocation2 + $0x2c]] }
  0xf5   :  { %s609_s21 = sadd.f32 %s608_s15, %s606_s7  ;;  %s611_s22 = smul.f32 2.0, %s910_s11 }
  0xf6   :  { %s913_s23 = sld [smem:[#allocation2 + $0x44]] }
  0xf7   :  { %s612_s19 = sadd.f32 %s611_s22, %s609_s21 }
  0xf8   :  { %s914_s17 = sld [smem:[#allocation2 + $0x5c]] }
  0xf9   :  { %s915_s25 = sld [smem:[#allocation2 + $0x74]]  ;;  %v644_v49 = vstv %s612_s19 }
  0xfa   :  { %s615_s12 = smul.f32 2.0, %s912_s16  ;;  %s916_s26 = sld [smem:[#allocation4 + $0x6]]  ;;  %v645_v51 = vmul.f32 %v644_v49, %v1074_v17  ;;  %v646_v54 = vmul.f32 %v644_v49, %v1083_v19  ;;  %v647_v55 = vmul.f32 %v644_v49, %v1087_v21  ;;  %v648_v57 = vmul.f32 %v644_v49, %v1100_v27 }
  0xfb   :  { %s917_s29 = sld [smem:[#allocation4 + $0xe]] }
  0xfc   :  { %s616_s9 = sadd.f32 %s911_s20, %s615_s12  ;;  %s618_s30 = smul.f32 2.0, %s913_s23  ;;  %v649_v58 = vadd.f32 %v645_v51, %v640_v50  ;;  %v650_v60 = vadd.f32 %v646_v54, %v641_v52  ;;  %v651_v61 = vadd.f32 %v647_v55, %v642_v53  ;;  %v652_v62 = vadd.f32 %v648_v57, %v643_v56 }
  0xfd   :  { %s918_s24 = sld [smem:[#allocation4 + $0x16]] }
  0xfe   :  { %s619_s28 = sadd.f32 %s618_s30, %s616_s9  ;;  %s621_s27 = smul.f32 2.0, %s914_s17 }
  0xff   :  { %s624_s3 = smul.f32 2.0, %s915_s25  ;;  %s1297_s5 = sld [smem:[#allocation4 + $0x1e]] }
 0x100   :  { %s622_s18 = sadd.f32 %s621_s27, %s619_s28 }
 0x101   :  { %s628_s0 = smul.f32 2.0, %s917_s29  ;;  %s920_s1 = sld [smem:[#allocation4 + $0x26]] }
 0x102   :  { %s625_s2 = sadd.f32 %s624_s3, %s622_s18 }
 0x103   :  { %s629_s6 = sadd.f32 %s916_s26, %s628_s0  ;;  %s631_s10 = smul.f32 2.0, %s918_s24 }
 0x104   :  { %v653_v59 = vstv %s625_s2  ;;  %s925_s11 = sld [smem:[#allocation2 + $0x15]] }
 0x105   :  { %s632_s13 = sadd.f32 %s631_s10, %s629_s6  ;;  %s634_s14 = smul.f32 2.0, %s1297_s5  ;;  %v654_v63 = vmul.f32 %v653_v59, %v1134_v42  ;;  %v655_v0 = vmul.f32 %v653_v59, %v1137_v43  ;;  %v656_v1 = vmul.f32 %v653_v59, %v1139_v44  ;;  %v657_v2 = vmul.f32 %v653_v59, %v1141_v45 }
 0x106   :  { %s926_s8 = sld [smem:[#allocation2 + $0x2d]] }
 0x107   :  { %s635_s20 = sadd.f32 %s634_s14, %s632_s13  ;;  %s637_s7 = smul.f32 2.0, %s920_s1  ;;  %v658_v3 = vadd.f32 %v654_v63, %v649_v58  ;;  %v659_v4 = vadd.f32 %v655_v0, %v650_v60  ;;  %v660_v5 = vadd.f32 %v656_v1, %v651_v61  ;;  %v661_v6 = vadd.f32 %v657_v2, %v652_v62 }
 0x108   :  { %s927_s15 = sld [smem:[#allocation2 + $0x45]] }
 0x109   :  { %s638_s16 = sadd.f32 %s637_s7, %s635_s20 }
 0x10a   :  { %s928_s21 = sld [smem:[#allocation2 + $0x5d]] }
 0x10b   :  { %v662_v7 = vstv %s638_s16  ;;  %s929_s22 = sld [smem:[#allocation2 + $0x75]] }
 0x10c   :  { %v663_v8 = vadd.f32 %v662_v7, %v658_v3  ;;  %v664_v9 = vadd.f32 %v662_v7, %v659_v4  ;;  %v665_v10 = vadd.f32 %v662_v7, %v660_v5  ;;  %s674_s23 = smul.f32 2.0, %s926_s8  ;;  %s930_s19 = sld [smem:[#allocation2 + $0x16]]  ;;  %v666_v11 = vadd.f32 %v662_v7, %v661_v6 }
 0x10d   :  { %s931_s17 = sld [smem:[#allocation2 + $0x2e]] }
 0x10e   :  { %921 = vst [vmem:[%s1352_s4 + $0xc0] sm:$0xff] %v663_v8  ;;  %s675_s26 = sadd.f32 %s925_s11, %s674_s23  ;;  %s677_s29 = smul.f32 2.0, %s927_s15 }
 0x10f   :  { %922 = vst [vmem:[%s1352_s4 + $0xc8] sm:$0xff] %v664_v9  ;;  %s932_s24 = sld [smem:[#allocation2 + $0x46]] }
 0x110   :  { %923 = vst [vmem:[%s1352_s4 + $0xd0] sm:$0xff] %v665_v10  ;;  %s678_s3 = sadd.f32 %s677_s29, %s675_s26  ;;  %s680_s5 = smul.f32 2.0, %s928_s21 }
 0x111   :  { %924 = vst [vmem:[%s1352_s4 + $0xd8] sm:$0xff] %v666_v11  ;;  %s683_s1 = smul.f32 2.0, %s929_s22  ;;  %s933_s2 = sld [smem:[#allocation2 + $0x5e]] }
 0x112   :  { %s681_s6 = sadd.f32 %s680_s5, %s678_s3 }
 0x113   :  { %s687_s10 = smul.f32 2.0, %s931_s17  ;;  %s934_s11 = sld [smem:[#allocation2 + $0x76]] }
 0x114   :  { %s684_s13 = sadd.f32 %s683_s1, %s681_s6 }
 0x115   :  { %s688_s14 = sadd.f32 %s930_s19, %s687_s10  ;;  %s690_s8 = smul.f32 2.0, %s932_s24 }
 0x116   :  { %s935_s20 = sld [smem:[#allocation2 + $0x17]]  ;;  %v724_v12 = vstv %s684_s13 }
 0x117   :  { %s691_s7 = sadd.f32 %s690_s8, %s688_s14  ;;  %s693_s15 = smul.f32 2.0, %s933_s2  ;;  %v725_v14 = vmul.f32 %v724_v12, %v1072_v16  ;;  %v726_v22 = vmul.f32 %v724_v12, %v1081_v18  ;;  %v727_v23 = vmul.f32 %v724_v12, %v1085_v20  ;;  %v728_v28 = vmul.f32 %v724_v12, %v1098_v26 }
 0x118   :  { %s936_s16 = sld [smem:[#allocation2 + $0x2f]] }
 0x119   :  { %s694_s23 = sadd.f32 %s693_s15, %s691_s7  ;;  %s696_s25 = smul.f32 2.0, %s934_s11 }
 0x11a   :  { %s937_s12 = sld [smem:[#allocation2 + $0x47]] }
 0x11b   :  { %s697_s21 = sadd.f32 %s696_s25, %s694_s23 }
 0x11c   :  { %s938_s26 = sld [smem:[#allocation2 + $0x5f]] }
 0x11d   :  { %s939_s29 = sld [smem:[#allocation2 + $0x77]]  ;;  %v729_v13 = vstv %s697_s21 }
 0x11e   :  { %s700_s9 = smul.f32 2.0, %s936_s16  ;;  %s940_s30 = sld [smem:[#allocation4 + $0x7]]  ;;  %v730_v15 = vmul.f32 %v729_v13, %v1074_v17  ;;  %v731_v24 = vmul.f32 %v729_v13, %v1083_v19  ;;  %v732_v25 = vmul.f32 %v729_v13, %v1087_v21  ;;  %v733_v29 = vmul.f32 %v729_v13, %v1100_v27 }
 0x11f   :  { %s941_s22 = sld [smem:[#allocation4 + $0xf]] }
 0x120   :  { %s701_s28 = sadd.f32 %s935_s20, %s700_s9  ;;  %s703_s27 = smul.f32 2.0, %s937_s12  ;;  %v734_v16 = vadd.f32 %v730_v15, %v725_v14  ;;  %v735_v30 = vadd.f32 %v731_v24, %v726_v22  ;;  %v736_v18 = vadd.f32 %v732_v25, %v727_v23  ;;  %v737_v31 = vadd.f32 %v733_v29, %v728_v28 }
 0x121   :  { %s942_s17 = sld [smem:[#allocation4 + $0x17]] }
 0x122   :  { %s704_s19 = sadd.f32 %s703_s27, %s701_s28  ;;  %s706_s24 = smul.f32 2.0, %s938_s26 }
 0x123   :  { %s709_s3 = smul.f32 2.0, %s939_s29  ;;  %s943_s5 = sld [smem:[#allocation4 + $0x1f]] }
 0x124   :  { %s707_s18 = sadd.f32 %s706_s24, %s704_s19 }
 0x125   :  { %s713_s0 = smul.f32 2.0, %s941_s22  ;;  %s944_s1 = sld [smem:[#allocation4 + $0x27]] }
 0x126   :  { %s710_s2 = sadd.f32 %s709_s3, %s707_s18 }
 0x127   :  { %s714_s6 = sadd.f32 %s940_s30, %s713_s0  ;;  %s716_s10 = smul.f32 2.0, %s942_s17 }
 0x128   :  { %v738_v17 = vstv %s710_s2 }
 0x129   :  { %s717_s11 = sadd.f32 %s716_s10, %s714_s6  ;;  %s719_s13 = smul.f32 2.0, %s943_s5  ;;  %v739_v19 = vmul.f32 %v738_v17, %v1134_v42  ;;  %v740_v20 = vmul.f32 %v738_v17, %v1137_v43  ;;  %v741_v21 = vmul.f32 %v738_v17, %v1139_v44  ;;  %v742_v26 = vmul.f32 %v738_v17, %v1141_v45 }
 0x12b   :  { %s720_s14 = sadd.f32 %s719_s13, %s717_s11  ;;  %s722_s8 = smul.f32 2.0, %s944_s1  ;;  %v743_v27 = vadd.f32 %v739_v19, %v734_v16  ;;  %v744_v32 = vadd.f32 %v740_v20, %v735_v30  ;;  %v745_v33 = vadd.f32 %v741_v21, %v736_v18  ;;  %v746_v34 = vadd.f32 %v742_v26, %v737_v31 }
 0x12d   :  { %s723_s20 = sadd.f32 %s722_s8, %s720_s14 }
 0x12f   :  { %v747_v35 = vstv %s723_s20 }
 0x130   :  { %v748_v36 = vadd.f32 %v747_v35, %v743_v27  ;;  %v749_v37 = vadd.f32 %v747_v35, %v744_v32  ;;  %v750_v38 = vadd.f32 %v747_v35, %v745_v33  ;;  %v751_v39 = vadd.f32 %v747_v35, %v746_v34 }
 0x132   :  { %945 = vst [vmem:[%s1352_s4 + $0xe0] sm:$0xff] %v748_v36 }
 0x133   :  { %946 = vst [vmem:[%s1352_s4 + $0xe8] sm:$0xff] %v749_v37 }
 0x134   :  { %947 = vst [vmem:[%s1352_s4 + $0xf0] sm:$0xff] %v750_v38 }
 0x135   :  { %948 = vst [vmem:[%s1352_s4 + $0xf8] sm:$0xff] %v751_v39 }
 0x136   :  { %761 = vsyncpa [#allocation3], 1 }
 0x137   :  { %762 = vsyncpa [#allocation5], 1 }

</bundles_post_ra>
